<compile_context>
chip_gen: v7x
topology: tpu7x:2x2x1
jax: 0.10.0
libtpu: 0.0.40
codegen_flags: <defaults>
</compile_context>

<pallas_src>
import functools

import numpy as np
import jax
import jax.numpy as jnp
from jax import lax
from jax.experimental import pallas as pl
from jax.experimental.pallas import tpu as pltpu

KP = 128  # lane-padded detector count (10 real detectors + 118 zero columns)


# ----------------------------------------------------------------------------
# Fused kernel factory: `items` batch elements per grid step
# ----------------------------------------------------------------------------
def _make_kernel(items, n_mod):
    f32 = jnp.float32
    bf16 = jnp.bfloat16

    def stack_cols(parts):
        return parts[0] if len(parts) == 1 else jnp.concatenate(parts, axis=1)

    def kernel(x_ref, frw_ref, fiw_ref, frwt_ref, fiwt_ref,
               fr_ref, fi_ref, fni_ref, hr_ref, hi_ref,
               mr_ref, mi_ref, gx_ref, gy_ref, o_ref):
        N = fr_ref.shape[0]

        def cdot(ar, ai, br, bi):
            # 4-multiply complex matmul: bf16 MXU operands, f32 accumulation.
            ar = ar.astype(bf16); ai = ai.astype(bf16)
            br = br.astype(bf16); bi = bi.astype(bf16)
            cr = (jnp.dot(ar, br, preferred_element_type=f32)
                  - jnp.dot(ai, bi, preferred_element_type=f32))
            ci = (jnp.dot(ar, bi, preferred_element_type=f32)
                  + jnp.dot(ai, br, preferred_element_type=f32))
            return cr, ci

        def inverse_and_modulate(xh_r, xh_i, mod_idx):
            # ifft2 (conj(F) @ Xh @ conj(F); 1/N^2 folded into h) of the per-item
            # spectra, then optional phase modulation.  The left multiply runs on
            # the col-stacked (N, items*N) slab (wide MXU output on v6e/v7x).
            fr = fr_ref[...]          # re-read per layer -> bounded live ranges
            fni = fni_ref[...]        # conj(F) imag, pre-negated host-side
            ur, ui = cdot(fr, fni, stack_cols(xh_r), stack_cols(xh_i))
            if mod_idx is not None:
                mr = mr_ref[mod_idx]  # dynamic leading-dim index (fori_loop l)
                mi = mi_ref[mod_idx]
            out_r, out_i = [], []
            for it in range(items):
                yr, yi = cdot(ur[:, it * N:(it + 1) * N],
                              ui[:, it * N:(it + 1) * N], fr, fni)
                if mod_idx is not None:
                    out_r.append(yr * mr - yi * mi)       # f32 elementwise
                    out_i.append(yr * mi + yi * mr)
                else:
                    out_r.append(yr)
                    out_i.append(yi)
            return out_r, out_i

        def propagate_modulate(xr_c, xi_c, mod_idx):
            # One AngularPropagation (+ optional modulation) on the col-stacked field.
            fr = fr_ref[...]
            fi = fi_ref[...]
            hr = hr_ref[...]
            hi = hi_ref[...]
            tr, ti = cdot(fr, fi, xr_c, xi_c)             # F @ x   (wide RHS)
            xh_r, xh_i = [], []
            for it in range(items):
                Xr, Xi = cdot(tr[:, it * N:(it + 1) * N],
                              ti[:, it * N:(it + 1) * N], fr, fi)   # (F x) @ F
                xh_r.append(Xr * hr - Xi * hi)            # * h  (f32)
                xh_i.append(Xr * hi + Xi * hr)
            return inverse_and_modulate(xh_r, xh_i, mod_idx)

        # ---- layer 0: purely real input, nonzero only inside the image window.
        #      fft2(pad(img)) = F[:, w] @ img @ F[w, :]  (contraction over W, and
        #      only two real dots for the first transform).
        frw = frw_ref[...]
        fiw = fiw_ref[...]
        frwt = frwt_ref[...]
        fiwt = fiwt_ref[...]
        hr = hr_ref[...]
        hi = hi_ref[...]
        xh_r, xh_i = [], []
        for it in range(items):
            xw = x_ref[it].astype(bf16)                            # (W, W) image
            tr = jnp.dot(frw, xw, preferred_element_type=f32)      # (N, W)
            ti = jnp.dot(fiw, xw, preferred_element_type=f32)
            Xr, Xi = cdot(tr, ti, frwt, fiwt)                      # (N, N) fft2
            xh_r.append(Xr * hr - Xi * hi)
            xh_i.append(Xr * hi + Xi * hr)
        cur_r, cur_i = inverse_and_modulate(xh_r, xh_i, 0)

        # ---- layers 1..n_mod-1: identical propagate+modulate; fori_loop bounds
        #      vreg live ranges (no full unroll) and indexes M[l] dynamically.
        def body(l, carry):
            yr, yi = propagate_modulate(carry[0], carry[1], l)
            return stack_cols(yr), stack_cols(yi)

        xr_c, xi_c = lax.fori_loop(1, n_mod, body,
                                   (stack_cols(cur_r), stack_cols(cur_i)))

        # ---- final bare propagation + fused CutLayer / IntensitySum readout ----
        yr, yi = propagate_modulate(xr_c, xi_c, None)
        gx = gx_ref[...]
        gy = gy_ref[...]
        for it in range(items):
            inten = yr[it] * yr[it] + yi[it] * yi[it]              # f32 (N, N)
            m1 = jnp.dot(inten, gy, preferred_element_type=f32)    # (N, KP)
            row = jnp.sum(gx * m1, axis=0, keepdims=True)          # (1, KP)
            o_ref[it] = jnp.broadcast_to(row, (8, KP))

    return kernel


# ----------------------------------------------------------------------------
# Parameter construction (deterministic, mirrors the PyTorch __init__ math)
# ----------------------------------------------------------------------------
def build_params(key, *, pixel_pitch, distance, n_padd, lambd, size,
                 scale_factor, margin, image_size):
    N = 2 * n_padd + size
    original_size = int(size / scale_factor)
    x_padd = (size - image_size) // 2 + n_padd
    w0, w1 = x_padd, x_padd + image_size

    # --- AngularPropagation transfer function h (ifft2's 1/N^2 folded in) ---
    lambda_nd = lambd / pixel_pitch
    k_nd = 2.0 * np.pi / lambda_nd
    dist_nd = distance / pixel_pitch
    fx = np.linspace(-N / 2 + 1, N / 2, N)
    FX, FY = np.meshgrid(fx, fx, indexing="ij")
    deter = 1.0 - (lambda_nd ** 2) / (N ** 2) * (FX ** 2 + FY ** 2)
    mask = deter < 0
    deter = np.maximum(deter, 0.0)
    phase = k_nd * dist_nd * np.sqrt(deter)
    hr = np.where(mask, 0.0, np.cos(phase)) / (N * N)
    hi = np.where(mask, 0.0, np.sin(phase)) / (N * N)
    hr = np.fft.fftshift(hr).astype(np.float32)
    hi = np.fft.fftshift(hi).astype(np.float32)

    # --- symmetric DFT matrix F (fft2(x) = F @ x @ F); MXU operands in bf16,
    #     conj(F) imaginary part pre-negated, layer-0 window slices presliced ---
    idx = np.arange(N)
    ang = (-2.0 * np.pi / N) * ((idx[:, None] * idx[None, :]) % N)
    Fr = np.cos(ang).astype(np.float32)
    Fi = np.sin(ang).astype(np.float32)
    bf = jnp.bfloat16
    # TODO(synk): bf16 operands trade ~1e-2-level relative error over 24 chained
    # DFT matmuls for ~3x fewer MXU passes; validate vs an f32 FFT reference.

    # --- 5 modulation layers: exp(i*pi*sigmoid(randn)), upsampled, zero-pad ---
    keys = jax.random.split(key, 5)
    mrs, mis = [], []
    for k in keys:
        m = jax.random.normal(k, (original_size, original_size), jnp.float32)
        m = jnp.repeat(jnp.repeat(m, scale_factor, axis=0), scale_factor, axis=1)
        ph = jnp.pi * jax.nn.sigmoid(m)
        mrs.append(jnp.pad(jnp.cos(ph), n_padd))   # zero pad -> complex zero
        mis.append(jnp.pad(jnp.sin(ph), n_padd))
    Mr = jnp.stack(mrs).astype(jnp.float32)        # (5, N, N)
    Mi = jnp.stack(mis).astype(jnp.float32)

    # --- IntensitySum gaussians: separable 1-D factors embedded (zeroed) on the
    #     full N grid so CutLayer+IntensitySum fuse into two small f32 dots ---
    disp, sigma = 50, 3.0
    base_centers = [(19, 19), (19, 49), (19, 81), (50, 15), (50, 38),
                    (50, 62), (50, 85), (81, 19), (81, 49), (81, 81)]
    start = n_padd + margin
    S = size - 2 * margin
    u = np.arange(N, dtype=np.float64) - start
    in_win = (u >= 0) & (u < S)
    GX = np.zeros((N, KP), np.float32)
    GY = np.zeros((N, KP), np.float32)
    for kk, (cx, cy) in enumerate(base_centers):
        cxn = (cx + disp) * scale_factor
        cyn = (cy + disp) * scale_factor
        GX[:, kk] = np.where(in_win, np.exp(-(u - cxn) ** 2 / (2 * sigma ** 2)), 0.0)
        GY[:, kk] = np.where(in_win, np.exp(-(u - cyn) ** 2 / (2 * sigma ** 2)), 0.0)

    return dict(
        N=N,
        Fr=jnp.asarray(Fr, bf), Fi=jnp.asarray(Fi, bf), Fni=jnp.asarray(-Fi, bf),
        Frw=jnp.asarray(Fr[:, w0:w1], bf), Fiw=jnp.asarray(Fi[:, w0:w1], bf),
        Frwt=jnp.asarray(Fr[w0:w1, :], bf), Fiwt=jnp.asarray(Fi[w0:w1, :], bf),
        hr=jnp.asarray(hr), hi=jnp.asarray(hi),
        Mr=Mr, Mi=Mi,
        GX=jnp.asarray(GX), GY=jnp.asarray(GY))


# ----------------------------------------------------------------------------
# Full forward pass: one fused pallas_call
# ----------------------------------------------------------------------------
def _items_per_step(batch):
    # 2 items per step only where the MXU is 256-wide (v6e / v7x) and the grid
    # still keeps >= 2 steps (so both v7x TensorCores get work); else 1.
    kind = jax.devices()[0].device_kind.lower()
    wide_mxu = ("v6" in kind) or ("v7" in kind)
    if wide_mxu and batch % 2 == 0 and batch >= 4:
        return 2
    return 1


def dmodel_forward(x, params):
    B = x.shape[0]
    W = x.shape[-1]                      # image_size (layer-0 window width)
    N = params["N"]
    L = params["Mr"].shape[0]

    xin = x[:, 0].astype(jnp.float32)    # (B, W, W); padding handled via F slices

    items = _items_per_step(B)
    grid = (B // items,)

    x_spec = pl.BlockSpec((items, W, W), lambda b: (b, 0, 0))
    fwin_spec = pl.BlockSpec((N, W), lambda b: (0, 0))
    fwint_spec = pl.BlockSpec((W, N), lambda b: (0, 0))
    mat_spec = pl.BlockSpec((N, N), lambda b: (0, 0))
    mod_spec = pl.BlockSpec((L, N, N), lambda b: (0, 0, 0))
    g_spec = pl.BlockSpec((N, KP), lambda b: (0, 0))
    out_spec = pl.BlockSpec((items, 8, KP), lambda b: (b, 0, 0))
    # TODO(synk): constants could be single-buffered (pipeline_mode=pl.Buffered(1))
    # and vmem_limit_bytes set explicitly if N is ever scaled up; at N=128 the
    # whole constant set is ~1 MiB so the defaults are fine.

    out = pl.pallas_call(
        _make_kernel(items, L),
        out_shape=jax.ShapeDtypeStruct((B, 8, KP), jnp.float32),
        grid=grid,
        in_specs=[x_spec, fwin_spec, fwin_spec, fwint_spec, fwint_spec,
                  mat_spec, mat_spec, mat_spec, mat_spec, mat_spec,
                  mod_spec, mod_spec, g_spec, g_spec],
        out_specs=out_spec,
        compiler_params=pltpu.CompilerParams(
            dimension_semantics=("parallel",)),
    )(xin, params["Frw"], params["Fiw"], params["Frwt"], params["Fiwt"],
      params["Fr"], params["Fi"], params["Fni"], params["hr"], params["hi"],
      params["Mr"], params["Mi"], params["GX"], params["GY"])

    # lane-padded, sublane-broadcast output -> (B, 10)
    return out[:, 0, :10]


# ----------------------------------------------------------------------------
if __name__ == "__main__":
    # Small, self-consistent configuration (N = 2*n_padd + size = 128)
    B = 4                  # even and >= 4: exercises 2-per-step batching with grid=2
    size = 96
    n_padd = 16
    image_size = 64
    scale_factor = 2
    margin = 0             # CutLayer output matches the IntensitySum grid (size)
    pixel_pitch = 8e-6
    lambd = 632.8e-9
    distance = 5e-4

    key = jax.random.PRNGKey(0)
    k_in, k_params = jax.random.split(key)

    params = build_params(k_params,
                          pixel_pitch=pixel_pitch, distance=distance,
                          n_padd=n_padd, lambd=lambd, size=size,
                          scale_factor=scale_factor, margin=margin,
                          image_size=image_size)

    x = jax.random.normal(k_in, (B, 1, image_size, image_size), jnp.float32)

    fwd = functools.partial(dmodel_forward, params=params)
    out = jax.block_until_ready(jax.jit(fwd)(x))
    assert out.shape == (B, 10), out.shape
    assert bool(jnp.all(jnp.isfinite(out)))
    print("KERNEL_OK")
</pallas_src>

<mosaic_0001>
module attributes {stable_mosaic.version = 11 : i64} {
  func.func @kernel(%arg0: i32, %arg1: memref<1x64x64xf32, #tpu.memory_space<vmem>>, %arg2: memref<128x64xbf16, #tpu.memory_space<vmem>>, %arg3: memref<128x64xbf16, #tpu.memory_space<vmem>>, %arg4: memref<64x128xbf16, #tpu.memory_space<vmem>>, %arg5: memref<64x128xbf16, #tpu.memory_space<vmem>>, %arg6: memref<128x128xbf16, #tpu.memory_space<vmem>>, %arg7: memref<128x128xbf16, #tpu.memory_space<vmem>>, %arg8: memref<128x128xbf16, #tpu.memory_space<vmem>>, %arg9: memref<128x128xf32, #tpu.memory_space<vmem>>, %arg10: memref<128x128xf32, #tpu.memory_space<vmem>>, %arg11: memref<5x128x128xf32, #tpu.memory_space<vmem>>, %arg12: memref<5x128x128xf32, #tpu.memory_space<vmem>>, %arg13: memref<128x128xf32, #tpu.memory_space<vmem>>, %arg14: memref<128x128xf32, #tpu.memory_space<vmem>>, %arg15: memref<1x8x128xf32, #tpu.memory_space<vmem>>) attributes {dimension_semantics = [#tpu.dimension_semantics<parallel>], iteration_bounds = array<i64: 4>, scalar_prefetch = 0 : i64, scratch_operands = 0 : i64, tpu.core_type = #tpu.core_type<tc>, window_params = [{transform_indices = @transform_0, window_bounds = array<i64: 1, 64, 64>}, {pipeline_mode = #tpu.pipeline_mode<synchronous>, transform_indices = @transform_1, window_bounds = array<i64: 128, 64>}, {pipeline_mode = #tpu.pipeline_mode<synchronous>, transform_indices = @transform_2, window_bounds = array<i64: 128, 64>}, {pipeline_mode = #tpu.pipeline_mode<synchronous>, transform_indices = @transform_3, window_bounds = array<i64: 64, 128>}, {pipeline_mode = #tpu.pipeline_mode<synchronous>, transform_indices = @transform_4, window_bounds = array<i64: 64, 128>}, {pipeline_mode = #tpu.pipeline_mode<synchronous>, transform_indices = @transform_5, window_bounds = array<i64: 128, 128>}, {pipeline_mode = #tpu.pipeline_mode<synchronous>, transform_indices = @transform_6, window_bounds = array<i64: 128, 128>}, {pipeline_mode = #tpu.pipeline_mode<synchronous>, transform_indices = @transform_7, window_bounds = array<i64: 128, 128>}, {pipeline_mode = #tpu.pipeline_mode<synchronous>, transform_indices = @transform_8, window_bounds = array<i64: 128, 128>}, {pipeline_mode = #tpu.pipeline_mode<synchronous>, transform_indices = @transform_9, window_bounds = array<i64: 128, 128>}, {pipeline_mode = #tpu.pipeline_mode<synchronous>, transform_indices = @transform_10, window_bounds = array<i64: 5, 128, 128>}, {pipeline_mode = #tpu.pipeline_mode<synchronous>, transform_indices = @transform_11, window_bounds = array<i64: 5, 128, 128>}, {pipeline_mode = #tpu.pipeline_mode<synchronous>, transform_indices = @transform_12, window_bounds = array<i64: 128, 128>}, {pipeline_mode = #tpu.pipeline_mode<synchronous>, transform_indices = @transform_13, window_bounds = array<i64: 128, 128>}, {transform_indices = @transform_14, window_bounds = array<i64: 1, 8, 128>}]} {
    %c0 = arith.constant 0 : index
    %c0_0 = arith.constant 0 : index
    %0 = vector.load %arg2[%c0, %c0_0] : memref<128x64xbf16, #tpu.memory_space<vmem>>, vector<128x64xbf16>
    %c0_1 = arith.constant 0 : index
    %c0_2 = arith.constant 0 : index
    %1 = vector.load %arg3[%c0_1, %c0_2] : memref<128x64xbf16, #tpu.memory_space<vmem>>, vector<128x64xbf16>
    %c0_3 = arith.constant 0 : index
    %c0_4 = arith.constant 0 : index
    %2 = vector.load %arg4[%c0_3, %c0_4] : memref<64x128xbf16, #tpu.memory_space<vmem>>, vector<64x128xbf16>
    %c0_5 = arith.constant 0 : index
    %c0_6 = arith.constant 0 : index
    %3 = vector.load %arg5[%c0_5, %c0_6] : memref<64x128xbf16, #tpu.memory_space<vmem>>, vector<64x128xbf16>
    %c0_7 = arith.constant 0 : index
    %c0_8 = arith.constant 0 : index
    %4 = vector.load %arg9[%c0_7, %c0_8] : memref<128x128xf32, #tpu.memory_space<vmem>>, vector<128x128xf32>
    %c0_9 = arith.constant 0 : index
    %c0_10 = arith.constant 0 : index
    %5 = vector.load %arg10[%c0_9, %c0_10] : memref<128x128xf32, #tpu.memory_space<vmem>>, vector<128x128xf32>
    %c0_11 = arith.constant 0 : index
    %c0_12 = arith.constant 0 : index
    %c0_13 = arith.constant 0 : index
    %6 = vector.load %arg1[%c0_11, %c0_12, %c0_13] : memref<1x64x64xf32, #tpu.memory_space<vmem>>, vector<1x64x64xf32>
    %7 = vector.shape_cast %6 : vector<1x64x64xf32> to vector<64x64xf32>
    %8 = arith.truncf %7 : vector<64x64xf32> to vector<64x64xbf16>
    %cst = arith.constant dense<0.000000e+00> : vector<128x64xf32>
    %9 = tpu.matmul %0, %8, %cst {dimension_numbers = #tpu.dot_dimension_numbers<[1], [0], [0], [1], [0, 0, 1, 1], [], []>} : vector<128x64xbf16>, vector<64x64xbf16>, vector<128x64xf32> -> vector<128x64xf32>
    %cst_14 = arith.constant dense<0.000000e+00> : vector<128x64xf32>
    %10 = tpu.matmul %1, %8, %cst_14 {dimension_numbers = #tpu.dot_dimension_numbers<[1], [0], [0], [1], [0, 0, 1, 1], [], []>} : vector<128x64xbf16>, vector<64x64xbf16>, vector<128x64xf32> -> vector<128x64xf32>
    %11 = arith.truncf %9 : vector<128x64xf32> to vector<128x64xbf16>
    %12 = arith.truncf %10 : vector<128x64xf32> to vector<128x64xbf16>
    %cst_15 = arith.constant dense<0.000000e+00> : vector<128x128xf32>
    %13 = tpu.matmul %11, %2, %cst_15 {dimension_numbers = #tpu.dot_dimension_numbers<[1], [0], [0], [1], [0, 0, 1, 1], [], []>} : vector<128x64xbf16>, vector<64x128xbf16>, vector<128x128xf32> -> vector<128x128xf32>
    %cst_16 = arith.constant dense<0.000000e+00> : vector<128x128xf32>
    %14 = tpu.matmul %12, %3, %cst_16 {dimension_numbers = #tpu.dot_dimension_numbers<[1], [0], [0], [1], [0, 0, 1, 1], [], []>} : vector<128x64xbf16>, vector<64x128xbf16>, vector<128x128xf32> -> vector<128x128xf32>
    %15 = arith.subf %13, %14 : vector<128x128xf32>
    %cst_17 = arith.constant dense<0.000000e+00> : vector<128x128xf32>
    %16 = tpu.matmul %11, %3, %cst_17 {dimension_numbers = #tpu.dot_dimension_numbers<[1], [0], [0], [1], [0, 0, 1, 1], [], []>} : vector<128x64xbf16>, vector<64x128xbf16>, vector<128x128xf32> -> vector<128x128xf32>
    %cst_18 = arith.constant dense<0.000000e+00> : vector<128x128xf32>
    %17 = tpu.matmul %12, %2, %cst_18 {dimension_numbers = #tpu.dot_dimension_numbers<[1], [0], [0], [1], [0, 0, 1, 1], [], []>} : vector<128x64xbf16>, vector<64x128xbf16>, vector<128x128xf32> -> vector<128x128xf32>
    %18 = arith.addf %16, %17 : vector<128x128xf32>
    %19 = arith.mulf %15, %4 : vector<128x128xf32>
    %20 = arith.mulf %18, %5 : vector<128x128xf32>
    %21 = arith.subf %19, %20 : vector<128x128xf32>
    %22 = arith.mulf %15, %5 : vector<128x128xf32>
    %23 = arith.mulf %18, %4 : vector<128x128xf32>
    %24 = arith.addf %22, %23 : vector<128x128xf32>
    %c0_19 = arith.constant 0 : index
    %c0_20 = arith.constant 0 : index
    %25 = vector.load %arg6[%c0_19, %c0_20] : memref<128x128xbf16, #tpu.memory_space<vmem>>, vector<128x128xbf16>
    %c0_21 = arith.constant 0 : index
    %c0_22 = arith.constant 0 : index
    %26 = vector.load %arg8[%c0_21, %c0_22] : memref<128x128xbf16, #tpu.memory_space<vmem>>, vector<128x128xbf16>
    %27 = arith.truncf %21 : vector<128x128xf32> to vector<128x128xbf16>
    %28 = arith.truncf %24 : vector<128x128xf32> to vector<128x128xbf16>
    %cst_23 = arith.constant dense<0.000000e+00> : vector<128x128xf32>
    %29 = tpu.matmul %25, %27, %cst_23 {dimension_numbers = #tpu.dot_dimension_numbers<[1], [0], [0], [1], [0, 0, 1, 1], [], []>} : vector<128x128xbf16>, vector<128x128xbf16>, vector<128x128xf32> -> vector<128x128xf32>
    %cst_24 = arith.constant dense<0.000000e+00> : vector<128x128xf32>
    %30 = tpu.matmul %26, %28, %cst_24 {dimension_numbers = #tpu.dot_dimension_numbers<[1], [0], [0], [1], [0, 0, 1, 1], [], []>} : vector<128x128xbf16>, vector<128x128xbf16>, vector<128x128xf32> -> vector<128x128xf32>
    %31 = arith.subf %29, %30 : vector<128x128xf32>
    %cst_25 = arith.constant dense<0.000000e+00> : vector<128x128xf32>
    %32 = tpu.matmul %25, %28, %cst_25 {dimension_numbers = #tpu.dot_dimension_numbers<[1], [0], [0], [1], [0, 0, 1, 1], [], []>} : vector<128x128xbf16>, vector<128x128xbf16>, vector<128x128xf32> -> vector<128x128xf32>
    %cst_26 = arith.constant dense<0.000000e+00> : vector<128x128xf32>
    %33 = tpu.matmul %26, %27, %cst_26 {dimension_numbers = #tpu.dot_dimension_numbers<[1], [0], [0], [1], [0, 0, 1, 1], [], []>} : vector<128x128xbf16>, vector<128x128xbf16>, vector<128x128xf32> -> vector<128x128xf32>
    %34 = arith.addf %32, %33 : vector<128x128xf32>
    %c0_27 = arith.constant 0 : index
    %c0_28 = arith.constant 0 : index
    %c0_29 = arith.constant 0 : index
    %35 = vector.load %arg11[%c0_27, %c0_28, %c0_29] : memref<5x128x128xf32, #tpu.memory_space<vmem>>, vector<1x128x128xf32>
    %36 = vector.shape_cast %35 : vector<1x128x128xf32> to vector<128x128xf32>
    %c0_30 = arith.constant 0 : index
    %c0_31 = arith.constant 0 : index
    %c0_32 = arith.constant 0 : index
    %37 = vector.load %arg12[%c0_30, %c0_31, %c0_32] : memref<5x128x128xf32, #tpu.memory_space<vmem>>, vector<1x128x128xf32>
    %38 = vector.shape_cast %37 : vector<1x128x128xf32> to vector<128x128xf32>
    %39 = arith.truncf %31 : vector<128x128xf32> to vector<128x128xbf16>
    %40 = arith.truncf %34 : vector<128x128xf32> to vector<128x128xbf16>
    %cst_33 = arith.constant dense<0.000000e+00> : vector<128x128xf32>
    %41 = tpu.matmul %39, %25, %cst_33 {dimension_numbers = #tpu.dot_dimension_numbers<[1], [0], [0], [1], [0, 0, 1, 1], [], []>} : vector<128x128xbf16>, vector<128x128xbf16>, vector<128x128xf32> -> vector<128x128xf32>
    %cst_34 = arith.constant dense<0.000000e+00> : vector<128x128xf32>
    %42 = tpu.matmul %40, %26, %cst_34 {dimension_numbers = #tpu.dot_dimension_numbers<[1], [0], [0], [1], [0, 0, 1, 1], [], []>} : vector<128x128xbf16>, vector<128x128xbf16>, vector<128x128xf32> -> vector<128x128xf32>
    %43 = arith.subf %41, %42 : vector<128x128xf32>
    %cst_35 = arith.constant dense<0.000000e+00> : vector<128x128xf32>
    %44 = tpu.matmul %39, %26, %cst_35 {dimension_numbers = #tpu.dot_dimension_numbers<[1], [0], [0], [1], [0, 0, 1, 1], [], []>} : vector<128x128xbf16>, vector<128x128xbf16>, vector<128x128xf32> -> vector<128x128xf32>
    %cst_36 = arith.constant dense<0.000000e+00> : vector<128x128xf32>
    %45 = tpu.matmul %40, %25, %cst_36 {dimension_numbers = #tpu.dot_dimension_numbers<[1], [0], [0], [1], [0, 0, 1, 1], [], []>} : vector<128x128xbf16>, vector<128x128xbf16>, vector<128x128xf32> -> vector<128x128xf32>
    %46 = arith.addf %44, %45 : vector<128x128xf32>
    %47 = arith.mulf %43, %36 : vector<128x128xf32>
    %48 = arith.mulf %46, %38 : vector<128x128xf32>
    %49 = arith.subf %47, %48 : vector<128x128xf32>
    %50 = arith.mulf %43, %38 : vector<128x128xf32>
    %51 = arith.mulf %46, %36 : vector<128x128xf32>
    %52 = arith.addf %50, %51 : vector<128x128xf32>
    %c1_i32 = arith.constant 1 : i32
    %c4_i32 = arith.constant 4 : i32
    %53 = arith.addi %c1_i32, %c4_i32 : i32
    %c1_i32_37 = arith.constant 1 : i32
    %54:2 = scf.for %arg16 = %c1_i32 to %53 step %c1_i32_37 iter_args(%arg17 = %49, %arg18 = %52) -> (vector<128x128xf32>, vector<128x128xf32>)  : i32 {
      %c0_76 = arith.constant 0 : index
      %c0_77 = arith.constant 0 : index
      %113 = vector.load %arg6[%c0_76, %c0_77] : memref<128x128xbf16, #tpu.memory_space<vmem>>, vector<128x128xbf16>
      %c0_78 = arith.constant 0 : index
      %c0_79 = arith.constant 0 : index
      %114 = vector.load %arg7[%c0_78, %c0_79] : memref<128x128xbf16, #tpu.memory_space<vmem>>, vector<128x128xbf16>
      %c0_80 = arith.constant 0 : index
      %c0_81 = arith.constant 0 : index
      %115 = vector.load %arg9[%c0_80, %c0_81] : memref<128x128xf32, #tpu.memory_space<vmem>>, vector<128x128xf32>
      %c0_82 = arith.constant 0 : index
      %c0_83 = arith.constant 0 : index
      %116 = vector.load %arg10[%c0_82, %c0_83] : memref<128x128xf32, #tpu.memory_space<vmem>>, vector<128x128xf32>
      %117 = arith.truncf %arg17 : vector<128x128xf32> to vector<128x128xbf16>
      %118 = arith.truncf %arg18 : vector<128x128xf32> to vector<128x128xbf16>
      %cst_84 = arith.constant dense<0.000000e+00> : vector<128x128xf32>
      %119 = tpu.matmul %113, %117, %cst_84 {dimension_numbers = #tpu.dot_dimension_numbers<[1], [0], [0], [1], [0, 0, 1, 1], [], []>} : vector<128x128xbf16>, vector<128x128xbf16>, vector<128x128xf32> -> vector<128x128xf32>
      %cst_85 = arith.constant dense<0.000000e+00> : vector<128x128xf32>
      %120 = tpu.matmul %114, %118, %cst_85 {dimension_numbers = #tpu.dot_dimension_numbers<[1], [0], [0], [1], [0, 0, 1, 1], [], []>} : vector<128x128xbf16>, vector<128x128xbf16>, vector<128x128xf32> -> vector<128x128xf32>
      %121 = arith.subf %119, %120 : vector<128x128xf32>
      %cst_86 = arith.constant dense<0.000000e+00> : vector<128x128xf32>
      %122 = tpu.matmul %113, %118, %cst_86 {dimension_numbers = #tpu.dot_dimension_numbers<[1], [0], [0], [1], [0, 0, 1, 1], [], []>} : vector<128x128xbf16>, vector<128x128xbf16>, vector<128x128xf32> -> vector<128x128xf32>
      %cst_87 = arith.constant dense<0.000000e+00> : vector<128x128xf32>
      %123 = tpu.matmul %114, %117, %cst_87 {dimension_numbers = #tpu.dot_dimension_numbers<[1], [0], [0], [1], [0, 0, 1, 1], [], []>} : vector<128x128xbf16>, vector<128x128xbf16>, vector<128x128xf32> -> vector<128x128xf32>
      %124 = arith.addf %122, %123 : vector<128x128xf32>
      %125 = arith.truncf %121 : vector<128x128xf32> to vector<128x128xbf16>
      %126 = arith.truncf %124 : vector<128x128xf32> to vector<128x128xbf16>
      %cst_88 = arith.constant dense<0.000000e+00> : vector<128x128xf32>
      %127 = tpu.matmul %125, %113, %cst_88 {dimension_numbers = #tpu.dot_dimension_numbers<[1], [0], [0], [1], [0, 0, 1, 1], [], []>} : vector<128x128xbf16>, vector<128x128xbf16>, vector<128x128xf32> -> vector<128x128xf32>
      %cst_89 = arith.constant dense<0.000000e+00> : vector<128x128xf32>
      %128 = tpu.matmul %126, %114, %cst_89 {dimension_numbers = #tpu.dot_dimension_numbers<[1], [0], [0], [1], [0, 0, 1, 1], [], []>} : vector<128x128xbf16>, vector<128x128xbf16>, vector<128x128xf32> -> vector<128x128xf32>
      %129 = arith.subf %127, %128 : vector<128x128xf32>
      %cst_90 = arith.constant dense<0.000000e+00> : vector<128x128xf32>
      %130 = tpu.matmul %125, %114, %cst_90 {dimension_numbers = #tpu.dot_dimension_numbers<[1], [0], [0], [1], [0, 0, 1, 1], [], []>} : vector<128x128xbf16>, vector<128x128xbf16>, vector<128x128xf32> -> vector<128x128xf32>
      %cst_91 = arith.constant dense<0.000000e+00> : vector<128x128xf32>
      %131 = tpu.matmul %126, %113, %cst_91 {dimension_numbers = #tpu.dot_dimension_numbers<[1], [0], [0], [1], [0, 0, 1, 1], [], []>} : vector<128x128xbf16>, vector<128x128xbf16>, vector<128x128xf32> -> vector<128x128xf32>
      %132 = arith.addf %130, %131 : vector<128x128xf32>
      %133 = arith.mulf %129, %115 : vector<128x128xf32>
      %134 = arith.mulf %132, %116 : vector<128x128xf32>
      %135 = arith.subf %133, %134 : vector<128x128xf32>
      %136 = arith.mulf %129, %116 : vector<128x128xf32>
      %137 = arith.mulf %132, %115 : vector<128x128xf32>
      %138 = arith.addf %136, %137 : vector<128x128xf32>
      %c0_92 = arith.constant 0 : index
      %c0_93 = arith.constant 0 : index
      %139 = vector.load %arg6[%c0_92, %c0_93] : memref<128x128xbf16, #tpu.memory_space<vmem>>, vector<128x128xbf16>
      %c0_94 = arith.constant 0 : index
      %c0_95 = arith.constant 0 : index
      %140 = vector.load %arg8[%c0_94, %c0_95] : memref<128x128xbf16, #tpu.memory_space<vmem>>, vector<128x128xbf16>
      %141 = arith.truncf %135 : vector<128x128xf32> to vector<128x128xbf16>
      %142 = arith.truncf %138 : vector<128x128xf32> to vector<128x128xbf16>
      %cst_96 = arith.constant dense<0.000000e+00> : vector<128x128xf32>
      %143 = tpu.matmul %139, %141, %cst_96 {dimension_numbers = #tpu.dot_dimension_numbers<[1], [0], [0], [1], [0, 0, 1, 1], [], []>} : vector<128x128xbf16>, vector<128x128xbf16>, vector<128x128xf32> -> vector<128x128xf32>
      %cst_97 = arith.constant dense<0.000000e+00> : vector<128x128xf32>
      %144 = tpu.matmul %140, %142, %cst_97 {dimension_numbers = #tpu.dot_dimension_numbers<[1], [0], [0], [1], [0, 0, 1, 1], [], []>} : vector<128x128xbf16>, vector<128x128xbf16>, vector<128x128xf32> -> vector<128x128xf32>
      %145 = arith.subf %143, %144 : vector<128x128xf32>
      %cst_98 = arith.constant dense<0.000000e+00> : vector<128x128xf32>
      %146 = tpu.matmul %139, %142, %cst_98 {dimension_numbers = #tpu.dot_dimension_numbers<[1], [0], [0], [1], [0, 0, 1, 1], [], []>} : vector<128x128xbf16>, vector<128x128xbf16>, vector<128x128xf32> -> vector<128x128xf32>
      %cst_99 = arith.constant dense<0.000000e+00> : vector<128x128xf32>
      %147 = tpu.matmul %140, %141, %cst_99 {dimension_numbers = #tpu.dot_dimension_numbers<[1], [0], [0], [1], [0, 0, 1, 1], [], []>} : vector<128x128xbf16>, vector<128x128xbf16>, vector<128x128xf32> -> vector<128x128xf32>
      %148 = arith.addf %146, %147 : vector<128x128xf32>
      %149 = arith.index_cast %arg16 : i32 to index
      %c0_100 = arith.constant 0 : index
      %c0_101 = arith.constant 0 : index
      %150 = vector.load %arg11[%149, %c0_100, %c0_101] : memref<5x128x128xf32, #tpu.memory_space<vmem>>, vector<1x128x128xf32>
      %151 = vector.shape_cast %150 : vector<1x128x128xf32> to vector<128x128xf32>
      %152 = arith.index_cast %arg16 : i32 to index
      %c0_102 = arith.constant 0 : index
      %c0_103 = arith.constant 0 : index
      %153 = vector.load %arg12[%152, %c0_102, %c0_103] : memref<5x128x128xf32, #tpu.memory_space<vmem>>, vector<1x128x128xf32>
      %154 = vector.shape_cast %153 : vector<1x128x128xf32> to vector<128x128xf32>
      %155 = arith.truncf %145 : vector<128x128xf32> to vector<128x128xbf16>
      %156 = arith.truncf %148 : vector<128x128xf32> to vector<128x128xbf16>
      %cst_104 = arith.constant dense<0.000000e+00> : vector<128x128xf32>
      %157 = tpu.matmul %155, %139, %cst_104 {dimension_numbers = #tpu.dot_dimension_numbers<[1], [0], [0], [1], [0, 0, 1, 1], [], []>} : vector<128x128xbf16>, vector<128x128xbf16>, vector<128x128xf32> -> vector<128x128xf32>
      %cst_105 = arith.constant dense<0.000000e+00> : vector<128x128xf32>
      %158 = tpu.matmul %156, %140, %cst_105 {dimension_numbers = #tpu.dot_dimension_numbers<[1], [0], [0], [1], [0, 0, 1, 1], [], []>} : vector<128x128xbf16>, vector<128x128xbf16>, vector<128x128xf32> -> vector<128x128xf32>
      %159 = arith.subf %157, %158 : vector<128x128xf32>
      %cst_106 = arith.constant dense<0.000000e+00> : vector<128x128xf32>
      %160 = tpu.matmul %155, %140, %cst_106 {dimension_numbers = #tpu.dot_dimension_numbers<[1], [0], [0], [1], [0, 0, 1, 1], [], []>} : vector<128x128xbf16>, vector<128x128xbf16>, vector<128x128xf32> -> vector<128x128xf32>
      %cst_107 = arith.constant dense<0.000000e+00> : vector<128x128xf32>
      %161 = tpu.matmul %156, %139, %cst_107 {dimension_numbers = #tpu.dot_dimension_numbers<[1], [0], [0], [1], [0, 0, 1, 1], [], []>} : vector<128x128xbf16>, vector<128x128xbf16>, vector<128x128xf32> -> vector<128x128xf32>
      %162 = arith.addf %160, %161 : vector<128x128xf32>
      %163 = arith.mulf %159, %151 : vector<128x128xf32>
      %164 = arith.mulf %162, %154 : vector<128x128xf32>
      %165 = arith.subf %163, %164 : vector<128x128xf32>
      %166 = arith.mulf %159, %154 : vector<128x128xf32>
      %167 = arith.mulf %162, %151 : vector<128x128xf32>
      %168 = arith.addf %166, %167 : vector<128x128xf32>
      scf.yield %165, %168 : vector<128x128xf32>, vector<128x128xf32>
    }
    %c4_i32_38 = arith.constant 4 : i32
    %c0_39 = arith.constant 0 : index
    %c0_40 = arith.constant 0 : index
    %55 = vector.load %arg6[%c0_39, %c0_40] : memref<128x128xbf16, #tpu.memory_space<vmem>>, vector<128x128xbf16>
    %c0_41 = arith.constant 0 : index
    %c0_42 = arith.constant 0 : index
    %56 = vector.load %arg7[%c0_41, %c0_42] : memref<128x128xbf16, #tpu.memory_space<vmem>>, vector<128x128xbf16>
    %c0_43 = arith.constant 0 : index
    %c0_44 = arith.constant 0 : index
    %57 = vector.load %arg9[%c0_43, %c0_44] : memref<128x128xf32, #tpu.memory_space<vmem>>, vector<128x128xf32>
    %c0_45 = arith.constant 0 : index
    %c0_46 = arith.constant 0 : index
    %58 = vector.load %arg10[%c0_45, %c0_46] : memref<128x128xf32, #tpu.memory_space<vmem>>, vector<128x128xf32>
    %59 = arith.truncf %54#0 : vector<128x128xf32> to vector<128x128xbf16>
    %60 = arith.truncf %54#1 : vector<128x128xf32> to vector<128x128xbf16>
    %cst_47 = arith.constant dense<0.000000e+00> : vector<128x128xf32>
    %61 = tpu.matmul %55, %59, %cst_47 {dimension_numbers = #tpu.dot_dimension_numbers<[1], [0], [0], [1], [0, 0, 1, 1], [], []>} : vector<128x128xbf16>, vector<128x128xbf16>, vector<128x128xf32> -> vector<128x128xf32>
    %cst_48 = arith.constant dense<0.000000e+00> : vector<128x128xf32>
    %62 = tpu.matmul %56, %60, %cst_48 {dimension_numbers = #tpu.dot_dimension_numbers<[1], [0], [0], [1], [0, 0, 1, 1], [], []>} : vector<128x128xbf16>, vector<128x128xbf16>, vector<128x128xf32> -> vector<128x128xf32>
    %63 = arith.subf %61, %62 : vector<128x128xf32>
    %cst_49 = arith.constant dense<0.000000e+00> : vector<128x128xf32>
    %64 = tpu.matmul %55, %60, %cst_49 {dimension_numbers = #tpu.dot_dimension_numbers<[1], [0], [0], [1], [0, 0, 1, 1], [], []>} : vector<128x128xbf16>, vector<128x128xbf16>, vector<128x128xf32> -> vector<128x128xf32>
    %cst_50 = arith.constant dense<0.000000e+00> : vector<128x128xf32>
    %65 = tpu.matmul %56, %59, %cst_50 {dimension_numbers = #tpu.dot_dimension_numbers<[1], [0], [0], [1], [0, 0, 1, 1], [], []>} : vector<128x128xbf16>, vector<128x128xbf16>, vector<128x128xf32> -> vector<128x128xf32>
    %66 = arith.addf %64, %65 : vector<128x128xf32>
    %67 = arith.truncf %63 : vector<128x128xf32> to vector<128x128xbf16>
    %68 = arith.truncf %66 : vector<128x128xf32> to vector<128x128xbf16>
    %cst_51 = arith.constant dense<0.000000e+00> : vector<128x128xf32>
    %69 = tpu.matmul %67, %55, %cst_51 {dimension_numbers = #tpu.dot_dimension_numbers<[1], [0], [0], [1], [0, 0, 1, 1], [], []>} : vector<128x128xbf16>, vector<128x128xbf16>, vector<128x128xf32> -> vector<128x128xf32>
    %cst_52 = arith.constant dense<0.000000e+00> : vector<128x128xf32>
    %70 = tpu.matmul %68, %56, %cst_52 {dimension_numbers = #tpu.dot_dimension_numbers<[1], [0], [0], [1], [0, 0, 1, 1], [], []>} : vector<128x128xbf16>, vector<128x128xbf16>, vector<128x128xf32> -> vector<128x128xf32>
    %71 = arith.subf %69, %70 : vector<128x128xf32>
    %cst_53 = arith.constant dense<0.000000e+00> : vector<128x128xf32>
    %72 = tpu.matmul %67, %56, %cst_53 {dimension_numbers = #tpu.dot_dimension_numbers<[1], [0], [0], [1], [0, 0, 1, 1], [], []>} : vector<128x128xbf16>, vector<128x128xbf16>, vector<128x128xf32> -> vector<128x128xf32>
    %cst_54 = arith.constant dense<0.000000e+00> : vector<128x128xf32>
    %73 = tpu.matmul %68, %55, %cst_54 {dimension_numbers = #tpu.dot_dimension_numbers<[1], [0], [0], [1], [0, 0, 1, 1], [], []>} : vector<128x128xbf16>, vector<128x128xbf16>, vector<128x128xf32> -> vector<128x128xf32>
    %74 = arith.addf %72, %73 : vector<128x128xf32>
    %75 = arith.mulf %71, %57 : vector<128x128xf32>
    %76 = arith.mulf %74, %58 : vector<128x128xf32>
    %77 = arith.subf %75, %76 : vector<128x128xf32>
    %78 = arith.mulf %71, %58 : vector<128x128xf32>
    %79 = arith.mulf %74, %57 : vector<128x128xf32>
    %80 = arith.addf %78, %79 : vector<128x128xf32>
    %c0_55 = arith.constant 0 : index
    %c0_56 = arith.constant 0 : index
    %81 = vector.load %arg6[%c0_55, %c0_56] : memref<128x128xbf16, #tpu.memory_space<vmem>>, vector<128x128xbf16>
    %c0_57 = arith.constant 0 : index
    %c0_58 = arith.constant 0 : index
    %82 = vector.load %arg8[%c0_57, %c0_58] : memref<128x128xbf16, #tpu.memory_space<vmem>>, vector<128x128xbf16>
    %83 = arith.truncf %77 : vector<128x128xf32> to vector<128x128xbf16>
    %84 = arith.truncf %80 : vector<128x128xf32> to vector<128x128xbf16>
    %cst_59 = arith.constant dense<0.000000e+00> : vector<128x128xf32>
    %85 = tpu.matmul %81, %83, %cst_59 {dimension_numbers = #tpu.dot_dimension_numbers<[1], [0], [0], [1], [0, 0, 1, 1], [], []>} : vector<128x128xbf16>, vector<128x128xbf16>, vector<128x128xf32> -> vector<128x128xf32>
    %cst_60 = arith.constant dense<0.000000e+00> : vector<128x128xf32>
    %86 = tpu.matmul %82, %84, %cst_60 {dimension_numbers = #tpu.dot_dimension_numbers<[1], [0], [0], [1], [0, 0, 1, 1], [], []>} : vector<128x128xbf16>, vector<128x128xbf16>, vector<128x128xf32> -> vector<128x128xf32>
    %87 = arith.subf %85, %86 : vector<128x128xf32>
    %cst_61 = arith.constant dense<0.000000e+00> : vector<128x128xf32>
    %88 = tpu.matmul %81, %84, %cst_61 {dimension_numbers = #tpu.dot_dimension_numbers<[1], [0], [0], [1], [0, 0, 1, 1], [], []>} : vector<128x128xbf16>, vector<128x128xbf16>, vector<128x128xf32> -> vector<128x128xf32>
    %cst_62 = arith.constant dense<0.000000e+00> : vector<128x128xf32>
    %89 = tpu.matmul %82, %83, %cst_62 {dimension_numbers = #tpu.dot_dimension_numbers<[1], [0], [0], [1], [0, 0, 1, 1], [], []>} : vector<128x128xbf16>, vector<128x128xbf16>, vector<128x128xf32> -> vector<128x128xf32>
    %90 = arith.addf %88, %89 : vector<128x128xf32>
    %91 = arith.truncf %87 : vector<128x128xf32> to vector<128x128xbf16>
    %92 = arith.truncf %90 : vector<128x128xf32> to vector<128x128xbf16>
    %cst_63 = arith.constant dense<0.000000e+00> : vector<128x128xf32>
    %93 = tpu.matmul %91, %81, %cst_63 {dimension_numbers = #tpu.dot_dimension_numbers<[1], [0], [0], [1], [0, 0, 1, 1], [], []>} : vector<128x128xbf16>, vector<128x128xbf16>, vector<128x128xf32> -> vector<128x128xf32>
    %cst_64 = arith.constant dense<0.000000e+00> : vector<128x128xf32>
    %94 = tpu.matmul %92, %82, %cst_64 {dimension_numbers = #tpu.dot_dimension_numbers<[1], [0], [0], [1], [0, 0, 1, 1], [], []>} : vector<128x128xbf16>, vector<128x128xbf16>, vector<128x128xf32> -> vector<128x128xf32>
    %95 = arith.subf %93, %94 : vector<128x128xf32>
    %cst_65 = arith.constant dense<0.000000e+00> : vector<128x128xf32>
    %96 = tpu.matmul %91, %82, %cst_65 {dimension_numbers = #tpu.dot_dimension_numbers<[1], [0], [0], [1], [0, 0, 1, 1], [], []>} : vector<128x128xbf16>, vector<128x128xbf16>, vector<128x128xf32> -> vector<128x128xf32>
    %cst_66 = arith.constant dense<0.000000e+00> : vector<128x128xf32>
    %97 = tpu.matmul %92, %81, %cst_66 {dimension_numbers = #tpu.dot_dimension_numbers<[1], [0], [0], [1], [0, 0, 1, 1], [], []>} : vector<128x128xbf16>, vector<128x128xbf16>, vector<128x128xf32> -> vector<128x128xf32>
    %98 = arith.addf %96, %97 : vector<128x128xf32>
    %c0_67 = arith.constant 0 : index
    %c0_68 = arith.constant 0 : index
    %99 = vector.load %arg13[%c0_67, %c0_68] : memref<128x128xf32, #tpu.memory_space<vmem>>, vector<128x128xf32>
    %c0_69 = arith.constant 0 : index
    %c0_70 = arith.constant 0 : index
    %100 = vector.load %arg14[%c0_69, %c0_70] : memref<128x128xf32, #tpu.memory_space<vmem>>, vector<128x128xf32>
    %101 = arith.mulf %95, %95 : vector<128x128xf32>
    %102 = arith.mulf %98, %98 : vector<128x128xf32>
    %103 = arith.addf %101, %102 : vector<128x128xf32>
    %cst_71 = arith.constant dense<0.000000e+00> : vector<128x128xf32>
    %104 = tpu.matmul %103, %100, %cst_71 {dimension_numbers = #tpu.dot_dimension_numbers<[1], [0], [0], [1], [0, 0, 1, 1], [], []>} : vector<128x128xf32>, vector<128x128xf32>, vector<128x128xf32> -> vector<128x128xf32>
    %105 = arith.mulf %99, %104 : vector<128x128xf32>
    %cst_72 = arith.constant dense<0.000000e+00> : vector<128xf32>
    %106 = vector.multi_reduction <add>, %105, %cst_72 [0] : vector<128x128xf32> to vector<128xf32>
    %107 = vector.shape_cast %106 : vector<128xf32> to vector<1x128xf32>
    %108 = vector.shape_cast %107 : vector<1x128xf32> to vector<1x128xf32>
    %109 = vector.broadcast %108 : vector<1x128xf32> to vector<8x128xf32>
    %c0_73 = arith.constant 0 : index
    %c0_74 = arith.constant 0 : index
    %c0_75 = arith.constant 0 : index
    %110 = vector.load %arg15[%c0_73, %c0_74, %c0_75] : memref<1x8x128xf32, #tpu.memory_space<vmem>>, vector<1x8x128xf32>
    %111 = vector.shape_cast %110 : vector<1x8x128xf32> to vector<8x128xf32>
    %112 = vector.shape_cast %109 : vector<8x128xf32> to vector<1x8x128xf32>
    tpu.vector_store %arg15[%c0_73, %c0_74, %c0_75], %112 {strides = array<i32>} : memref<1x8x128xf32, #tpu.memory_space<vmem>>, vector<1x8x128xf32>,
    return
  }
  func.func @transform_0(%arg0: i32) -> (i32, i32, i32) {
    %c0_i32 = arith.constant 0 : i32
    %c0_i32_0 = arith.constant 0 : i32
    %c0_i32_1 = arith.constant 0 : i32
    return %arg0, %c0_i32, %c0_i32_0 : i32, i32, i32
  }
  func.func @transform_1(%arg0: i32) -> (i32, i32) {
    %c0_i32 = arith.constant 0 : i32
    %c0_i32_0 = arith.constant 0 : i32
    %c0_i32_1 = arith.constant 0 : i32
    return %c0_i32, %c0_i32_0 : i32, i32
  }
  func.func @transform_2(%arg0: i32) -> (i32, i32) {
    %c0_i32 = arith.constant 0 : i32
    %c0_i32_0 = arith.constant 0 : i32
    %c0_i32_1 = arith.constant 0 : i32
    return %c0_i32, %c0_i32_0 : i32, i32
  }
  func.func @transform_3(%arg0: i32) -> (i32, i32) {
    %c0_i32 = arith.constant 0 : i32
    %c0_i32_0 = arith.constant 0 : i32
    %c0_i32_1 = arith.constant 0 : i32
    return %c0_i32, %c0_i32_0 : i32, i32
  }
  func.func @transform_4(%arg0: i32) -> (i32, i32) {
    %c0_i32 = arith.constant 0 : i32
    %c0_i32_0 = arith.constant 0 : i32
    %c0_i32_1 = arith.constant 0 : i32
    return %c0_i32, %c0_i32_0 : i32, i32
  }
  func.func @transform_5(%arg0: i32) -> (i32, i32) {
    %c0_i32 = arith.constant 0 : i32
    %c0_i32_0 = arith.constant 0 : i32
    %c0_i32_1 = arith.constant 0 : i32
    return %c0_i32, %c0_i32_0 : i32, i32
  }
  func.func @transform_6(%arg0: i32) -> (i32, i32) {
    %c0_i32 = arith.constant 0 : i32
    %c0_i32_0 = arith.constant 0 : i32
    %c0_i32_1 = arith.constant 0 : i32
    return %c0_i32, %c0_i32_0 : i32, i32
  }
  func.func @transform_7(%arg0: i32) -> (i32, i32) {
    %c0_i32 = arith.constant 0 : i32
    %c0_i32_0 = arith.constant 0 : i32
    %c0_i32_1 = arith.constant 0 : i32
    return %c0_i32, %c0_i32_0 : i32, i32
  }
  func.func @transform_8(%arg0: i32) -> (i32, i32) {
    %c0_i32 = arith.constant 0 : i32
    %c0_i32_0 = arith.constant 0 : i32
    %c0_i32_1 = arith.constant 0 : i32
    return %c0_i32, %c0_i32_0 : i32, i32
  }
  func.func @transform_9(%arg0: i32) -> (i32, i32) {
    %c0_i32 = arith.constant 0 : i32
    %c0_i32_0 = arith.constant 0 : i32
    %c0_i32_1 = arith.constant 0 : i32
    return %c0_i32, %c0_i32_0 : i32, i32
  }
  func.func @transform_10(%arg0: i32) -> (i32, i32, i32) {
    %c0_i32 = arith.constant 0 : i32
    %c0_i32_0 = arith.constant 0 : i32
    %c0_i32_1 = arith.constant 0 : i32
    %c0_i32_2 = arith.constant 0 : i32
    return %c0_i32, %c0_i32_0, %c0_i32_1 : i32, i32, i32
  }
  func.func @transform_11(%arg0: i32) -> (i32, i32, i32) {
    %c0_i32 = arith.constant 0 : i32
    %c0_i32_0 = arith.constant 0 : i32
    %c0_i32_1 = arith.constant 0 : i32
    %c0_i32_2 = arith.constant 0 : i32
    return %c0_i32, %c0_i32_0, %c0_i32_1 : i32, i32, i32
  }
  func.func @transform_12(%arg0: i32) -> (i32, i32) {
    %c0_i32 = arith.constant 0 : i32
    %c0_i32_0 = arith.constant 0 : i32
    %c0_i32_1 = arith.constant 0 : i32
    return %c0_i32, %c0_i32_0 : i32, i32
  }
  func.func @transform_13(%arg0: i32) -> (i32, i32) {
    %c0_i32 = arith.constant 0 : i32
    %c0_i32_0 = arith.constant 0 : i32
    %c0_i32_1 = arith.constant 0 : i32
    return %c0_i32, %c0_i32_0 : i32, i32
  }
  func.func @transform_14(%arg0: i32) -> (i32, i32, i32) {
    %c0_i32 = arith.constant 0 : i32
    %c0_i32_0 = arith.constant 0 : i32
    %c0_i32_1 = arith.constant 0 : i32
    return %arg0, %c0_i32, %c0_i32_0 : i32, i32, i32
  }
}

</mosaic_0001>

<bundles_post_ra>
// kernel: dmodel_forward.1
= control target key start
LH: loop header
LB: loop body
LE: loop exit
PB: predicated region body
PF: predicated region fallthrough
CT: control target
= control target key end

     0   :  { %s13783_s0 = inlined_call_operand.hbm [shape: f32[4,64,64], index: 0, kind: input, shape index: {}]   ;;  %s13784_s1 = inlined_call_operand.hbm [shape: bf16[128,64], index: 1, kind: input, shape index: {}]   ;;  %s13785_s2 = inlined_call_operand.hbm [shape: bf16[128,64], index: 2, kind: input, shape index: {}]   ;;  %s13786_s3 = inlined_call_operand.hbm [shape: bf16[64,128], index: 3, kind: input, shape index: {}]   ;;  %s13787_s4 = inlined_call_operand.hbm [shape: bf16[64,128], index: 4, kind: input, shape index: {}]   ;;  %s13788_s5 = inlined_call_operand.hbm [shape: bf16[128,128], index: 5, kind: input, shape index: {}]   ;;  %s13789_s6 = inlined_call_operand.hbm [shape: bf16[128,128], index: 6, kind: input, shape index: {}]   ;;  %s13790_s7 = inlined_call_operand.vmem [shape: bf16[128,128], index: 7, kind: input, shape index: {}]   ;;  %s13791_s8 = inlined_call_operand.hbm [shape: f32[128,128], index: 8, kind: input, shape index: {}]   ;;  %s13792_s9 = inlined_call_operand.hbm [shape: f32[128,128], index: 9, kind: input, shape index: {}]   ;;  %s13793_s10 = inlined_call_operand.hbm [shape: f32[5,128,128], index: 10, kind: input, shape index: {}]   ;;  %s13794_s11 = inlined_call_operand.hbm [shape: f32[5,128,128], index: 11, kind: input, shape index: {}]   ;;  %s13795_s12 = inlined_call_operand.hbm [shape: f32[128,128], index: 12, kind: input, shape index: {}]   ;;  %s13796_s13 = inlined_call_operand.hbm [shape: f32[128,128], index: 13, kind: input, shape index: {}]   ;;  %s13797_s14 = inlined_call_operand.vmem [shape: f32[4,8,128], index: 14, kind: output, shape index: {}]  }
   0x1   :  { %13924 = sst [smem:[#allocation89_spill]] %s13783_s0 }
   0x2   :  { %13925 = sst [smem:[#allocation90_spill]] %s13790_s7 }
   0x3   :  { %13926 = sst [smem:[#allocation91_spill]] %s13797_s14 }
   0x4   :  { %19 = vsyncpa [#allocation3], 0 }
   0x5   :  { %21 = vsyncpa [#allocation3 + $0x1], 0 }
   0x6   :  { %22 = vsyncpa [#allocation5], 0 }
   0x7   :  { %23 = vsyncpa [#allocation8], 0 }
   0x8   :  { %24 = vsyncpa [#allocation11], 0 }
   0x9   :  { %25 = vsyncpa [#allocation14], 0 }
   0xa   :  { %26 = vsyncpa [#allocation17], 0 }
   0xb   :  { %27 = vsyncpa [#allocation20], 0  ;;  %s11219_s29 = smov 0   ;;  %s11221_s30 = smov 0  }
   0xc   :  { %s11223_s15 = smov 0   ;;  %s11225_s16 = smov 0  }
   0xd LB: > { %13927 = sst [smem:[#allocation29_spill]] %s10981_s29  ;;  %s11127_s17 = smov [#allocation4]   ;;  %s10993_s16 = sphi %s11225_s16, %s14168_s16   ;;  %s10989_s15 = sphi %s11223_s15, %s14167_s15   ;;  %s10985_s30 = sphi %s11221_s30, %s14166_s30   ;;  %s10981_s29 = sphi %s11219_s29, %s14165_s29  }
   0xe   : > { %s375_s18 = sshll.u32 %s11127_s17, 4  ;;  %s11240_s19 = sadd.s32 4294967295, %s10993_s16   ;;  %s11245_s18 = int_to_ptr.vmem [resolvable:$true] %s375_s18 }
   0xf   : > { %13928 = sst [smem:[#allocation30_spill]] %s11240_s19  ;;  %p7341_p0 = scmp.ge.s32.totalorder %s10993_s16, 1 }
  0x10   : > { %p13804_p1 = scmp.eq.s32.totalorder %s11240_s19, 0  ;;  %p363_p2 = scmp.lt.s32.totalorder %s10993_s16, 5 }
  0x11   : > { %s11128_s21 = smov [#allocation7]   ;;  %s11129_s24 = smov [#allocation10]  }
  0x12   : > { %p11247_p3 = pnand %p7341_p0, %p363_p2  ;;  %s401_s22 = sshll.u32 %s11128_s21, 4  ;;  %s11259_s22 = int_to_ptr.vmem [resolvable:$true] %s401_s22 }
  0x13   : > { %s427_s25 = sshll.u32 %s11129_s24, 4  ;;  %s10437_s28 = scalar_lea.hbm %s13784_s1, 1024  ;;  %s11261_s25 = int_to_ptr.vmem [resolvable:$true] %s427_s25 }
  0x14   : > { %s13929_s20 = scalar_select %p11247_p3, 1, 0 }
  0x15   : > { %p9979_p4 = pneg %p11247_p3  ;;  %p10438_p6 = scmp.ne.s32.totalorder %s13784_s1, %s10437_s28 }
  0x16   : > { %13930 = sst [smem:[#allocation31_spill]] %s13929_s20  ;;  %p10444_p10 = scmp.lt.u32.totalorder %s10437_s28, %s13784_s1 }
  0x17   : > { %p11255_p5 = pnand %p9979_p4, %p13804_p1 }
  0x19   : > { %p11271_p7 = pneg %p11255_p5 }
  0x1b   : > { %p10440_p8 = pnand %p11271_p7, %p10438_p6 }
  0x1d   : > { %p10441_p9 = pneg %p10440_p8 }
  0x1f   : > { %p10446_p11 = pnand %p10444_p10, %p10441_p9 }
  0x21   : > { %10449 = shalt.err (!%p10446_p11)
}
  0x22   : > { %s10450_s7 = scalar_lea.vmem %s11245_s18, 1024  ;;  %p10458_p2 = scmp.lt.s32.totalorder %s11245_s18, %s11245_s18 }
  0x23   : > { %p10451_p12 = scmp.ne.s32.totalorder %s11245_s18, %s10450_s7  ;;  %p10459_p4 = scmp.lt.s32.totalorder %s10450_s7, %s10450_s7 }
  0x25   : > { %p10453_p13 = pnand %p10451_p12, %p11271_p7  ;;  %p10460_p6 = por %p10459_p4, %p10458_p2 }
  0x27   : > { %p10454_p0 = pneg %p10453_p13 }
  0x29   : > { %p10461_p8 = pnand %p10460_p6, %p10454_p0 }
  0x2b   : > { %10464 = shalt.err (!%p10461_p8)
}
  0x2c   : > { %s13806_s26 = smov 64   ;;  %s13808_s14 = smov 4  }
  0x2d   : > { %9982 = dma.hbm_to_vmem [thread:$0]  (!%p11255_p5), %s13784_s1, 1024, %s11245_s18, [#allocation5], %s13806_s26, %s13806_s26, %s13808_s14  }
  0x2e   : > { %s10465_s7 = scalar_lea.hbm %s13786_s3, 512 }
  0x2f   : > { %p10466_p9 = scmp.ne.s32.totalorder %s13786_s3, %s10465_s7  ;;  %p10472_p12 = scmp.lt.u32.totalorder %s10465_s7, %s13786_s3 }
  0x31   : > { %p10468_p10 = pnand %p10466_p9, %p11271_p7 }
  0x33   : > { %p10469_p11 = pneg %p10468_p10 }
  0x35   : > { %p10474_p13 = pnand %p10472_p12, %p10469_p11 }
  0x37   : > { %10477 = shalt.err (!%p10474_p13)
}
  0x38   : > { %s10478_s18 = scalar_lea.vmem %s11259_s22, 512  ;;  %p10486_p6 = scmp.lt.s32.totalorder %s11259_s22, %s11259_s22 }
  0x39   : > { %p10479_p0 = scmp.ne.s32.totalorder %s11259_s22, %s10478_s18  ;;  %p10487_p8 = scmp.lt.s32.totalorder %s10478_s18, %s10478_s18 }
  0x3b   : > { %p10481_p2 = pnand %p10479_p0, %p11271_p7  ;;  %p10488_p9 = por %p10487_p8, %p10486_p6 }
  0x3d   : > { %p10482_p4 = pneg %p10481_p2 }
  0x3f   : > { %p10489_p10 = pnand %p10488_p9, %p10482_p4 }
  0x41   : > { %10492 = shalt.err (!%p10489_p10)
}
  0x42   : > { %9988 = dma.hbm_to_vmem [thread:$0]  (!%p11255_p5), %s13786_s3, 512, %s11259_s22, [#allocation8], %s13806_s26, %s13806_s26, %s13808_s14  }
  0x43   : > { %s10493_s27 = scalar_lea.hbm %s13788_s5, 1024 }
  0x44   : > { %p10494_p11 = scmp.ne.s32.totalorder %s13788_s5, %s10493_s27  ;;  %p10500_p0 = scmp.lt.u32.totalorder %s10493_s27, %s13788_s5 }
  0x46   : > { %p10496_p12 = pnand %p10494_p11, %p11271_p7 }
  0x48   : > { %p10497_p13 = pneg %p10496_p12 }
  0x4a   : > { %p10502_p2 = pnand %p10500_p0, %p10497_p13 }
  0x4c   : > { %10505 = shalt.err (!%p10502_p2)
}
  0x4d   : > { %s10506_s22 = scalar_lea.vmem %s11261_s25, 1024  ;;  %p10514_p9 = scmp.lt.s32.totalorder %s11261_s25, %s11261_s25 }
  0x4e   : > { %p10507_p4 = scmp.ne.s32.totalorder %s11261_s25, %s10506_s22  ;;  %p10515_p10 = scmp.lt.s32.totalorder %s10506_s22, %s10506_s22 }
  0x50   : > { %p10509_p6 = pnand %p10507_p4, %p11271_p7  ;;  %p10516_p11 = por %p10515_p10, %p10514_p9 }
  0x52   : > { %p10510_p8 = pneg %p10509_p6 }
  0x54   : > { %p10517_p12 = pnand %p10516_p11, %p10510_p8 }
  0x56   : > { %10520 = shalt.err (!%p10517_p12)
}
  0x57   : > { %9994 = dma.hbm_to_vmem [thread:$0]  (!%p11255_p5), %s13788_s5, 1024, %s11261_s25, [#allocation11], %s13806_s26, %s13806_s26, %s13808_s14  }
  0x58   : > { %s11132_s29 = smov [#allocation13]   ;;  %s10521_s28 = scalar_lea.hbm %s13791_s8, 2048 }
  0x59   : > { %s456_s19 = sshll.u32 %s11132_s29, 4  ;;  %p10522_p13 = scmp.ne.s32.totalorder %s13791_s8, %s10521_s28  ;;  %s457_s19 = int_to_ptr.vmem [resolvable:$true] %s456_s19 }
  0x5a   : > { %p10528_p4 = scmp.lt.u32.totalorder %s10521_s28, %s13791_s8 }
  0x5b   : > { %p10524_p0 = pnand %p10522_p13, %p11271_p7 }
  0x5d   : > { %p10525_p2 = pneg %p10524_p0 }
  0x5f   : > { %p10530_p6 = pnand %p10528_p4, %p10525_p2 }
  0x61   : > { %10533 = shalt.err (!%p10530_p6)
}
  0x62   : > { %s10534_s25 = scalar_lea.vmem %s457_s19, 2048  ;;  %p10542_p11 = scmp.lt.s32.totalorder %s457_s19, %s457_s19 }
  0x63   : > { %p10535_p8 = scmp.ne.s32.totalorder %s457_s19, %s10534_s25  ;;  %p10543_p12 = scmp.lt.s32.totalorder %s10534_s25, %s10534_s25 }
  0x65   : > { %p10537_p9 = pnand %p10535_p8, %p11271_p7  ;;  %p10544_p1 = por %p10543_p12, %p10542_p11 }
  0x67   : > { %p10538_p10 = pneg %p10537_p9 }
  0x69   : > { %p10545_p3 = pnand %p10544_p1, %p10538_p10 }
  0x6b   : > { %10548 = shalt.err (!%p10545_p3)
}
  0x6c   : > { %s13810_s18 = smov 128   ;;  %s13812_s0 = smov 8  }
  0x6d   : > { %10000 = dma.hbm_to_vmem [thread:$0]  (!%p11255_p5), %s13791_s8, 2048, %s457_s19, [#allocation14], %s13810_s18, %s13810_s18, %s13812_s0  }
  0x6e   : > { %s11135_s27 = smov [#allocation16]   ;;  %s11136_s17 = smov [#allocation19]  }
  0x6f   : > { %s482_s28 = sshll.u32 %s11135_s27, 4  ;;  %s508_s24 = sshll.u32 %s11136_s17, 4  ;;  %s483_s28 = int_to_ptr.vmem [resolvable:$true] %s482_s28  ;;  %s11368_s24 = int_to_ptr.vmem [resolvable:$true] %s508_s24 }
  0x70   : > { %s10549_s25 = scalar_lea.hbm %s13793_s10, 10240 }
  0x71   : > { %p10550_p1 = scmp.ne.s32.totalorder %s13793_s10, %s10549_s25  ;;  %p10556_p0 = scmp.lt.u32.totalorder %s10549_s25, %s13793_s10 }
  0x73   : > { %p10552_p3 = pnand %p10550_p1, %p11271_p7 }
  0x75   : > { %p10553_p13 = pneg %p10552_p3 }
  0x77   : > { %p10558_p2 = pnand %p10556_p0, %p10553_p13 }
  0x79   : > { %10561 = shalt.err (!%p10558_p2)
}
  0x7a   : > { %s10562_s20 = scalar_lea.vmem %s483_s28, 10240  ;;  %p10570_p9 = scmp.lt.s32.totalorder %s483_s28, %s483_s28 }
  0x7b   : > { %p10563_p4 = scmp.ne.s32.totalorder %s483_s28, %s10562_s20  ;;  %p10571_p10 = scmp.lt.s32.totalorder %s10562_s20, %s10562_s20 }
  0x7d   : > { %p10565_p6 = pnand %p10563_p4, %p11271_p7  ;;  %p10572_p11 = por %p10571_p10, %p10570_p9 }
  0x7f   : > { %p10566_p8 = pneg %p10565_p6 }
  0x81   : > { %p10573_p12 = pnand %p10572_p11, %p10566_p8 }
  0x83   : > { %10576 = shalt.err (!%p10573_p12)
}
  0x84   : > { %10006 = dma.hbm_to_vmem [thread:$0]  (!%p11255_p5), %s13793_s10, 10240, %s483_s28, [#allocation17], %s13810_s18, %s13810_s18, %s13812_s0  }
  0x85   : > { %s10577_s7 = scalar_lea.hbm %s13795_s12, 2048 }
  0x86   : > { %p10578_p1 = scmp.ne.s32.totalorder %s13795_s12, %s10577_s7  ;;  %p10584_p0 = scmp.lt.u32.totalorder %s10577_s7, %s13795_s12 }
  0x88   : > { %p10580_p3 = pnand %p10578_p1, %p11271_p7 }
  0x8a   : > { %p10581_p13 = pneg %p10580_p3 }
  0x8c   : > { %p10586_p2 = pnand %p10584_p0, %p10581_p13 }
  0x8e   : > { %10589 = shalt.err (!%p10586_p2)
}
  0x8f   : > { %s10590_s28 = scalar_lea.vmem %s11368_s24, 2048  ;;  %p10598_p9 = scmp.lt.s32.totalorder %s11368_s24, %s11368_s24 }
  0x90   : > { %p10591_p4 = scmp.ne.s32.totalorder %s11368_s24, %s10590_s28  ;;  %p10599_p10 = scmp.lt.s32.totalorder %s10590_s28, %s10590_s28 }
  0x92   : > { %p10593_p6 = pnand %p10591_p4, %p11271_p7  ;;  %p10600_p11 = por %p10599_p10, %p10598_p9 }
  0x94   : > { %p10594_p8 = pneg %p10593_p6 }
  0x96   : > { %p10601_p12 = pnand %p10600_p11, %p10594_p8 }
  0x98   : > { %10604 = shalt.err (!%p10601_p12)
}
  0x99   : > { %10012 = dma.hbm_to_vmem [thread:$0]  (!%p11255_p5), %s13795_s12, 2048, %s11368_s24, [#allocation20], %s13810_s18, %s13810_s18, %s13812_s0  }
  0x9a   : > { %s11137_s14 = smov [#allocation6]   ;;  %s11138_s17 = smov [#allocation9]  }
  0x9b   : > { %s388_s27 = sshll.u32 %s11137_s14, 4  ;;  %s414_s7 = sshll.u32 %s11138_s17, 4  ;;  %s389_s27 = int_to_ptr.vmem [resolvable:$true] %s388_s27  ;;  %s11417_s7 = int_to_ptr.vmem [resolvable:$true] %s414_s7 }
  0x9c   : > { %s10605_s29 = scalar_lea.hbm %s13785_s2, 1024 }
  0x9d   : > { %p10606_p1 = scmp.ne.s32.totalorder %s13785_s2, %s10605_s29  ;;  %p10612_p0 = scmp.lt.u32.totalorder %s10605_s29, %s13785_s2 }
  0x9f   : > { %p10608_p3 = pnand %p10606_p1, %p11271_p7 }
  0xa1   : > { %p10609_p13 = pneg %p10608_p3 }
  0xa3   : > { %p10614_p2 = pnand %p10612_p0, %p10609_p13 }
  0xa5   : > { %10617 = shalt.err (!%p10614_p2)
}
  0xa6   : > { %s10618_s26 = scalar_lea.vmem %s389_s27, 1024  ;;  %p10626_p9 = scmp.lt.s32.totalorder %s389_s27, %s389_s27 }
  0xa7   : > { %p10619_p4 = scmp.ne.s32.totalorder %s389_s27, %s10618_s26  ;;  %p10627_p10 = scmp.lt.s32.totalorder %s10618_s26, %s10618_s26 }
  0xa9   : > { %p10621_p6 = pnand %p10619_p4, %p11271_p7  ;;  %p10628_p11 = por %p10627_p10, %p10626_p9 }
  0xab   : > { %p10622_p8 = pneg %p10621_p6 }
  0xad   : > { %p10629_p12 = pnand %p10628_p11, %p10622_p8 }
  0xaf   : > { %10632 = shalt.err (!%p10629_p12)
}
  0xb0   : > { %s13933_s14 = smov 4   ;;  %s13934_s17 = smov 64  }
  0xb1   : > { %9985 = dma.hbm_to_vmem [thread:$0]  (!%p11255_p5), %s13785_s2, 1024, %s389_s27, [#allocation5], %s13934_s17, %s13934_s17, %s13933_s14  }
  0xb2   : > { %s10633_s28 = scalar_lea.hbm %s13787_s4, 512 }
  0xb3   : > { %p10634_p1 = scmp.ne.s32.totalorder %s13787_s4, %s10633_s28  ;;  %p10640_p0 = scmp.lt.u32.totalorder %s10633_s28, %s13787_s4 }
  0xb5   : > { %p10636_p3 = pnand %p10634_p1, %p11271_p7 }
  0xb7   : > { %p10637_p13 = pneg %p10636_p3 }
  0xb9   : > { %p10642_p2 = pnand %p10640_p0, %p10637_p13 }
  0xbb   : > { %10645 = shalt.err (!%p10642_p2)
}
  0xbc   : > { %s10646_s27 = scalar_lea.vmem %s11417_s7, 512  ;;  %p10654_p9 = scmp.lt.s32.totalorder %s11417_s7, %s11417_s7 }
  0xbd   : > { %p10647_p4 = scmp.ne.s32.totalorder %s11417_s7, %s10646_s27  ;;  %p10655_p10 = scmp.lt.s32.totalorder %s10646_s27, %s10646_s27 }
  0xbf   : > { %p10649_p6 = pnand %p10647_p4, %p11271_p7  ;;  %p10656_p11 = por %p10655_p10, %p10654_p9 }
  0xc1   : > { %p10650_p8 = pneg %p10649_p6 }
  0xc3   : > { %p10657_p12 = pnand %p10656_p11, %p10650_p8 }
  0xc5   : > { %10660 = shalt.err (!%p10657_p12)
}
  0xc6   : > { %9991 = dma.hbm_to_vmem [thread:$0]  (!%p11255_p5), %s13787_s4, 512, %s11417_s7, [#allocation8], %s13934_s17, %s13934_s17, %s13933_s14  }
  0xc7   : > { %s11139_s25 = smov [#allocation12]   ;;  %s11140_s19 = smov [#allocation15]  }
  0xc8   : > { %s440_s29 = sshll.u32 %s11139_s25, 4  ;;  %s469_s28 = sshll.u32 %s11140_s19, 4  ;;  %s441_s29 = int_to_ptr.vmem [resolvable:$true] %s440_s29  ;;  %s11466_s28 = int_to_ptr.vmem [resolvable:$true] %s469_s28 }
  0xc9   : > { %s10661_s26 = scalar_lea.hbm %s13789_s6, 1024 }
  0xca   : > { %p10662_p1 = scmp.ne.s32.totalorder %s13789_s6, %s10661_s26  ;;  %p10668_p0 = scmp.lt.u32.totalorder %s10661_s26, %s13789_s6 }
  0xcc   : > { %p10664_p3 = pnand %p10662_p1, %p11271_p7 }
  0xce   : > { %p10665_p13 = pneg %p10664_p3 }
  0xd0   : > { %p10670_p2 = pnand %p10668_p0, %p10665_p13 }
  0xd2   : > { %10673 = shalt.err (!%p10670_p2)
}
  0xd3   : > { %s10674_s22 = scalar_lea.vmem %s441_s29, 1024  ;;  %p10682_p9 = scmp.lt.s32.totalorder %s441_s29, %s441_s29 }
  0xd4   : > { %p10675_p4 = scmp.ne.s32.totalorder %s441_s29, %s10674_s22  ;;  %p10683_p10 = scmp.lt.s32.totalorder %s10674_s22, %s10674_s22 }
  0xd6   : > { %p10677_p6 = pnand %p10675_p4, %p11271_p7  ;;  %p10684_p11 = por %p10683_p10, %p10682_p9 }
  0xd8   : > { %p10678_p8 = pneg %p10677_p6 }
  0xda   : > { %p10685_p12 = pnand %p10684_p11, %p10678_p8 }
  0xdc   : > { %10688 = shalt.err (!%p10685_p12)
}
  0xdd   : > { %9997 = dma.hbm_to_vmem [thread:$0]  (!%p11255_p5), %s13789_s6, 1024, %s441_s29, [#allocation11], %s13934_s17, %s13934_s17, %s13933_s14  }
  0xde   : > { %s10689_s24 = scalar_lea.hbm %s13792_s9, 2048 }
  0xdf   : > { %p10690_p1 = scmp.ne.s32.totalorder %s13792_s9, %s10689_s24  ;;  %p10696_p0 = scmp.lt.u32.totalorder %s10689_s24, %s13792_s9 }
  0xe1   : > { %p10692_p3 = pnand %p10690_p1, %p11271_p7 }
  0xe3   : > { %p10693_p13 = pneg %p10692_p3 }
  0xe5   : > { %p10698_p2 = pnand %p10696_p0, %p10693_p13 }
  0xe7   : > { %10701 = shalt.err (!%p10698_p2)
}
  0xe8   : > { %s10702_s14 = scalar_lea.vmem %s11466_s28, 2048  ;;  %p10710_p9 = scmp.lt.s32.totalorder %s11466_s28, %s11466_s28 }
  0xe9   : > { %p10703_p4 = scmp.ne.s32.totalorder %s11466_s28, %s10702_s14  ;;  %p10711_p10 = scmp.lt.s32.totalorder %s10702_s14, %s10702_s14 }
  0xeb   : > { %p10705_p6 = pnand %p10703_p4, %p11271_p7  ;;  %p10712_p11 = por %p10711_p10, %p10710_p9 }
  0xed   : > { %p10706_p8 = pneg %p10705_p6 }
  0xef   : > { %p10713_p12 = pnand %p10712_p11, %p10706_p8 }
  0xf1   : > { %10716 = shalt.err (!%p10713_p12)
}
  0xf2   : > { %s13935_s17 = smov 8   ;;  %s13936_s29 = smov 128  }
  0xf3   : > { %10003 = dma.hbm_to_vmem [thread:$0]  (!%p11255_p5), %s13792_s9, 2048, %s11466_s28, [#allocation14], %s13936_s29, %s13936_s29, %s13935_s17  }
  0xf4   : > { %s11141_s25 = smov [#allocation18]   ;;  %s11142_s20 = smov [#allocation21]  }
  0xf5   : > { %s495_s19 = sshll.u32 %s11141_s25, 4  ;;  %s521_s24 = sshll.u32 %s11142_s20, 4  ;;  %s496_s19 = int_to_ptr.vmem [resolvable:$true] %s495_s19  ;;  %s11515_s24 = int_to_ptr.vmem [resolvable:$true] %s521_s24 }
  0xf6   : > { %s10717_s18 = scalar_lea.hbm %s13794_s11, 10240 }
  0xf7   : > { %p10718_p1 = scmp.ne.s32.totalorder %s13794_s11, %s10717_s18  ;;  %p10724_p0 = scmp.lt.u32.totalorder %s10717_s18, %s13794_s11 }
  0xf9   : > { %p10720_p3 = pnand %p10718_p1, %p11271_p7 }
  0xfb   : > { %p10721_p13 = pneg %p10720_p3 }
  0xfd   : > { %p10726_p2 = pnand %p10724_p0, %p10721_p13 }
  0xff   : > { %10729 = shalt.err (!%p10726_p2)
}
 0x100   : > { %s10730_s0 = scalar_lea.vmem %s496_s19, 10240  ;;  %p10738_p9 = scmp.lt.s32.totalorder %s496_s19, %s496_s19 }
 0x101   : > { %p10731_p4 = scmp.ne.s32.totalorder %s496_s19, %s10730_s0  ;;  %p10739_p10 = scmp.lt.s32.totalorder %s10730_s0, %s10730_s0 }
 0x103   : > { %p10733_p6 = pnand %p10731_p4, %p11271_p7  ;;  %p10740_p11 = por %p10739_p10, %p10738_p9 }
 0x105   : > { %p10734_p8 = pneg %p10733_p6 }
 0x107   : > { %p10741_p12 = pnand %p10740_p11, %p10734_p8 }
 0x109   : > { %10744 = shalt.err (!%p10741_p12)
}
 0x10a   : > { %10009 = dma.hbm_to_vmem [thread:$0]  (!%p11255_p5), %s13794_s11, 10240, %s496_s19, [#allocation17], %s13936_s29, %s13936_s29, %s13935_s17  }
 0x10b   : > { %s10745_s18 = scalar_lea.hbm %s13796_s13, 2048 }
 0x10c   : > { %p10746_p1 = scmp.ne.s32.totalorder %s13796_s13, %s10745_s18  ;;  %p10752_p0 = scmp.lt.u32.totalorder %s10745_s18, %s13796_s13 }
 0x10e   : > { %p10748_p3 = pnand %p10746_p1, %p11271_p7 }
 0x110   : > { %p10749_p13 = pneg %p10748_p3 }
 0x112   : > { %p10754_p2 = pnand %p10752_p0, %p10749_p13 }
 0x114   : > { %10757 = shalt.err (!%p10754_p2)
}
 0x115   : > { %s10758_s19 = scalar_lea.vmem %s11515_s24, 2048  ;;  %p10766_p9 = scmp.lt.s32.totalorder %s11515_s24, %s11515_s24 }
 0x116   : > { %p10759_p4 = scmp.ne.s32.totalorder %s11515_s24, %s10758_s19  ;;  %p10767_p10 = scmp.lt.s32.totalorder %s10758_s19, %s10758_s19 }
 0x118   : > { %p10761_p6 = pnand %p10759_p4, %p11271_p7  ;;  %p10768_p11 = por %p10767_p10, %p10766_p9 }
 0x11a   : > { %p10762_p8 = pneg %p10761_p6 }
 0x11c   : > { %p10769_p12 = pnand %p10768_p11, %p10762_p8 }
 0x11e   : > { %10772 = shalt.err (!%p10769_p12)
}
 0x11f   : > { %s13937_s21 = sld [smem:[#allocation29_spill]]  ;;  %s13938_s20 = sld [smem:[#allocation30_spill]] }
 0x120   : > { %10015 = dma.hbm_to_vmem [thread:$0]  (!%p11255_p5), %s13796_s13, 2048, %s11515_s24, [#allocation20], %s13936_s29, %s13936_s29, %s13935_s17  }
 0x121   : > { %s11565_s23 = sadd.s32 1, %s10993_s16   ;;  %s40_s26 = sadd.s32 1, %s10989_s15 }
 0x122   : > { %s37_s27 = ssub.s32 %s10993_s16, %s11565_s23  ;;  %p47_p7 = scmp.ne.s32.totalorder %s10989_s15, %s10985_s30 }
 0x123   : > { %p38_p1 = scmp.eq.s32.totalorder %s37_s27, 0  ;;  %p48_p3 = scmp.eq.s32.totalorder %s10993_s16, 0 }
 0x124   : > { %p10032_p0 = scmp.lt.s32.totalorder %s10993_s16, 4  ;;  %s535_s14 = sand.u32 1, %s10989_s15  }
 0x125   : > { %p53_p13 = scmp.ne.s32.totalorder %s10985_s30, %s13937_s21  ;;  %p49_p2 = por %p48_p3, %p47_p7 }
 0x126   : > { %s11577_s18 = scalar_select %p38_p1, %s10989_s15, %s40_s26  }
 0x127   : > { %p13939_p4 = scmp.eq.s32.totalorder %s13938_s20, 0  ;;  %s7496_s24 = sshll.u32 %s10993_s16, 10 }
 0x128   : > { %s7355_s22 = sshll.u32 %s535_s14, 6  ;;  %s13941_s0 = sld [smem:[#allocation89_spill]] }
 0x129   : > { %p11581_p6 = por %p13939_p4, %p53_p13  ;;  %s539_s21 = scalar_lea.vmem [#allocation2], %s7355_s22 }
 0x12a   : > { %s546_s26 = sshll.u32 %s539_s21, 4  ;;  %p11592_p5 = pnand %p10032_p0, %p49_p2  ;;  %s11596_s26 = int_to_ptr.vmem [resolvable:$true] %s546_s26 }
 0x12b   : > { %s11598_s16 = scalar_lea.sflag [#allocation3], %s535_s14 }
 0x12c   : > { %p10775_p9 = pneg %p11592_p5 }
 0x12e   : > { %s11590_s25 = scalar_lea.hbm %s13941_s0, %s7496_s24  ;;  %s10778_s28 = scalar_lea.hbm %s13941_s0, 4096 }
 0x12f   : > { %s10773_s27 = scalar_lea.hbm %s11590_s25, 1024  ;;  %p10779_p12 = scmp.lt.u32.totalorder %s11590_s25, %s13941_s0 }
 0x130   : > { %p10774_p8 = scmp.ne.s32.totalorder %s11590_s25, %s10773_s27  ;;  %p10780_p7 = scmp.lt.u32.totalorder %s10778_s28, %s10773_s27 }
 0x131   : > { %p10782_p3 = scmp.lt.u32.totalorder %s10773_s27, %s11590_s25 }
 0x132   : > { %p10776_p10 = pnand %p10775_p9, %p10774_p8  ;;  %p10781_p1 = por %p10780_p7, %p10779_p12 }
 0x134   : > { %p10777_p11 = pneg %p10776_p10  ;;  %p10783_p13 = por %p10782_p3, %p10781_p1 }
 0x136   : > { %p10784_p0 = pnand %p10783_p13, %p10777_p11 }
 0x138   : > { %10787 = shalt.err (!%p10784_p0)
}
 0x139   : > { %s10788_s14 = scalar_lea.vmem %s11596_s26, 1024  ;;  %s11143_s24 = smov [#allocation2]  }
 0x13a   : > { %p10789_p2 = scmp.ne.s32.totalorder %s11596_s26, %s10788_s14  ;;  %s10793_s22 = sshll.u32 %s11143_s24, 4  ;;  %s10794_s22 = int_to_ptr.vmem [resolvable:$false] %s10793_s22 }
 0x13b   : > { %s10795_s19 = scalar_lea.vmem %s10794_s22, 2048  ;;  %p10796_p10 = scmp.lt.s32.totalorder %s11596_s26, %s10794_s22 }
 0x13c   : > { %p10791_p4 = pnand %p10789_p2, %p10775_p9  ;;  %p10797_p12 = scmp.lt.s32.totalorder %s10795_s19, %s10788_s14 }
 0x13e   : > { %p10792_p8 = pneg %p10791_p4  ;;  %p10798_p7 = por %p10797_p12, %p10796_p10 }
 0x140   : > { %p10799_p1 = pnand %p10798_p7, %p10792_p8 }
 0x142   : > { %10802 = shalt.err (!%p10799_p1)
}
 0x143   : > { %10019 = dma.hbm_to_vmem [thread:$0]  (!%p11592_p5), %s11590_s25, 1024, %s11596_s26, %s11598_s16, %s13936_s29, %s13936_s29, %s13935_s17  }
 0x144   : > { %s13943_s27 = sld [smem:[#allocation31_spill]] }
 0x14a   : > { %p13944_p9 = scmp.ne.s32.totalorder %s13943_s27, 0 }
 0x14c   : > { %558 = sbr.rel (%p13944_p9) target bundleno = 3933 (0xf5d), region = 76 }
 0x153   : > { %s560_s28 = sand.u32 1, %s10985_s30  }
 0x154   : > { %s7359_s21 = sshll.u32 %s560_s28, 6  ;;  %s561_s14 = scalar_lea.sflag [#allocation3], %s560_s28 }
 0x155   : > { %s11632_s24 = scalar_lea.vmem [#allocation2], %s7359_s21 }
 0x156   : > { %10952 = dma.done.wait (%p11581_p6), %s561_s14, 1024  }
 0x157   : > { %10954 = vsyncadd (%p11581_p6), %s561_s14, 4294966272  ;;  %s13945_s20 = sld [smem:[#allocation30_spill]] }
 0x15d   : > { %p13946_p11 = scmp.eq.s32.totalorder %s13945_s20, 0 }
 0x15f   : > { %10956 = dma.done.wait (%p13946_p11), [#allocation5], 2048   ;;  %p13947_p5 = pmov %p13946_p11 }
 0x161   : > { %10958 = vsyncadd (%p13947_p5), [#allocation5], 4294965248  ;;  %p13948_p3 = pmov %p13947_p5 }
 0x163   : > { %10960 = dma.done.wait (%p13948_p3), [#allocation8], 1024   ;;  %p13949_p13 = pmov %p13948_p3 }
 0x164   : > { %p13950_p0 = pmov %p13948_p3 }
 0x165   : > { %10962 = vsyncadd (%p13949_p13), [#allocation8], 4294966272 }
 0x166   : > { %10964 = dma.done.wait (%p13950_p0), [#allocation11], 2048   ;;  %p13951_p2 = pmov %p13950_p0 }
 0x167   : > { %p13952_p6 = pmov %p13950_p0 }
 0x168   : > { %10966 = vsyncadd (%p13951_p2), [#allocation11], 4294965248 }
 0x169   : > { %10968 = dma.done.wait (%p13952_p6), [#allocation14], 4096   ;;  %p13953_p4 = pmov %p13950_p0 }
 0x16a   : > { %p13954_p8 = pmov %p13950_p0 }
 0x16b   : > { %10970 = vsyncadd (%p13953_p4), [#allocation14], 4294963200 }
 0x16c   : > { %10972 = dma.done.wait (%p13954_p8), [#allocation17], 20480   ;;  %p13955_p10 = pmov %p13950_p0 }
 0x16d   : > { %p13956_p12 = pmov %p13950_p0 }
 0x16e   : > { %10974 = vsyncadd (%p13955_p10), [#allocation17], 4294946816 }
 0x16f   : > { %10976 = dma.done.wait (%p13956_p12), [#allocation20], 4096   ;;  %p13957_p7 = pmov %p13950_p0 }
 0x170   : > { %p656_p1 = scmp.lt.s32.totalorder %s13945_s20, 3  ;;  %s13958_s25 = sld [smem:[#allocation91_spill]]  ;;  %v741_v0 = vld [vmem:[%s11632_s24] sm:$0xff]  ;;  %v742_v1 = vld [vmem:[%s11632_s24 + $0x8] sm:$0xff]  ;;  %v743_v2 = vld [vmem:[%s11632_s24 + $0x10] sm:$0xff]  ;;  %vm793_vm0 = vcmask 523264  }
 0x171   : > { %10978 = vsyncadd (%p13957_p7), [#allocation20], 4294963200  ;;  %v749_v3 = vpack.c.bf16 %v742_v1, %v741_v0  ;;  %v744_v4 = vld [vmem:[%s11632_s24 + $0x18] sm:$0xff]  ;;  %v745_v6 = vld [vmem:[%s11632_s24 + $0x20] sm:$0xff]  ;;  %s13960_s19 = sld [smem:[#allocation90_spill]] }
 0x172   : > { %s14170_s20 = smov (!%p656_p1, %s13945_s20), 3  ;;  %v750_v5 = vpack.c.bf16 %v744_v4, %v743_v2  ;;  %v746_v7 = vld [vmem:[%s11632_s24 + $0x28] sm:$0xff]  ;;  %v10357_v8 = vld [vmem:[#allocation4] sm:$0xff]   ;;  %v747_v10 = vld [vmem:[%s11632_s24 + $0x30] sm:$0xff] }
 0x173   : > { %s7372_s17 = sshll.u32 %s14170_s20, 3  ;;  %8241 = vmatprep.subr.bf16.mxu1 %v749_v3  ;;  %v751_v9 = vpack.c.bf16 %v746_v7, %v745_v6  ;;  %8249 = vmatprep.mubr.msk.bf16.mxu1 %vm793_vm0, %v10357_v8  ;;  %v748_v11 = vld [vmem:[%s11632_s24 + $0x38] sm:$0xff]  ;;  %v10358_v13 = vld [vmem:[#allocation4 + $0x8] sm:$0xff]   ;;  %v10359_v14 = vld [vmem:[#allocation4 + $0x10] sm:$0xff]  }
 0x174   : > { %8242 = vmatpush3.bf16.msra.mxu1 %v749_v3  ;;  %v752_v12 = vpack.c.bf16 %v748_v11, %v747_v10  ;;  %v11679_v15 = vld [vmem:[#allocation7] sm:$0xff]   ;;  %v11682_v16 = vld [vmem:[#allocation7 + $0x8] sm:$0xff]   ;;  %v10360_v17 = vld [vmem:[#allocation4 + $0x18] sm:$0xff]  }
 0x175   : > { %8243 = vmatprep.subr.bf16.mxu1 %v750_v5  ;;  %8289 = vmatprep.subr.bf16.mxu0 %v11679_v15  ;;  %v11685_v18 = vld [vmem:[#allocation7 + $0x10] sm:$0xff]   ;;  %v10361_v19 = vld [vmem:[#allocation4 + $0x20] sm:$0xff]   ;;  %v10362_v20 = vld [vmem:[#allocation4 + $0x28] sm:$0xff]  }
 0x176   : > { %s11667_s26 = scalar_lea.vmem %s13958_s25, %s7372_s17  ;;  %8290 = vmatpush3.bf16.msra.mxu0 %v11679_v15  ;;  %v10363_v21 = vld [vmem:[#allocation4 + $0x30] sm:$0xff]   ;;  %v10364_v22 = vld [vmem:[#allocation4 + $0x38] sm:$0xff]   ;;  %v10365_v23 = vld [vmem:[#allocation6] sm:$0xff]  }
 0x177   : > { %8291 = vmatprep.subr.bf16.mxu0 %v11682_v16  ;;  %v10366_v24 = vld [vmem:[#allocation6 + $0x8] sm:$0xff]   ;;  %v10367_v25 = vld [vmem:[#allocation6 + $0x10] sm:$0xff]   ;;  %v10368_v26 = vld [vmem:[#allocation6 + $0x18] sm:$0xff]  }
 0x178   : > { %8244 = vmatpush3.bf16.msra.mxu1 %v750_v5  ;;  %v10369_v27 = vld [vmem:[#allocation6 + $0x20] sm:$0xff]   ;;  %v10370_v28 = vld [vmem:[#allocation6 + $0x28] sm:$0xff]   ;;  %v10371_v29 = vld [vmem:[#allocation6 + $0x30] sm:$0xff]  }
 0x179   : > { %8245 = vmatprep.subr.bf16.mxu1 %v751_v9  ;;  %v10372_v30 = vld [vmem:[#allocation6 + $0x38] sm:$0xff]   ;;  %v10377_v32 = vld [vmem:[#allocation9] sm:$0xff]   ;;  %v11706_v33 = vld [vmem:[#allocation9 + $0x8] sm:$0xff]  }
 0x17a   : > { %8292 = vmatpush3.bf16.msra.mxu0 %v11682_v16  ;;  %v10376_v31 = vld [vmem:[#allocation7 + $0x18] sm:$0xff]   ;;  %v11710_v34 = vld [vmem:[#allocation9 + $0x10] sm:$0xff]  }
 0x17b   : > { %8293 = vmatprep.subr.bf16.mxu0 %v11685_v18  ;;  %v11714_v35 = vld [vmem:[#allocation9 + $0x18] sm:$0xff]  }
 0x17c   : > { %8246 = vmatpush3.bf16.msra.mxu1 %v751_v9 }
 0x17d   : > { %8247 = vmatprep.subr.bf16.mxu1 %v752_v12 }
 0x17e   : > { %8294 = vmatpush3.bf16.msra.mxu0 %v11685_v18 }
 0x17f   : > { %8295 = vmatprep.subr.bf16.mxu0 %v10376_v31 }
 0x180   : > { %8248 = vmatpush3.bf16.msra.mxu1 %v752_v12 }
 0x181   : > { %8265 = vmatprep.subr.bf16.mxu1 %v749_v3 }
 0x182   : > { %8296 = vmatpush3.bf16.msra.mxu0 %v10376_v31 }
 0x183   : > { %8250 = vmatmul.mubr.msk.bf16.vlgmr.msra.gmra.mrb[0].mxu1 %vm793_vm0, %v10358_v13  ;;  %8337 = vmatprep.subr.bf16.mxu0 %v11679_v15 }
 0x184   : > { %8266 = vmatpush3.bf16.msra.mxu1 %v749_v3  ;;  %8253 = vmatprep.mubr.msk.bf16.mxu1 %vm793_vm0, %v10359_v14 }
 0x185   : > { %8267 = vmatprep.subr.bf16.mxu1 %v750_v5 }
 0x188   : > { %8268 = vmatpush3.bf16.msra.mxu1 %v750_v5 }
 0x189   : > { %8269 = vmatprep.subr.bf16.mxu1 %v751_v9 }
 0x18b   : > { %8254 = vmatmul.mubr.msk.bf16.gmra.mrb[4].mxu1 %vm793_vm0, %v10360_v17 }
 0x18c   : > { %8257 = vmatprep.mubr.msk.bf16.mxu1 %vm793_vm0, %v10361_v19  ;;  %8270 = vmatpush3.bf16.msra.mxu1 %v751_v9 }
 0x18d   : > { %8271 = vmatprep.subr.bf16.mxu1 %v752_v12 }
 0x190   : > { %8272 = vmatpush3.bf16.msra.mxu1 %v752_v12 }
 0x191   : > { %8313 = vmatprep.subr.bf16.mxu1 %v10377_v32 }
 0x193   : > { %8258 = vmatmul.mubr.msk.bf16.gmra.mrb[8].mxu1 %vm793_vm0, %v10362_v20  ;;  %v11785_v20 = vld [vmem:[#allocation10] sm:$0xff]  }
 0x194   : > { %8261 = vmatprep.mubr.msk.bf16.mxu1 %vm793_vm0, %v10363_v21  ;;  %13959 = vst [vmem:[#allocation32_spill] sm:$0xff] %v11785_v20  ;;  %v11790_v21 = vld [vmem:[%s13960_s19] sm:$0xff]  }
 0x195   : > { %13961 = vst [vmem:[#allocation33_spill] sm:$0xff] %v11790_v21 }
 0x19b   : > { %8262 = vmatmul.mubr.msk.bf16.gmra.mrb[12].mxu1 %vm793_vm0, %v10364_v22 }
 0x19c   : > { %8273 = vmatprep.mubr.msk.bf16.mxu1 %vm793_vm0, %v10365_v23 }
 0x1a3   : > { %8274 = vmatmul.mubr.msk.bf16.vlgmr.msra.gmra.mrb[16].mxu1 %vm793_vm0, %v10366_v24 }
 0x1a4   : > { %8277 = vmatprep.mubr.msk.bf16.mxu1 %vm793_vm0, %v10367_v25  ;;  %8314 = vmatpush3.bf16.msra.mxu1 %v10377_v32 }
 0x1a5   : > { %8315 = vmatprep.subr.bf16.mxu1 %v11706_v33 }
 0x1a8   : > { %8316 = vmatpush3.bf16.msra.mxu1 %v11706_v33 }
 0x1a9   : > { %8317 = vmatprep.subr.bf16.mxu1 %v11710_v34 }
 0x1ab   : > { %8278 = vmatmul.mubr.msk.bf16.gmra.mrb[20].mxu1 %vm793_vm0, %v10368_v26 }
 0x1ac   : > { %8281 = vmatprep.mubr.msk.bf16.mxu1 %vm793_vm0, %v10369_v27  ;;  %8318 = vmatpush3.bf16.msra.mxu1 %v11710_v34 }
 0x1ad   : > { %8319 = vmatprep.subr.bf16.mxu1 %v11714_v35 }
 0x1b0   : > { %8320 = vmatpush3.bf16.msra.mxu1 %v11714_v35 }
 0x1b3   : > { %8282 = vmatmul.mubr.msk.bf16.gmra.mrb[24].mxu1 %vm793_vm0, %v10370_v28 }
 0x1b4   : > { %8285 = vmatprep.mubr.msk.bf16.mxu1 %vm793_vm0, %v10371_v29 }
 0x1bb   : > { %8286 = vmatmul.mubr.msk.bf16.gmra.mrb[28].mxu1 %vm793_vm0, %v10372_v30 }
 0x256   : > { %v8251_v36 = vpop.f32.mrb[0].mxu1 }
 0x257   : > { %v852_v37 = vpop.f32.mrb[1].mxu1 }
 0x258   : > { %v8252_v38 = vpop.f32.mrb[2].mxu1 }
 0x259   : > { %v11718_v39 = vpack.c.bf16 %v8252_v38, %v8251_v36  ;;  %v855_v40 = vpop.f32.mrb[3].mxu1 }
 0x25a   : > { %v11720_v41 = vpack.c.bf16 %v855_v40, %v852_v37 }
 0x25c   : > { %8297 = vmatprep.mubr.msk.bf16.mxu0 %vm793_vm0, %v11720_v41 }
 0x25d   : > { %8298 = vmatmul.mubr.msk.bf16.vlgmr.msra.gmra.mrb[0].mxu0 %vm793_vm0, %v11718_v39 }
 0x25e   : > { %v8255_v42 = vpop.f32.mrb[4].mxu1  ;;  %8338 = vmatpush3.bf16.msra.mxu0 %v11679_v15 }
 0x25f   : > { %v868_v43 = vpop.f32.mrb[5].mxu1  ;;  %8339 = vmatprep.subr.bf16.mxu0 %v11682_v16 }
 0x260   : > { %v8256_v44 = vpop.f32.mrb[6].mxu1 }
 0x261   : > { %v11728_v45 = vpack.c.bf16 %v8256_v44, %v8255_v42  ;;  %v871_v46 = vpop.f32.mrb[7].mxu1 }
 0x262   : > { %v11730_v47 = vpack.c.bf16 %v871_v46, %v868_v43  ;;  %8340 = vmatpush3.bf16.msra.mxu0 %v11682_v16 }
 0x263   : > { %8341 = vmatprep.subr.bf16.mxu0 %v11685_v18 }
 0x264   : > { %8301 = vmatprep.mubr.msk.bf16.mxu0 %vm793_vm0, %v11730_v47 }
 0x265   : > { %8302 = vmatmul.mubr.msk.bf16.gmra.mrb[4].mxu0 %vm793_vm0, %v11728_v45 }
 0x266   : > { %v8259_v48 = vpop.f32.mrb[8].mxu1  ;;  %8342 = vmatpush3.bf16.msra.mxu0 %v11685_v18 }
 0x267   : > { %v884_v49 = vpop.f32.mrb[9].mxu1  ;;  %8343 = vmatprep.subr.bf16.mxu0 %v10376_v31 }
 0x268   : > { %v8260_v50 = vpop.f32.mrb[10].mxu1 }
 0x269   : > { %v11739_v51 = vpack.c.bf16 %v8260_v50, %v8259_v48  ;;  %v887_v52 = vpop.f32.mrb[11].mxu1 }
 0x26a   : > { %v11741_v53 = vpack.c.bf16 %v887_v52, %v884_v49  ;;  %8344 = vmatpush3.bf16.msra.mxu0 %v10376_v31 }
 0x26b   : > { %8361 = vmatprep.subr.bf16.mxu0 %v10377_v32 }
 0x26c   : > { %8305 = vmatprep.mubr.msk.bf16.mxu0 %vm793_vm0, %v11741_v53 }
 0x26d   : > { %8306 = vmatmul.mubr.msk.bf16.gmra.mrb[8].mxu0 %vm793_vm0, %v11739_v51 }
 0x26e   : > { %v8263_v54 = vpop.f32.mrb[12].mxu1 }
 0x26f   : > { %v900_v55 = vpop.f32.mrb[13].mxu1 }
 0x270   : > { %v8264_v56 = vpop.f32.mrb[14].mxu1 }
 0x271   : > { %v1083_v57 = vpack.c.bf16 %v8264_v56, %v8263_v54  ;;  %v903_v58 = vpop.f32.mrb[15].mxu1 }
 0x272   : > { %v1082_v59 = vpack.c.bf16 %v903_v58, %v900_v55 }
 0x274   : > { %8309 = vmatprep.mubr.msk.bf16.mxu0 %vm793_vm0, %v1082_v59 }
 0x275   : > { %8310 = vmatmul.mubr.msk.bf16.gmra.mrb[12].mxu0 %vm793_vm0, %v1083_v57 }
 0x276   : > { %v8275_v60 = vpop.f32.mrb[16].mxu1 }
 0x277   : > { %v1013_v61 = vpop.f32.mrb[17].mxu1 }
 0x278   : > { %v8276_v62 = vpop.f32.mrb[18].mxu1 }
 0x279   : > { %v1085_v63 = vpack.c.bf16 %v8276_v62, %v8275_v60  ;;  %v1016_v0 = vpop.f32.mrb[19].mxu1 }
 0x27a   : > { %v1084_v1 = vpack.c.bf16 %v1016_v0, %v1013_v61 }
 0x27c   : > { %8321 = vmatprep.mubr.msk.bf16.mxu1 %vm793_vm0, %v1084_v1  ;;  %8345 = vmatprep.mubr.msk.bf16.mxu0 %vm793_vm0, %v1084_v1 }
 0x27d   : > { %8322 = vmatmul.mubr.msk.bf16.vlgmr.msra.gmra.mrb[32].mxu1 %vm793_vm0, %v1085_v63  ;;  %8346 = vmatmul.mubr.msk.bf16.vlgmr.msra.gmra.mrb[16].mxu0 %vm793_vm0, %v1085_v63 }
 0x27e   : > { %v8279_v2 = vpop.f32.mrb[20].mxu1  ;;  %8362 = vmatpush3.bf16.msra.mxu0 %v10377_v32 }
 0x27f   : > { %v1029_v3 = vpop.f32.mrb[21].mxu1  ;;  %8363 = vmatprep.subr.bf16.mxu0 %v11706_v33 }
 0x280   : > { %v8280_v4 = vpop.f32.mrb[22].mxu1 }
 0x281   : > { %v1087_v5 = vpack.c.bf16 %v8280_v4, %v8279_v2  ;;  %v1032_v6 = vpop.f32.mrb[23].mxu1 }
 0x282   : > { %v1086_v7 = vpack.c.bf16 %v1032_v6, %v1029_v3  ;;  %8364 = vmatpush3.bf16.msra.mxu0 %v11706_v33 }
 0x283   : > { %8365 = vmatprep.subr.bf16.mxu0 %v11710_v34 }
 0x284   : > { %8325 = vmatprep.mubr.msk.bf16.mxu1 %vm793_vm0, %v1086_v7  ;;  %8349 = vmatprep.mubr.msk.bf16.mxu0 %vm793_vm0, %v1086_v7  ;;  %v11820_v7 = vld [vmem:[#allocation15 + $0x10] sm:$0xff] }
 0x285   : > { %8326 = vmatmul.mubr.msk.bf16.gmra.mrb[36].mxu1 %vm793_vm0, %v1087_v5  ;;  %8350 = vmatmul.mubr.msk.bf16.gmra.mrb[20].mxu0 %vm793_vm0, %v1087_v5  ;;  %v11816_v5 = vld [vmem:[#allocation13 + $0x10] sm:$0xff]  ;;  %13963 = vst [vmem:[#allocation35_spill] sm:$0xff] %v11820_v7 }
 0x286   : > { %v8283_v8 = vpop.f32.mrb[24].mxu1  ;;  %8366 = vmatpush3.bf16.msra.mxu0 %v11710_v34  ;;  %13962 = vst [vmem:[#allocation34_spill] sm:$0xff] %v11816_v5 }
 0x287   : > { %v1045_v9 = vpop.f32.mrb[25].mxu1  ;;  %8367 = vmatprep.subr.bf16.mxu0 %v11714_v35 }
 0x288   : > { %v8284_v10 = vpop.f32.mrb[26].mxu1 }
 0x289   : > { %v1089_v11 = vpack.c.bf16 %v8284_v10, %v8283_v8  ;;  %v1048_v12 = vpop.f32.mrb[27].mxu1  ;;  %v11822_v8 = vld [vmem:[#allocation13] sm:$0xff]  ;;  %v11826_v10 = vld [vmem:[#allocation13 + $0x18] sm:$0xff] }
 0x28a   : > { %v1088_v13 = vpack.c.bf16 %v1048_v12, %v1045_v9  ;;  %8368 = vmatpush3.bf16.msra.mxu0 %v11714_v35  ;;  %13964 = vst [vmem:[#allocation36_spill] sm:$0xff] %v11822_v8  ;;  %v11824_v9 = vld [vmem:[#allocation15] sm:$0xff]  ;;  %13966 = vst [vmem:[#allocation38_spill] sm:$0xff] %v11826_v10  ;;  %v11830_v12 = vld [vmem:[#allocation13 + $0x8] sm:$0xff] }
 0x28b   : > { %13965 = vst [vmem:[#allocation37_spill] sm:$0xff] %v11824_v9  ;;  %13968 = vst [vmem:[#allocation40_spill] sm:$0xff] %v11830_v12 }
 0x28c   : > { %8329 = vmatprep.mubr.msk.bf16.mxu1 %vm793_vm0, %v1088_v13  ;;  %8353 = vmatprep.mubr.msk.bf16.mxu0 %vm793_vm0, %v1088_v13  ;;  %v11832_v13 = vld [vmem:[#allocation15 + $0x8] sm:$0xff] }
 0x28d   : > { %8330 = vmatmul.mubr.msk.bf16.gmra.mrb[40].mxu1 %vm793_vm0, %v1089_v11  ;;  %8354 = vmatmul.mubr.msk.bf16.gmra.mrb[24].mxu0 %vm793_vm0, %v1089_v11  ;;  %v11828_v11 = vld [vmem:[#allocation15 + $0x18] sm:$0xff]  ;;  %13969 = vst [vmem:[#allocation41_spill] sm:$0xff] %v11832_v13 }
 0x28e   : > { %v8287_v14 = vpop.f32.mrb[28].mxu1  ;;  %13967 = vst [vmem:[#allocation39_spill] sm:$0xff] %v11828_v11 }
 0x28f   : > { %v1061_v15 = vpop.f32.mrb[29].mxu1 }
 0x290   : > { %v8288_v16 = vpop.f32.mrb[30].mxu1 }
 0x291   : > { %v1091_v17 = vpack.c.bf16 %v8288_v16, %v8287_v14  ;;  %v1064_v18 = vpop.f32.mrb[31].mxu1 }
 0x292   : > { %v1090_v19 = vpack.c.bf16 %v1064_v18, %v1061_v15 }
 0x294   : > { %8333 = vmatprep.mubr.msk.bf16.mxu1 %vm793_vm0, %v1090_v19  ;;  %8357 = vmatprep.mubr.msk.bf16.mxu0 %vm793_vm0, %v1090_v19 }
 0x295   : > { %8334 = vmatmul.mubr.msk.bf16.gmra.mrb[44].mxu1 %vm793_vm0, %v1091_v17  ;;  %8358 = vmatmul.mubr.msk.bf16.gmra.mrb[28].mxu0 %vm793_vm0, %v1091_v17 }
 0x296   : > { %8369 = vmatprep.mubr.msk.bf16.mxu0 %vm793_vm0, %v11720_v41  ;;  %8401 = vmatprep.mubr.bf16.mxu1 %v11785_v20 }
 0x29d   : > { %8370 = vmatmul.mubr.msk.bf16.vlgmr.msra.gmra.mrb[16].mxu0 %vm793_vm0, %v11718_v39 }
 0x29e   : > { %8373 = vmatprep.mubr.msk.bf16.mxu0 %vm793_vm0, %v11730_v47 }
 0x2a5   : > { %8374 = vmatmul.mubr.msk.bf16.gmra.mrb[20].mxu0 %vm793_vm0, %v11728_v45 }
 0x2a6   : > { %8377 = vmatprep.mubr.msk.bf16.mxu0 %vm793_vm0, %v11741_v53 }
 0x2ad   : > { %8378 = vmatmul.mubr.msk.bf16.gmra.mrb[24].mxu0 %vm793_vm0, %v11739_v51 }
 0x2ae   : > { %8381 = vmatprep.mubr.msk.bf16.mxu0 %vm793_vm0, %v1082_v59 }
 0x2b5   : > { %8382 = vmatmul.mubr.msk.bf16.gmra.mrb[28].mxu0 %vm793_vm0, %v1083_v57 }
 0x2b6   : > { %8465 = vmatprep.mubr.bf16.mxu0 %v11790_v21 }
 0x330   : > { %v8299_v22 = vpop.f32.mrb[0].mxu0 }
 0x331   : > { %v1174_v23 = vpop.f32.mrb[1].mxu0 }
 0x332   : > { %v8300_v24 = vpop.f32.mrb[2].mxu0 }
 0x333   : > { %v1177_v25 = vpop.f32.mrb[3].mxu0 }
 0x338   : > { %v8303_v26 = vpop.f32.mrb[4].mxu0 }
 0x339   : > { %v1190_v27 = vpop.f32.mrb[5].mxu0 }
 0x33a   : > { %v8304_v28 = vpop.f32.mrb[6].mxu0 }
 0x33b   : > { %v1193_v29 = vpop.f32.mrb[7].mxu0 }
 0x340   : > { %v8307_v30 = vpop.f32.mrb[8].mxu0 }
 0x341   : > { %v1206_v31 = vpop.f32.mrb[9].mxu0 }
 0x342   : > { %v8308_v32 = vpop.f32.mrb[10].mxu0 }
 0x343   : > { %v1209_v33 = vpop.f32.mrb[11].mxu0 }
 0x348   : > { %v8311_v34 = vpop.f32.mrb[12].mxu0 }
 0x349   : > { %v1222_v35 = vpop.f32.mrb[13].mxu0 }
 0x34a   : > { %v8312_v36 = vpop.f32.mrb[14].mxu0 }
 0x34b   : > { %v1225_v37 = vpop.f32.mrb[15].mxu0 }
 0x350   : > { %v8323_v38 = vpop.f32.mrb[32].mxu1 }
 0x351   : > { %v1384_v39 = vsub.f32 %v8299_v22, %v8323_v38  ;;  %v1319_v40 = vpop.f32.mrb[33].mxu1  ;;  %v11852_v38 = vld [vmem:[#allocation13 + $0x20] sm:$0xff] }
 0x352   : > { %v1382_v41 = vsub.f32 %v1174_v23, %v1319_v40  ;;  %v8324_v42 = vpop.f32.mrb[34].mxu1  ;;  %13972 = vst [vmem:[#allocation44_spill] sm:$0xff] %v11852_v38 }
 0x353   : > { %v1385_v43 = vsub.f32 %v8300_v24, %v8324_v42  ;;  %v1322_v44 = vpop.f32.mrb[35].mxu1  ;;  %v1594_v14 = vmul.f32 %v1384_v39, %v11816_v5  ;;  %v1642_v15 = vmul.f32 %v1384_v39, %v11820_v7 }
 0x354   : > { %v1383_v45 = vsub.f32 %v1177_v25, %v1322_v44  ;;  %v1592_v16 = vmul.f32 %v1382_v41, %v11822_v8  ;;  %v1640_v17 = vmul.f32 %v1382_v41, %v11824_v9  ;;  %v11858_v44 = vld [vmem:[#allocation13 + $0x38] sm:$0xff] }
 0x355   : > { %v1595_v19 = vmul.f32 %v1385_v43, %v11826_v10  ;;  %v1643_v22 = vmul.f32 %v1385_v43, %v11828_v11  ;;  %v11856_v43 = vld [vmem:[#allocation15 + $0x20] sm:$0xff]  ;;  %13974 = vst [vmem:[#allocation46_spill] sm:$0xff] %v11858_v44 }
 0x356   : > { %13973 = vst [vmem:[#allocation45_spill] sm:$0xff] %v11856_v43 }
 0x358   : > { %v8327_v46 = vpop.f32.mrb[36].mxu1 }
 0x359   : > { %v11794_v47 = vsub.f32 %v8303_v26, %v8327_v46  ;;  %v1335_v48 = vpop.f32.mrb[37].mxu1  ;;  %v1593_v26 = vmul.f32 %v1383_v45, %v11830_v12 }
 0x35a   : > { %v11796_v49 = vsub.f32 %v1190_v27, %v1335_v48  ;;  %v8328_v50 = vpop.f32.mrb[38].mxu1  ;;  %v1641_v27 = vmul.f32 %v1383_v45, %v11832_v13 }
 0x35b   : > { %v11798_v51 = vsub.f32 %v8304_v28, %v8328_v50  ;;  %v1338_v52 = vpop.f32.mrb[39].mxu1  ;;  %v11862_v50 = vld [vmem:[#allocation15 + $0x38] sm:$0xff] }
 0x35c   : > { %v11800_v53 = vsub.f32 %v1193_v29, %v1338_v52  ;;  %13975 = vst [vmem:[#allocation47_spill] sm:$0xff] %v11862_v50  ;;  %v11864_v52 = vld [vmem:[#allocation13 + $0x28] sm:$0xff] }
 0x35d   : > { %13976 = vst [vmem:[#allocation48_spill] sm:$0xff] %v11864_v52 }
 0x360   : > { %v8331_v54 = vpop.f32.mrb[40].mxu1 }
 0x361   : > { %v11802_v55 = vsub.f32 %v8307_v30, %v8331_v54  ;;  %v1351_v56 = vpop.f32.mrb[41].mxu1 }
 0x362   : > { %v11804_v57 = vsub.f32 %v1206_v31, %v1351_v56  ;;  %v8332_v58 = vpop.f32.mrb[42].mxu1  ;;  %v11846_v31 = vld [vmem:[#allocation13 + $0x30] sm:$0xff] }
 0x363   : > { %v11806_v59 = vsub.f32 %v8308_v32, %v8332_v58  ;;  %v1354_v60 = vpop.f32.mrb[43].mxu1  ;;  %13970 = vst [vmem:[#allocation42_spill] sm:$0xff] %v11846_v31  ;;  %v1598_v48 = vmul.f32 %v11794_v47, %v11846_v31 }
 0x364   : > { %v11808_v61 = vsub.f32 %v1209_v33, %v1354_v60  ;;  %v1596_v60 = vmul.f32 %v11796_v49, %v11852_v38 }
 0x368   : > { %v8335_v62 = vpop.f32.mrb[44].mxu1 }
 0x369   : > { %v11810_v63 = vsub.f32 %v8311_v34, %v8335_v62  ;;  %v1367_v0 = vpop.f32.mrb[45].mxu1  ;;  %v11870_v62 = vld [vmem:[#allocation15 + $0x28] sm:$0xff] }
 0x36a   : > { %v11812_v1 = vsub.f32 %v1222_v35, %v1367_v0  ;;  %v8336_v2 = vpop.f32.mrb[46].mxu1  ;;  %13977 = vst [vmem:[#allocation49_spill] sm:$0xff] %v11870_v62 }
 0x36b   : > { %v11814_v3 = vsub.f32 %v8312_v36, %v8336_v2  ;;  %v1370_v4 = vpop.f32.mrb[47].mxu1 }
 0x36c   : > { %v11818_v6 = vsub.f32 %v1225_v37, %v1370_v4  ;;  %v11850_v37 = vld [vmem:[#allocation15 + $0x30] sm:$0xff]  ;;  %v1644_v4 = vmul.f32 %v11796_v49, %v11856_v43  ;;  %v1645_v49 = vmul.f32 %v11800_v53, %v11870_v62 }
 0x36d   : > { %13971 = vst [vmem:[#allocation43_spill] sm:$0xff] %v11850_v37  ;;  %v1646_v58 = vmul.f32 %v11794_v47, %v11850_v37  ;;  %v1647_v47 = vmul.f32 %v11798_v51, %v11862_v50 }
 0x370   : > { %v8371_v18 = vpop.f32.mrb[16].mxu0 }
 0x371   : > { %v1610_v23 = vmul.f32 %v8371_v18, %v11820_v7  ;;  %v1658_v24 = vmul.f32 %v8371_v18, %v11816_v5  ;;  %v1529_v25 = vpop.f32.mrb[17].mxu0  ;;  %v1597_v18 = vmul.f32 %v11800_v53, %v11864_v52  ;;  %v11896_v53 = vld [vmem:[#allocation13 + $0x40] sm:$0xff] }
 0x372   : > { %v1608_v28 = vmul.f32 %v1529_v25, %v11824_v9  ;;  %v1656_v29 = vmul.f32 %v1529_v25, %v11822_v8  ;;  %v8372_v30 = vpop.f32.mrb[18].mxu0  ;;  %13980 = vst [vmem:[#allocation52_spill] sm:$0xff] %v11896_v53 }
 0x373   : > { %v1626_v32 = vsub.f32 %v1594_v14, %v1610_v23  ;;  %v1674_v33 = vadd.f32 %v1658_v24, %v1642_v15  ;;  %v1611_v34 = vmul.f32 %v8372_v30, %v11828_v11  ;;  %v1659_v35 = vmul.f32 %v8372_v30, %v11826_v10  ;;  %v1532_v36 = vpop.f32.mrb[19].mxu0 }
 0x374   : > { %v1624_v39 = vsub.f32 %v1592_v16, %v1608_v28  ;;  %v1672_v40 = vadd.f32 %v1656_v29, %v1640_v17  ;;  %v1609_v41 = vmul.f32 %v1532_v36, %v11832_v13  ;;  %v1657_v42 = vmul.f32 %v1532_v36, %v11830_v12 }
 0x375   : > { %v1627_v45 = vsub.f32 %v1595_v19, %v1611_v34  ;;  %v1675_v46 = vadd.f32 %v1659_v35, %v1643_v22  ;;  %v1599_v14 = vmul.f32 %v11798_v51, %v11858_v44 }
 0x376   : > { %v1625_v54 = vsub.f32 %v1593_v26, %v1609_v41  ;;  %v1673_v56 = vadd.f32 %v1657_v42, %v1641_v27  ;;  %v11890_v27 = vld [vmem:[#allocation13 + $0x50] sm:$0xff]  ;;  %v11902_v41 = vld [vmem:[#allocation13 + $0x58] sm:$0xff] }
 0x377   : > { %v1721_v0 = vpack.c.bf16 %v1627_v45, %v1626_v32  ;;  %v11872_v2 = vpack.c.bf16 %v1675_v46, %v1674_v33  ;;  %13978 = vst [vmem:[#allocation50_spill] sm:$0xff] %v11890_v27  ;;  %v11894_v33 = vld [vmem:[#allocation15 + $0x50] sm:$0xff]  ;;  %13982 = vst [vmem:[#allocation54_spill] sm:$0xff] %v11902_v41  ;;  %v1602_v46 = vmul.f32 %v11802_v55, %v11890_v27 }
 0x378   : > { %v1720_v15 = vpack.c.bf16 %v1625_v54, %v1624_v39  ;;  %v11878_v16 = vpack.c.bf16 %v1673_v56, %v1672_v40  ;;  %v8375_v17 = vpop.f32.mrb[20].mxu0  ;;  %13979 = vst [vmem:[#allocation51_spill] sm:$0xff] %v11894_v33  ;;  %v11900_v40 = vld [vmem:[#allocation15 + $0x40] sm:$0xff]  ;;  %v11908_v54 = vld [vmem:[#allocation13 + $0x48] sm:$0xff] }
 0x379   : > { %v1614_v19 = vmul.f32 %v8375_v17, %v11850_v37  ;;  %v1662_v22 = vmul.f32 %v8375_v17, %v11846_v31  ;;  %v1545_v23 = vpop.f32.mrb[21].mxu0  ;;  %13981 = vst [vmem:[#allocation53_spill] sm:$0xff] %v11900_v40  ;;  %13984 = vst [vmem:[#allocation56_spill] sm:$0xff] %v11908_v54 }
 0x37a   : > { %v1612_v24 = vmul.f32 %v1545_v23, %v11856_v43  ;;  %v1660_v25 = vmul.f32 %v1545_v23, %v11852_v38  ;;  %v8376_v26 = vpop.f32.mrb[22].mxu0  ;;  %8385 = vmatprep.subr.bf16.mxu1 %v1720_v15  ;;  %8449 = vmatprep.subr.bf16.mxu0 %v1720_v15 }
 0x37b   : > { %v1630_v51 = vsub.f32 %v1598_v48, %v1614_v19  ;;  %v1678_v28 = vadd.f32 %v1662_v22, %v1646_v58  ;;  %v1615_v29 = vmul.f32 %v8376_v26, %v11862_v50  ;;  %v1663_v30 = vmul.f32 %v8376_v26, %v11858_v44  ;;  %v1548_v32 = vpop.f32.mrb[23].mxu0  ;;  %8386 = vmatpush3.bf16.msra.mxu1 %v1720_v15  ;;  %v11906_v48 = vld [vmem:[#allocation15 + $0x58] sm:$0xff] }
 0x37c   : > { %v1628_v34 = vsub.f32 %v1596_v60, %v1612_v24  ;;  %v1676_v35 = vadd.f32 %v1660_v25, %v1644_v4  ;;  %v1613_v36 = vmul.f32 %v1548_v32, %v11870_v62  ;;  %v1661_v39 = vmul.f32 %v1548_v32, %v11864_v52  ;;  %8450 = vmatpush3.bf16.msra.mxu0 %v1720_v15  ;;  %v11914_v15 = vld [vmem:[#allocation15 + $0x48] sm:$0xff] }
 0x37d   : > { %v1631_v42 = vsub.f32 %v1599_v14, %v1615_v29  ;;  %v1679_v45 = vadd.f32 %v1663_v30, %v1647_v47  ;;  %8387 = vmatprep.subr.bf16.mxu1 %v1721_v0  ;;  %8451 = vmatprep.subr.bf16.mxu0 %v1721_v0  ;;  %13983 = vst [vmem:[#allocation55_spill] sm:$0xff] %v11906_v48  ;;  %13985 = vst [vmem:[#allocation57_spill] sm:$0xff] %v11914_v15  ;;  %v11934_v29 = vld [vmem:[#allocation13 + $0x70] sm:$0xff] }
 0x37e   : > { %v1629_v56 = vsub.f32 %v1597_v18, %v1613_v36  ;;  %v1677_v58 = vadd.f32 %v1661_v39, %v1645_v49  ;;  %v1650_v60 = vmul.f32 %v11802_v55, %v11894_v33  ;;  %v1600_v4 = vmul.f32 %v11804_v57, %v11896_v53  ;;  %13986 = vst [vmem:[#allocation58_spill] sm:$0xff] %v11934_v29  ;;  %v11938_v36 = vld [vmem:[#allocation15 + $0x70] sm:$0xff] }
 0x37f   : > { %v1723_v14 = vpack.c.bf16 %v1631_v42, %v1630_v51  ;;  %v11916_v17 = vpack.c.bf16 %v1679_v45, %v1678_v28  ;;  %8388 = vmatpush3.bf16.msra.mxu1 %v1721_v0  ;;  %v1648_v47 = vmul.f32 %v11804_v57, %v11900_v40  ;;  %v1603_v19 = vmul.f32 %v11806_v59, %v11902_v41 }
 0x380   : > { %v1722_v18 = vpack.c.bf16 %v1629_v56, %v1628_v34  ;;  %v11922_v22 = vpack.c.bf16 %v1677_v58, %v1676_v35  ;;  %8452 = vmatpush3.bf16.msra.mxu0 %v1721_v0  ;;  %v8379_v55 = vpop.f32.mrb[24].mxu0  ;;  %v1651_v23 = vmul.f32 %v11806_v59, %v11906_v48  ;;  %v1601_v49 = vmul.f32 %v11808_v61, %v11908_v54  ;;  %v11944_v58 = vld [vmem:[#allocation15 + $0x60] sm:$0xff] }
 0x381   : > { %v1618_v24 = vmul.f32 %v8379_v55, %v11894_v33  ;;  %v1666_v25 = vmul.f32 %v8379_v55, %v11890_v27  ;;  %v1561_v26 = vpop.f32.mrb[25].mxu0  ;;  %v1649_v57 = vmul.f32 %v11808_v61, %v11914_v15  ;;  %13987 = vst [vmem:[#allocation59_spill] sm:$0xff] %v11938_v36  ;;  %v11940_v61 = vld [vmem:[#allocation13 + $0x60] sm:$0xff]  ;;  %13989 = vst [vmem:[#allocation61_spill] sm:$0xff] %v11944_v58 }
 0x382   : > { %v1616_v51 = vmul.f32 %v1561_v26, %v11900_v40  ;;  %v1664_v28 = vmul.f32 %v1561_v26, %v11896_v53  ;;  %v8380_v0 = vpop.f32.mrb[26].mxu0  ;;  %8389 = vmatprep.subr.bf16.mxu1 %v1722_v18  ;;  %8453 = vmatprep.subr.bf16.mxu0 %v1722_v18  ;;  %13988 = vst [vmem:[#allocation60_spill] sm:$0xff] %v11940_v61 }
 0x383   : > { %v1634_v59 = vsub.f32 %v1602_v46, %v1618_v24  ;;  %v1682_v30 = vadd.f32 %v1666_v25, %v1650_v60  ;;  %v1619_v32 = vmul.f32 %v8380_v0, %v11906_v48  ;;  %v1667_v34 = vmul.f32 %v8380_v0, %v11902_v41  ;;  %v1564_v35 = vpop.f32.mrb[27].mxu0  ;;  %8390 = vmatpush3.bf16.msra.mxu1 %v1722_v18  ;;  %v11946_v46 = vld [vmem:[#allocation13 + $0x78] sm:$0xff] }
 0x384   : > { %v1632_v39 = vsub.f32 %v1600_v4, %v1616_v51  ;;  %v1680_v42 = vadd.f32 %v1664_v28, %v1648_v47  ;;  %v1617_v45 = vmul.f32 %v1564_v35, %v11914_v15  ;;  %v1665_v56 = vmul.f32 %v1564_v35, %v11908_v54  ;;  %8454 = vmatpush3.bf16.msra.mxu0 %v1722_v18  ;;  %v11950_v25 = vld [vmem:[#allocation15 + $0x78] sm:$0xff]  ;;  %v11952_v4 = vld [vmem:[#allocation13 + $0x68] sm:$0xff] }
 0x385   : > { %13990 = vst [vmem:[#allocation62_spill] sm:$0xff] %v11946_v46  ;;  %v1635_v60 = vsub.f32 %v1603_v19, %v1619_v32  ;;  %v1683_v55 = vadd.f32 %v1667_v34, %v1651_v23  ;;  %8391 = vmatprep.subr.bf16.mxu1 %v1723_v14  ;;  %8455 = vmatprep.subr.bf16.mxu0 %v1723_v14  ;;  %13991 = vst [vmem:[#allocation63_spill] sm:$0xff] %v11950_v25  ;;  %v11958_v28 = vld [vmem:[#allocation15 + $0x68] sm:$0xff] }
 0x386   : > { %v1606_v24 = vmul.f32 %v11810_v63, %v11934_v29  ;;  %13992 = vst [vmem:[#allocation64_spill] sm:$0xff] %v11952_v4  ;;  %v1633_v47 = vsub.f32 %v1601_v49, %v1617_v45  ;;  %v1681_v26 = vadd.f32 %v1665_v56, %v1649_v57  ;;  %v1654_v18 = vmul.f32 %v11810_v63, %v11938_v36 }
 0x387   : > { %v1604_v51 = vmul.f32 %v11812_v1, %v11940_v61  ;;  %13993 = vst [vmem:[#allocation65_spill] sm:$0xff] %v11958_v28  ;;  %v1725_v19 = vpack.c.bf16 %v1635_v60, %v1634_v59  ;;  %v11960_v23 = vpack.c.bf16 %v1683_v55, %v1682_v30  ;;  %8392 = vmatpush3.bf16.msra.mxu1 %v1723_v14 }
 0x388   : > { %v1652_v0 = vmul.f32 %v11812_v1, %v11944_v58  ;;  %v1607_v32 = vmul.f32 %v11814_v3, %v11946_v46  ;;  %v1724_v49 = vpack.c.bf16 %v1633_v47, %v1632_v39  ;;  %v11966_v57 = vpack.c.bf16 %v1681_v26, %v1680_v42  ;;  %8456 = vmatpush3.bf16.msra.mxu0 %v1723_v14  ;;  %v8383_v63 = vpop.f32.mrb[28].mxu0 }
 0x389   : > { %v1655_v34 = vmul.f32 %v11814_v3, %v11950_v25  ;;  %v1605_v59 = vmul.f32 %v11818_v6, %v11952_v4  ;;  %v1622_v30 = vmul.f32 %v8383_v63, %v11938_v36  ;;  %v1670_v35 = vmul.f32 %v8383_v63, %v11934_v29  ;;  %v1577_v45 = vpop.f32.mrb[29].mxu0 }
 0x38a   : > { %v1653_v1 = vmul.f32 %v11818_v6, %v11958_v28  ;;  %v1620_v39 = vmul.f32 %v1577_v45, %v11944_v58  ;;  %v1668_v42 = vmul.f32 %v1577_v45, %v11940_v61  ;;  %v8384_v14 = vpop.f32.mrb[30].mxu0  ;;  %8393 = vmatprep.subr.bf16.mxu1 %v1724_v49  ;;  %8457 = vmatprep.subr.bf16.mxu0 %v1724_v49 }
 0x38b   : > { %v1638_v56 = vsub.f32 %v1606_v24, %v1622_v30  ;;  %v1686_v3 = vadd.f32 %v1670_v35, %v1654_v18  ;;  %v1623_v60 = vmul.f32 %v8384_v14, %v11950_v25  ;;  %v1671_v55 = vmul.f32 %v8384_v14, %v11946_v46  ;;  %v1580_v47 = vpop.f32.mrb[31].mxu0  ;;  %8394 = vmatpush3.bf16.msra.mxu1 %v1724_v49 }
 0x38c   : > { %v1636_v26 = vsub.f32 %v1604_v51, %v1620_v39  ;;  %v1684_v63 = vadd.f32 %v1668_v42, %v1652_v0  ;;  %v1621_v36 = vmul.f32 %v1580_v47, %v11958_v28  ;;  %v1669_v6 = vmul.f32 %v1580_v47, %v11952_v4  ;;  %8458 = vmatpush3.bf16.msra.mxu0 %v1724_v49  ;;  %v11986_v51 = vld [vmem:[#allocation10 + $0x8] sm:$0xff]   ;;  %v12016_v0 = vld [vmem:[%s13960_s19 + $0x18] sm:$0xff]  }
 0x38d   : > { %v1639_v58 = vsub.f32 %v1607_v32, %v1623_v60  ;;  %v1687_v45 = vadd.f32 %v1671_v55, %v1655_v34  ;;  %8395 = vmatprep.subr.bf16.mxu1 %v1725_v19  ;;  %8459 = vmatprep.subr.bf16.mxu0 %v1725_v19  ;;  %13994 = vst [vmem:[#allocation66_spill] sm:$0xff] %v11986_v51  ;;  %13999 = vst [vmem:[#allocation71_spill] sm:$0xff] %v12016_v0  ;;  %v12027_v32 = vld [vmem:[%s13960_s19 + $0x20] sm:$0xff]   ;;  %v12042_v49 = vld [vmem:[%s13960_s19 + $0x28] sm:$0xff]  }
 0x38e   : > { %v1637_v61 = vsub.f32 %v1605_v59, %v1621_v36  ;;  %v1685_v24 = vadd.f32 %v1669_v6, %v1653_v1  ;;  %v11991_v36 = vld [vmem:[%s13960_s19 + $0x8] sm:$0xff]   ;;  %14001 = vst [vmem:[#allocation73_spill] sm:$0xff] %v12027_v32  ;;  %14003 = vst [vmem:[#allocation75_spill] sm:$0xff] %v12042_v49  ;;  %v12053_v34 = vld [vmem:[%s13960_s19 + $0x30] sm:$0xff]  }
 0x38f   : > { %v1727_v18 = vpack.c.bf16 %v1639_v58, %v1638_v56  ;;  %v11982_v30 = vpack.c.bf16 %v1687_v45, %v1686_v3  ;;  %8396 = vmatpush3.bf16.msra.mxu1 %v1725_v19  ;;  %13995 = vst [vmem:[#allocation67_spill] sm:$0xff] %v11991_v36  ;;  %v12001_v58 = vld [vmem:[%s13960_s19 + $0x10] sm:$0xff]   ;;  %14005 = vst [vmem:[#allocation77_spill] sm:$0xff] %v12053_v34  ;;  %v12068_v59 = vld [vmem:[%s13960_s19 + $0x38] sm:$0xff]   ;;  %s12446_s19 = smov 1  }
 0x390   : > { %v1726_v35 = vpack.c.bf16 %v1637_v61, %v1636_v26  ;;  %v11984_v14 = vpack.c.bf16 %v1685_v24, %v1684_v63  ;;  %8460 = vmatpush3.bf16.msra.mxu0 %v1725_v19  ;;  %v11995_v61 = vld [vmem:[#allocation10 + $0x10] sm:$0xff]   ;;  %13997 = vst [vmem:[#allocation69_spill] sm:$0xff] %v12001_v58  ;;  %v12010_v19 = vld [vmem:[#allocation10 + $0x18] sm:$0xff]   ;;  %14007 = vst [vmem:[#allocation79_spill] sm:$0xff] %v12068_v59 }
 0x391   : > { %13996 = vst [vmem:[#allocation68_spill] sm:$0xff] %v11995_v61  ;;  %13998 = vst [vmem:[#allocation70_spill] sm:$0xff] %v12010_v19 }
 0x392   : > { %8397 = vmatprep.subr.bf16.mxu1 %v1726_v35  ;;  %8461 = vmatprep.subr.bf16.mxu0 %v1726_v35 }
 0x393   : > { %8398 = vmatpush3.bf16.msra.mxu1 %v1726_v35 }
 0x394   : > { %8462 = vmatpush3.bf16.msra.mxu0 %v1726_v35  ;;  %8399 = vmatprep.subr.bf16.mxu1 %v1727_v18 }
 0x395   : > { %8463 = vmatprep.subr.bf16.mxu0 %v1727_v18 }
 0x397   : > { %8400 = vmatpush3.bf16.msra.mxu1 %v1727_v18 }
 0x398   : > { %8464 = vmatpush3.bf16.msra.mxu0 %v1727_v18  ;;  %8417 = vmatprep.subr.bf16.mxu1 %v11878_v16 }
 0x399   : > { %8481 = vmatprep.subr.bf16.mxu0 %v11878_v16 }
 0x39a   : > { %8402 = vmatmul.mubr.bf16.vlgmr.msra.gmra.mrb[48].mxu1 %v11986_v51 }
 0x39b   : > { %8466 = vmatmul.mubr.bf16.vlgmr.msra.gmra.mrb[32].mxu0 %v11991_v36  ;;  %8418 = vmatpush3.bf16.msra.mxu1 %v11878_v16 }
 0x39c   : > { %8482 = vmatpush3.bf16.msra.mxu0 %v11878_v16  ;;  %8419 = vmatprep.subr.bf16.mxu1 %v11872_v2  ;;  %v12021_v16 = vld [vmem:[#allocation10 + $0x20] sm:$0xff]  }
 0x39d   : > { %8483 = vmatprep.subr.bf16.mxu0 %v11872_v2  ;;  %8405 = vmatprep.mubr.bf16.mxu1 %v11995_v61  ;;  %14000 = vst [vmem:[#allocation72_spill] sm:$0xff] %v12021_v16 }
 0x39e   : > { %8469 = vmatprep.mubr.bf16.mxu0 %v12001_v58 }
 0x39f   : > { %8420 = vmatpush3.bf16.msra.mxu1 %v11872_v2 }
 0x3a0   : > { %8484 = vmatpush3.bf16.msra.mxu0 %v11872_v2  ;;  %8421 = vmatprep.subr.bf16.mxu1 %v11922_v22  ;;  %v12036_v2 = vld [vmem:[#allocation10 + $0x28] sm:$0xff]  }
 0x3a1   : > { %8485 = vmatprep.subr.bf16.mxu0 %v11922_v22  ;;  %14002 = vst [vmem:[#allocation74_spill] sm:$0xff] %v12036_v2 }
 0x3a2   : > { %8406 = vmatmul.mubr.bf16.gmra.mrb[52].mxu1 %v12010_v19 }
 0x3a3   : > { %8470 = vmatmul.mubr.bf16.gmra.mrb[36].mxu0 %v12016_v0  ;;  %8422 = vmatpush3.bf16.msra.mxu1 %v11922_v22 }
 0x3a4   : > { %8486 = vmatpush3.bf16.msra.mxu0 %v11922_v22  ;;  %8423 = vmatprep.subr.bf16.mxu1 %v11916_v17  ;;  %v12047_v22 = vld [vmem:[#allocation10 + $0x30] sm:$0xff]  }
 0x3a5   : > { %8487 = vmatprep.subr.bf16.mxu0 %v11916_v17  ;;  %8409 = vmatprep.mubr.bf16.mxu1 %v12021_v16  ;;  %14004 = vst [vmem:[#allocation76_spill] sm:$0xff] %v12047_v22 }
 0x3a6   : > { %8473 = vmatprep.mubr.bf16.mxu0 %v12027_v32 }
 0x3a7   : > { %8424 = vmatpush3.bf16.msra.mxu1 %v11916_v17 }
 0x3a8   : > { %8488 = vmatpush3.bf16.msra.mxu0 %v11916_v17  ;;  %8425 = vmatprep.subr.bf16.mxu1 %v11966_v57  ;;  %v12062_v17 = vld [vmem:[#allocation10 + $0x38] sm:$0xff]  }
 0x3a9   : > { %8489 = vmatprep.subr.bf16.mxu0 %v11966_v57  ;;  %14006 = vst [vmem:[#allocation78_spill] sm:$0xff] %v12062_v17 }
 0x3aa   : > { %8410 = vmatmul.mubr.bf16.gmra.mrb[56].mxu1 %v12036_v2 }
 0x3ab   : > { %8474 = vmatmul.mubr.bf16.gmra.mrb[40].mxu0 %v12042_v49  ;;  %8426 = vmatpush3.bf16.msra.mxu1 %v11966_v57 }
 0x3ac   : > { %8490 = vmatpush3.bf16.msra.mxu0 %v11966_v57  ;;  %8427 = vmatprep.subr.bf16.mxu1 %v11960_v23 }
 0x3ad   : > { %8491 = vmatprep.subr.bf16.mxu0 %v11960_v23  ;;  %8413 = vmatprep.mubr.bf16.mxu1 %v12047_v22 }
 0x3ae   : > { %8477 = vmatprep.mubr.bf16.mxu0 %v12053_v34 }
 0x3af   : > { %8428 = vmatpush3.bf16.msra.mxu1 %v11960_v23 }
 0x3b0   : > { %8492 = vmatpush3.bf16.msra.mxu0 %v11960_v23  ;;  %8429 = vmatprep.subr.bf16.mxu1 %v11984_v14 }
 0x3b1   : > { %8493 = vmatprep.subr.bf16.mxu0 %v11984_v14 }
 0x3b2   : > { %8414 = vmatmul.mubr.bf16.gmra.mrb[60].mxu1 %v12062_v17 }
 0x3b3   : > { %8478 = vmatmul.mubr.bf16.gmra.mrb[44].mxu0 %v12068_v59  ;;  %8430 = vmatpush3.bf16.msra.mxu1 %v11984_v14 }
 0x3b4   : > { %8494 = vmatpush3.bf16.msra.mxu0 %v11984_v14  ;;  %8431 = vmatprep.subr.bf16.mxu1 %v11982_v30 }
 0x3b5   : > { %8495 = vmatprep.subr.bf16.mxu0 %v11982_v30  ;;  %8433 = vmatprep.mubr.bf16.mxu1 %v11790_v21 }
 0x3b6   : > { %8497 = vmatprep.mubr.bf16.mxu0 %v11785_v20 }
 0x3b7   : > { %8432 = vmatpush3.bf16.msra.mxu1 %v11982_v30 }
 0x3b8   : > { %8496 = vmatpush3.bf16.msra.mxu0 %v11982_v30  ;;  %8513 = vmatprep.subr.bf16.mxu1 %v11785_v20 }
 0x3b9   : > { %8577 = vmatprep.subr.bf16.mxu0 %v11785_v20 }
 0x3ba   : > { %8434 = vmatmul.mubr.bf16.vlgmr.msra.gmra.mrb[64].mxu1 %v11991_v36 }
 0x3bb   : > { %8498 = vmatmul.mubr.bf16.vlgmr.msra.gmra.mrb[32].mxu0 %v11986_v51  ;;  %8437 = vmatprep.mubr.bf16.mxu1 %v12001_v58 }
 0x3bc   : > { %8501 = vmatprep.mubr.bf16.mxu0 %v11995_v61  ;;  %8578 = vmatpush3.bf16.msra.mxu0 %v11785_v20 }
 0x3bd   : > { %8514 = vmatpush3.bf16.msra.mxu1 %v11785_v20  ;;  %8579 = vmatprep.subr.bf16.mxu0 %v11986_v51 }
 0x3be   : > { %8515 = vmatprep.subr.bf16.mxu1 %v11986_v51 }
 0x3c0   : > { %8580 = vmatpush3.bf16.msra.mxu0 %v11986_v51 }
 0x3c1   : > { %8516 = vmatpush3.bf16.msra.mxu1 %v11986_v51  ;;  %8581 = vmatprep.subr.bf16.mxu0 %v11995_v61  ;;  %v2249_v51 = vld [vmem:[#allocation16 + $0x68] sm:$0xff] }
 0x3c2   : > { %8438 = vmatmul.mubr.bf16.gmra.mrb[68].mxu1 %v12016_v0  ;;  %8517 = vmatprep.subr.bf16.mxu1 %v11995_v61 }
 0x3c3   : > { %8502 = vmatmul.mubr.bf16.gmra.mrb[36].mxu0 %v12010_v19  ;;  %8441 = vmatprep.mubr.bf16.mxu1 %v12027_v32 }
 0x3c4   : > { %8505 = vmatprep.mubr.bf16.mxu0 %v12021_v16  ;;  %8582 = vmatpush3.bf16.msra.mxu0 %v11995_v61 }
 0x3c5   : > { %8518 = vmatpush3.bf16.msra.mxu1 %v11995_v61  ;;  %8583 = vmatprep.subr.bf16.mxu0 %v12010_v19 }
 0x3c6   : > { %8519 = vmatprep.subr.bf16.mxu1 %v12010_v19 }
 0x3c8   : > { %8584 = vmatpush3.bf16.msra.mxu0 %v12010_v19 }
 0x3c9   : > { %8520 = vmatpush3.bf16.msra.mxu1 %v12010_v19  ;;  %8585 = vmatprep.subr.bf16.mxu0 %v12021_v16 }
 0x3ca   : > { %8442 = vmatmul.mubr.bf16.gmra.mrb[72].mxu1 %v12042_v49  ;;  %8521 = vmatprep.subr.bf16.mxu1 %v12021_v16 }
 0x3cb   : > { %8506 = vmatmul.mubr.bf16.gmra.mrb[40].mxu0 %v12036_v2  ;;  %8445 = vmatprep.mubr.bf16.mxu1 %v12053_v34 }
 0x3cc   : > { %8509 = vmatprep.mubr.bf16.mxu0 %v12047_v22  ;;  %8586 = vmatpush3.bf16.msra.mxu0 %v12021_v16 }
 0x3cd   : > { %8522 = vmatpush3.bf16.msra.mxu1 %v12021_v16  ;;  %8587 = vmatprep.subr.bf16.mxu0 %v12036_v2 }
 0x3ce   : > { %8523 = vmatprep.subr.bf16.mxu1 %v12036_v2 }
 0x3d0   : > { %8588 = vmatpush3.bf16.msra.mxu0 %v12036_v2 }
 0x3d1   : > { %8524 = vmatpush3.bf16.msra.mxu1 %v12036_v2  ;;  %8589 = vmatprep.subr.bf16.mxu0 %v12047_v22 }
 0x3d2   : > { %8446 = vmatmul.mubr.bf16.gmra.mrb[76].mxu1 %v12068_v59  ;;  %8525 = vmatprep.subr.bf16.mxu1 %v12047_v22 }
 0x3d3   : > { %8510 = vmatmul.mubr.bf16.gmra.mrb[44].mxu0 %v12062_v17 }
 0x3d4   : > { %8590 = vmatpush3.bf16.msra.mxu0 %v12047_v22 }
 0x3d5   : > { %8526 = vmatpush3.bf16.msra.mxu1 %v12047_v22  ;;  %8591 = vmatprep.subr.bf16.mxu0 %v12062_v17 }
 0x3d6   : > { %8527 = vmatprep.subr.bf16.mxu1 %v12062_v17 }
 0x3d8   : > { %8592 = vmatpush3.bf16.msra.mxu0 %v12062_v17 }
 0x3d9   : > { %8528 = vmatpush3.bf16.msra.mxu1 %v12062_v17  ;;  %8609 = vmatprep.subr.bf16.mxu0 %v11790_v21 }
 0x3da   : > { %8545 = vmatprep.subr.bf16.mxu1 %v11790_v21 }
 0x46d   : > { %v8403_v23 = vpop.f32.mrb[48].mxu1 }
 0x46e   : > { %v1818_v57 = vpop.f32.mrb[49].mxu1 }
 0x46f   : > { %v8404_v1 = vpop.f32.mrb[50].mxu1 }
 0x470   : > { %v1821_v39 = vpop.f32.mrb[51].mxu1 }
 0x475   : > { %v8407_v42 = vpop.f32.mrb[52].mxu1 }
 0x476   : > { %v1834_v56 = vpop.f32.mrb[53].mxu1 }
 0x477   : > { %v8408_v3 = vpop.f32.mrb[54].mxu1 }
 0x478   : > { %v1837_v60 = vpop.f32.mrb[55].mxu1 }
 0x47d   : > { %v12131_v55 = vpop.f32.mrb[56].mxu1 }
 0x47e   : > { %v12133_v47 = vpop.f32.mrb[57].mxu1 }
 0x47f   : > { %v12135_v26 = vpop.f32.mrb[58].mxu1 }
 0x480   : > { %v12137_v63 = vpop.f32.mrb[59].mxu1 }
 0x485   : > { %v12139_v6 = vpop.f32.mrb[60].mxu1 }
 0x486   : > { %v12141_v45 = vpop.f32.mrb[61].mxu1 }
 0x487   : > { %v12143_v24 = vpop.f32.mrb[62].mxu1 }
 0x488   : > { %v12145_v18 = vpop.f32.mrb[63].mxu1 }
 0x48d   : > { %v8435_v30 = vpop.f32.mrb[64].mxu1 }
 0x48e   : > { %v2028_v35 = vsub.f32 %v8403_v23, %v8435_v30  ;;  %v8499_v14 = vpop.f32.mrb[32].mxu0  ;;  %v1963_v28 = vpop.f32.mrb[65].mxu1 }
 0x48f   : > { %v2026_v4 = vsub.f32 %v1818_v57, %v1963_v28  ;;  %v2173_v25 = vpop.f32.mrb[33].mxu0  ;;  %v8436_v46 = vpop.f32.mrb[66].mxu1 }
 0x490   : > { %v2029_v29 = vsub.f32 %v8404_v1, %v8436_v46  ;;  %v8500_v15 = vpop.f32.mrb[34].mxu0  ;;  %v1966_v54 = vpop.f32.mrb[67].mxu1 }
 0x491   : > { %v12147_v48 = vpack.c.bf16 %v8500_v15, %v8499_v14  ;;  %v2027_v41 = vsub.f32 %v1821_v39, %v1966_v54  ;;  %v2176_v40 = vpop.f32.mrb[35].mxu0 }
 0x492   : > { %v12149_v53 = vpack.c.bf16 %v2029_v29, %v2028_v35  ;;  %v12151_v33 = vpack.c.bf16 %v2176_v40, %v2173_v25 }
 0x493   : > { %v12153_v27 = vpack.c.bf16 %v2027_v41, %v2026_v4 }
 0x494   : > { %8593 = vmatprep.mubr.bf16.mxu0 %v12151_v33 }
 0x495   : > { %8594 = vmatmul.mubr.bf16.vlgmr.msra.gmra.mrb[48].mxu0 %v12147_v48  ;;  %v8439_v28 = vpop.f32.mrb[68].mxu1  ;;  %8529 = vmatprep.mubr.bf16.mxu1 %v12153_v27 }
 0x496   : > { %v2032_v46 = vsub.f32 %v8407_v42, %v8439_v28  ;;  %v8503_v23 = vpop.f32.mrb[36].mxu0  ;;  %8610 = vmatpush3.bf16.msra.mxu0 %v11790_v21  ;;  %v1979_v15 = vpop.f32.mrb[69].mxu1  ;;  %8530 = vmatmul.mubr.bf16.vlgmr.msra.gmra.mrb[80].mxu1 %v12149_v53 }
 0x497   : > { %v2030_v54 = vsub.f32 %v1834_v56, %v1979_v15  ;;  %v2189_v29 = vpop.f32.mrb[37].mxu0  ;;  %v8440_v40 = vpop.f32.mrb[70].mxu1  ;;  %8546 = vmatpush3.bf16.msra.mxu1 %v11790_v21  ;;  %8611 = vmatprep.subr.bf16.mxu0 %v11991_v36 }
 0x498   : > { %v2033_v41 = vsub.f32 %v8408_v3, %v8440_v40  ;;  %v8504_v25 = vpop.f32.mrb[38].mxu0  ;;  %v1982_v4 = vpop.f32.mrb[71].mxu1  ;;  %8547 = vmatprep.subr.bf16.mxu1 %v11991_v36 }
 0x499   : > { %v12163_v57 = vpack.c.bf16 %v8504_v25, %v8503_v23  ;;  %v2031_v1 = vsub.f32 %v1837_v60, %v1982_v4  ;;  %v2192_v39 = vpop.f32.mrb[39].mxu0 }
 0x49a   : > { %v12165_v42 = vpack.c.bf16 %v2033_v41, %v2032_v46  ;;  %v12167_v30 = vpack.c.bf16 %v2192_v39, %v2189_v29  ;;  %8612 = vmatpush3.bf16.msra.mxu0 %v11991_v36 }
 0x49b   : > { %v12170_v56 = vpack.c.bf16 %v2031_v1, %v2030_v54  ;;  %8548 = vmatpush3.bf16.msra.mxu1 %v11991_v36  ;;  %8613 = vmatprep.subr.bf16.mxu0 %v12001_v58 }
 0x49c   : > { %8597 = vmatprep.mubr.bf16.mxu0 %v12167_v30  ;;  %8549 = vmatprep.subr.bf16.mxu1 %v12001_v58 }
 0x49d   : > { %8598 = vmatmul.mubr.bf16.gmra.mrb[52].mxu0 %v12163_v57  ;;  %v8443_v3 = vpop.f32.mrb[72].mxu1  ;;  %8533 = vmatprep.mubr.bf16.mxu1 %v12170_v56 }
 0x49e   : > { %v2036_v60 = vsub.f32 %v12131_v55, %v8443_v3  ;;  %v8507_v35 = vpop.f32.mrb[40].mxu0  ;;  %8614 = vmatpush3.bf16.msra.mxu0 %v12001_v58  ;;  %v1995_v14 = vpop.f32.mrb[73].mxu1  ;;  %8534 = vmatmul.mubr.bf16.gmra.mrb[84].mxu1 %v12165_v42 }
 0x49f   : > { %v2034_v28 = vsub.f32 %v12133_v47, %v1995_v14  ;;  %v2205_v46 = vpop.f32.mrb[41].mxu0  ;;  %v8444_v23 = vpop.f32.mrb[74].mxu1  ;;  %8550 = vmatpush3.bf16.msra.mxu1 %v12001_v58  ;;  %8615 = vmatprep.subr.bf16.mxu0 %v12016_v0 }
 0x4a0   : > { %v2037_v15 = vsub.f32 %v12135_v26, %v8444_v23  ;;  %v8508_v54 = vpop.f32.mrb[42].mxu0  ;;  %v1998_v29 = vpop.f32.mrb[75].mxu1  ;;  %8551 = vmatprep.subr.bf16.mxu1 %v12016_v0 }
 0x4a1   : > { %v2281_v55 = vpack.c.bf16 %v8508_v54, %v8507_v35  ;;  %v2035_v40 = vsub.f32 %v12137_v63, %v1998_v29  ;;  %v2208_v41 = vpop.f32.mrb[43].mxu0 }
 0x4a2   : > { %v2273_v25 = vpack.c.bf16 %v2037_v15, %v2036_v60  ;;  %v2280_v4 = vpack.c.bf16 %v2208_v41, %v2205_v46  ;;  %8616 = vmatpush3.bf16.msra.mxu0 %v12016_v0 }
 0x4a3   : > { %v2272_v47 = vpack.c.bf16 %v2035_v40, %v2034_v28  ;;  %8552 = vmatpush3.bf16.msra.mxu1 %v12016_v0  ;;  %8617 = vmatprep.subr.bf16.mxu0 %v12027_v32 }
 0x4a4   : > { %8601 = vmatprep.mubr.bf16.mxu0 %v2280_v4  ;;  %8553 = vmatprep.subr.bf16.mxu1 %v12027_v32 }
 0x4a5   : > { %8602 = vmatmul.mubr.bf16.gmra.mrb[56].mxu0 %v2281_v55  ;;  %v8447_v26 = vpop.f32.mrb[76].mxu1  ;;  %8537 = vmatprep.mubr.bf16.mxu1 %v2272_v47 }
 0x4a6   : > { %v2040_v1 = vsub.f32 %v12139_v6, %v8447_v26  ;;  %v8511_v39 = vpop.f32.mrb[44].mxu0  ;;  %8618 = vmatpush3.bf16.msra.mxu0 %v12027_v32  ;;  %v2011_v63 = vpop.f32.mrb[77].mxu1  ;;  %8538 = vmatmul.mubr.bf16.gmra.mrb[88].mxu1 %v2273_v25  ;;  %v2238_v26 = vld [vmem:[#allocation16 + $0x10] sm:$0xff] }
 0x4a7   : > { %v2038_v3 = vsub.f32 %v12141_v45, %v2011_v63  ;;  %v2221_v60 = vpop.f32.mrb[45].mxu0  ;;  %v8448_v35 = vpop.f32.mrb[78].mxu1  ;;  %8554 = vmatpush3.bf16.msra.mxu1 %v12027_v32  ;;  %8619 = vmatprep.subr.bf16.mxu0 %v12042_v49  ;;  %v2252_v63 = vld [vmem:[#allocation18] sm:$0xff] }
 0x4a8   : > { %v2041_v14 = vsub.f32 %v12143_v24, %v8448_v35  ;;  %v8512_v28 = vpop.f32.mrb[46].mxu0  ;;  %v2014_v46 = vpop.f32.mrb[79].mxu1  ;;  %8555 = vmatprep.subr.bf16.mxu1 %v12042_v49  ;;  %v2239_v35 = vld [vmem:[#allocation16 + $0x18] sm:$0xff] }
 0x4a9   : > { %v2283_v6 = vpack.c.bf16 %v8512_v28, %v8511_v39  ;;  %v2039_v23 = vsub.f32 %v12145_v18, %v2014_v46  ;;  %v2224_v15 = vpop.f32.mrb[47].mxu0 }
 0x4aa   : > { %v2275_v54 = vpack.c.bf16 %v2041_v14, %v2040_v1  ;;  %v2282_v29 = vpack.c.bf16 %v2224_v15, %v2221_v60  ;;  %8620 = vmatpush3.bf16.msra.mxu0 %v12042_v49  ;;  %v2254_v1 = vld [vmem:[#allocation18 + $0x10] sm:$0xff]  ;;  %v2255_v14 = vld [vmem:[#allocation18 + $0x18] sm:$0xff] }
 0x4ab   : > { %v2274_v45 = vpack.c.bf16 %v2039_v23, %v2038_v3  ;;  %8556 = vmatpush3.bf16.msra.mxu1 %v12042_v49  ;;  %8621 = vmatprep.subr.bf16.mxu0 %v12053_v34  ;;  %v2236_v3 = vld [vmem:[#allocation16] sm:$0xff] }
 0x4ac   : > { %8605 = vmatprep.mubr.bf16.mxu0 %v2282_v29  ;;  %8557 = vmatprep.subr.bf16.mxu1 %v12053_v34 }
 0x4ad   : > { %8606 = vmatmul.mubr.bf16.gmra.mrb[60].mxu0 %v2283_v6  ;;  %8541 = vmatprep.mubr.bf16.mxu1 %v2274_v45 }
 0x4ae   : > { %8622 = vmatpush3.bf16.msra.mxu0 %v12053_v34  ;;  %8625 = vmatprep.mubr.bf16.mxu0 %v12153_v27 }
 0x4af   : > { %8542 = vmatmul.mubr.bf16.gmra.mrb[92].mxu1 %v2275_v54  ;;  %8623 = vmatprep.subr.bf16.mxu0 %v12068_v59 }
 0x4b0   : > { %8558 = vmatpush3.bf16.msra.mxu1 %v12053_v34  ;;  %8561 = vmatprep.mubr.bf16.mxu1 %v12151_v33 }
 0x4b1   : > { %8559 = vmatprep.subr.bf16.mxu1 %v12068_v59 }
 0x4b2   : > { %8624 = vmatpush3.bf16.msra.mxu0 %v12068_v59 }
 0x4b4   : > { %8560 = vmatpush3.bf16.msra.mxu1 %v12068_v59  ;;  %v2237_v59 = vld [vmem:[#allocation16 + $0x8] sm:$0xff] }
 0x4b5   : > { %8626 = vmatmul.mubr.bf16.vlgmr.msra.gmra.mrb[48].mxu0 %v12149_v53 }
 0x4b6   : > { %8629 = vmatprep.mubr.bf16.mxu0 %v12170_v56 }
 0x4b7   : > { %8562 = vmatmul.mubr.bf16.vlgmr.msra.gmra.mrb[96].mxu1 %v12147_v48 }
 0x4b8   : > { %8565 = vmatprep.mubr.bf16.mxu1 %v12167_v30 }
 0x4bd   : > { %8630 = vmatmul.mubr.bf16.gmra.mrb[52].mxu0 %v12165_v42 }
 0x4be   : > { %8633 = vmatprep.mubr.bf16.mxu0 %v2272_v47 }
 0x4bf   : > { %8566 = vmatmul.mubr.bf16.gmra.mrb[100].mxu1 %v12163_v57 }
 0x4c0   : > { %8569 = vmatprep.mubr.bf16.mxu1 %v2280_v4 }
 0x4c5   : > { %8634 = vmatmul.mubr.bf16.gmra.mrb[56].mxu0 %v2273_v25 }
 0x4c6   : > { %8637 = vmatprep.mubr.bf16.mxu0 %v2274_v45 }
 0x4c7   : > { %8570 = vmatmul.mubr.bf16.gmra.mrb[104].mxu1 %v2281_v55 }
 0x4c8   : > { %8573 = vmatprep.mubr.bf16.mxu1 %v2282_v29 }
 0x4cd   : > { %8638 = vmatmul.mubr.bf16.gmra.mrb[60].mxu0 %v2275_v54 }
 0x4cf   : > { %8574 = vmatmul.mubr.bf16.gmra.mrb[108].mxu1 %v2283_v6  ;;  %v2253_v6 = vld [vmem:[#allocation18 + $0x8] sm:$0xff] }
 0x569   : > { %v8531_v27 = vpop.f32.mrb[80].mxu1 }
 0x56a   : > { %v2318_v33 = vpop.f32.mrb[81].mxu1 }
 0x56b   : > { %v8532_v53 = vpop.f32.mrb[82].mxu1 }
 0x56c   : > { %v2321_v24 = vpop.f32.mrb[83].mxu1 }
 0x571   : > { %v12217_v18 = vpop.f32.mrb[84].mxu1 }
 0x572   : > { %v12219_v48 = vpop.f32.mrb[85].mxu1 }
 0x573   : > { %v12221_v30 = vpop.f32.mrb[86].mxu1 }
 0x574   : > { %v12223_v42 = vpop.f32.mrb[87].mxu1 }
 0x579   : > { %v12225_v57 = vpop.f32.mrb[88].mxu1 }
 0x57a   : > { %v12227_v56 = vpop.f32.mrb[89].mxu1 }
 0x57b   : > { %v12229_v55 = vpop.f32.mrb[90].mxu1 }
 0x57c   : > { %v12231_v40 = vpop.f32.mrb[91].mxu1 }
 0x582   : > { %v12233_v41 = vpop.f32.mrb[92].mxu1 }
 0x583   : > { %v12235_v25 = vpop.f32.mrb[93].mxu1 }
 0x584   : > { %v12237_v4 = vpop.f32.mrb[94].mxu1 }
 0x585   : > { %v12239_v47 = vpop.f32.mrb[95].mxu1 }
 0x588   : > { %v8627_v39 = vpop.f32.mrb[48].mxu0 }
 0x589   : > { %v2625_v60 = vpop.f32.mrb[49].mxu0  ;;  %v12241_v23 = vmul.f32 %v8627_v39, %v2254_v1  ;;  %v2754_v15 = vmul.f32 %v8627_v39, %v2238_v26 }
 0x58a   : > { %v8563_v28 = vpop.f32.mrb[96].mxu1  ;;  %v8628_v46 = vpop.f32.mrb[50].mxu0  ;;  %v12243_v54 = vmul.f32 %v2625_v60, %v2252_v63  ;;  %v2752_v49 = vmul.f32 %v2625_v60, %v2236_v3 }
 0x58b   : > { %14008 = vst [vmem:[#allocation80_spill] sm:$0xff] %v12241_v23  ;;  %v2480_v29 = vsub.f32 %v8531_v27, %v8563_v28  ;;  %v2415_v45 = vpop.f32.mrb[97].mxu1  ;;  %v2628_v34 = vpop.f32.mrb[51].mxu0  ;;  %v12245_v32 = vmul.f32 %v8628_v46, %v2255_v14  ;;  %v2755_v0 = vmul.f32 %v8628_v46, %v2239_v35 }
 0x58c   : > { %14009 = vst [vmem:[#allocation81_spill] sm:$0xff] %v12243_v54  ;;  %v2478_v58 = vsub.f32 %v2318_v33, %v2415_v45  ;;  %v8564_v36 = vpop.f32.mrb[98].mxu1  ;;  %v12249_v50 = vmul.f32 %v2628_v34, %v2253_v6  ;;  %v2753_v27 = vmul.f32 %v2628_v34, %v2237_v59 }
 0x58d   : > { %14010 = vst [vmem:[#allocation82_spill] sm:$0xff] %v12245_v32  ;;  %v12247_v62 = vmul.f32 %v2480_v29, %v2238_v26  ;;  %v2738_v52 = vmul.f32 %v2480_v29, %v2254_v1  ;;  %v2481_v44 = vsub.f32 %v8532_v53, %v8564_v36  ;;  %v2418_v43 = vpop.f32.mrb[99].mxu1  ;;  %v2241_v26 = vld [vmem:[#allocation16 + $0x28] sm:$0xff] }
 0x58e   : > { %14012 = vst [vmem:[#allocation84_spill] sm:$0xff] %v12249_v50  ;;  %v12251_v39 = vmul.f32 %v2478_v58, %v2236_v3  ;;  %v2736_v38 = vmul.f32 %v2478_v58, %v2252_v63  ;;  %v2479_v28 = vsub.f32 %v2321_v24, %v2418_v43  ;;  %v2242_v3 = vld [vmem:[#allocation16 + $0x30] sm:$0xff]  ;;  %v2256_v43 = vld [vmem:[#allocation18 + $0x20] sm:$0xff] }
 0x58f   : > { %14011 = vst [vmem:[#allocation83_spill] sm:$0xff] %v12247_v62  ;;  %v12255_v37 = vadd.f32 %v2754_v15, %v2738_v52   ;;  %v12257_v46 = vmul.f32 %v2481_v44, %v2239_v35  ;;  %v2739_v33 = vmul.f32 %v2481_v44, %v2255_v14  ;;  %v2258_v58 = vld [vmem:[#allocation18 + $0x30] sm:$0xff]  ;;  %v2240_v63 = vld [vmem:[#allocation16 + $0x20] sm:$0xff]  ;;  %v2243_v44 = vld [vmem:[#allocation16 + $0x38] sm:$0xff] }
 0x590   : > { %14013 = vst [vmem:[#allocation85_spill] sm:$0xff] %v12251_v39  ;;  %v12261_v1 = vadd.f32 %v2752_v49, %v2736_v38   ;;  %v12263_v36 = vmul.f32 %v2479_v28, %v2237_v59  ;;  %v2737_v53 = vmul.f32 %v2479_v28, %v2253_v6  ;;  %v8631_v34 = vpop.f32.mrb[52].mxu0  ;;  %v2259_v14 = vld [vmem:[#allocation18 + $0x38] sm:$0xff]  ;;  %v2257_v15 = vld [vmem:[#allocation18 + $0x28] sm:$0xff] }
 0x591   : > { %14014 = vst [vmem:[#allocation86_spill] sm:$0xff] %v12257_v46  ;;  %v12267_v52 = vadd.f32 %v2755_v0, %v2739_v33   ;;  %v2641_v35 = vpop.f32.mrb[53].mxu0  ;;  %v12273_v29 = vmul.f32 %v8631_v34, %v2258_v58  ;;  %v2758_v45 = vmul.f32 %v8631_v34, %v2242_v3 }
 0x592   : > { %14015 = vst [vmem:[#allocation87_spill] sm:$0xff] %v12263_v36  ;;  %v12271_v49 = vadd.f32 %v2753_v27, %v2737_v53   ;;  %v8567_v59 = vpop.f32.mrb[100].mxu1  ;;  %v8632_v6 = vpop.f32.mrb[54].mxu0  ;;  %v12275_v28 = vmul.f32 %v2641_v35, %v2256_v43  ;;  %v2756_v24 = vmul.f32 %v2641_v35, %v2240_v63 }
 0x593   : > { %v2484_v0 = vsub.f32 %v12217_v18, %v8567_v59  ;;  %v2431_v33 = vpop.f32.mrb[101].mxu1  ;;  %v2644_v60 = vpop.f32.mrb[55].mxu0  ;;  %v12278_v31 = vmul.f32 %v8632_v6, %v2259_v14  ;;  %v2759_v13 = vmul.f32 %v8632_v6, %v2243_v44  ;;  %v2245_v6 = vld [vmem:[#allocation16 + $0x48] sm:$0xff] }
 0x594   : > { %14016 = vst [vmem:[#allocation88_spill] sm:$0xff] %v12275_v28  ;;  %v2482_v27 = vsub.f32 %v12219_v48, %v2431_v33  ;;  %v8568_v53 = vpop.f32.mrb[102].mxu1  ;;  %v12283_v11 = vmul.f32 %v2644_v60, %v2257_v15  ;;  %v2757_v59 = vmul.f32 %v2644_v60, %v2241_v26  ;;  %v2262_v60 = vld [vmem:[#allocation18 + $0x50] sm:$0xff] }
 0x595   : > { %v12281_v38 = vmul.f32 %v2484_v0, %v2242_v3  ;;  %v2742_v12 = vmul.f32 %v2484_v0, %v2258_v58  ;;  %v2485_v34 = vsub.f32 %v12221_v30, %v8568_v53  ;;  %v2434_v10 = vpop.f32.mrb[103].mxu1 }
 0x596   : > { %v12286_v9 = vmul.f32 %v2482_v27, %v2240_v63  ;;  %v2740_v18 = vmul.f32 %v2482_v27, %v2256_v43  ;;  %v2483_v35 = vsub.f32 %v12223_v42, %v2434_v10  ;;  %v2246_v43 = vld [vmem:[#allocation16 + $0x50] sm:$0xff]  ;;  %v2260_v10 = vld [vmem:[#allocation18 + $0x40] sm:$0xff]  ;;  %v2263_v27 = vld [vmem:[#allocation18 + $0x58] sm:$0xff] }
 0x597   : > { %v12291_v8 = vadd.f32 %v2758_v45, %v2742_v12   ;;  %v12293_v48 = vmul.f32 %v2485_v34, %v2243_v44  ;;  %v2743_v3 = vmul.f32 %v2485_v34, %v2259_v14  ;;  %v2244_v44 = vld [vmem:[#allocation16 + $0x40] sm:$0xff]  ;;  %v2247_v14 = vld [vmem:[#allocation16 + $0x58] sm:$0xff]  ;;  %v2261_v34 = vld [vmem:[#allocation18 + $0x48] sm:$0xff] }
 0x598   : > { %v12297_v0 = vadd.f32 %v2756_v24, %v2740_v18   ;;  %v12299_v30 = vmul.f32 %v2483_v35, %v2241_v26  ;;  %v2741_v63 = vmul.f32 %v2483_v35, %v2257_v15  ;;  %v8635_v33 = vpop.f32.mrb[56].mxu0 }
 0x599   : > { %v12303_v12 = vadd.f32 %v2759_v13, %v2743_v3   ;;  %v2657_v45 = vpop.f32.mrb[57].mxu0  ;;  %v12309_v18 = vmul.f32 %v8635_v33, %v2262_v60  ;;  %v2762_v35 = vmul.f32 %v8635_v33, %v2246_v43 }
 0x59a   : > { %v12307_v53 = vadd.f32 %v2757_v59, %v2741_v63   ;;  %v8571_v26 = vpop.f32.mrb[104].mxu1  ;;  %v8636_v15 = vpop.f32.mrb[58].mxu0  ;;  %v12311_v58 = vmul.f32 %v2657_v45, %v2260_v10  ;;  %v2760_v7 = vmul.f32 %v2657_v45, %v2244_v44 }
 0x59b   : > { %v2488_v13 = vsub.f32 %v12225_v57, %v8571_v26  ;;  %v2447_v3 = vpop.f32.mrb[105].mxu1  ;;  %v2660_v42 = vpop.f32.mrb[59].mxu0  ;;  %v12314_v5 = vmul.f32 %v8636_v15, %v2263_v27  ;;  %v2763_v21 = vmul.f32 %v8636_v15, %v2247_v14 }
 0x59c   : > { %v2486_v59 = vsub.f32 %v12227_v56, %v2447_v3  ;;  %v8572_v63 = vpop.f32.mrb[106].mxu1  ;;  %v12319_v22 = vmul.f32 %v2660_v42, %v2261_v34  ;;  %v2761_v26 = vmul.f32 %v2660_v42, %v2245_v6  ;;  %v2264_v42 = vld [vmem:[#allocation18 + $0x60] sm:$0xff] }
 0x59d   : > { %v12317_v24 = vmul.f32 %v2488_v13, %v2246_v43  ;;  %v2746_v17 = vmul.f32 %v2488_v13, %v2262_v60  ;;  %v2489_v33 = vsub.f32 %v12229_v55, %v8572_v63  ;;  %v2450_v2 = vpop.f32.mrb[107].mxu1  ;;  %v2266_v63 = vld [vmem:[#allocation18 + $0x70] sm:$0xff] }
 0x59e   : > { %v12322_v16 = vmul.f32 %v2486_v59, %v2244_v44  ;;  %v2744_v57 = vmul.f32 %v2486_v59, %v2260_v10  ;;  %v2487_v45 = vsub.f32 %v12231_v40, %v2450_v2  ;;  %v2250_v44 = vld [vmem:[#allocation16 + $0x70] sm:$0xff]  ;;  %v2248_v59 = vld [vmem:[#allocation16 + $0x60] sm:$0xff] }
 0x59f   : > { %v2778_v19 = vadd.f32 %v2762_v35, %v2746_v17   ;;  %v12327_v56 = vmul.f32 %v2489_v33, %v2247_v14  ;;  %v2747_v43 = vmul.f32 %v2489_v33, %v2263_v27  ;;  %v2251_v14 = vld [vmem:[#allocation16 + $0x78] sm:$0xff] }
 0x5a0   : > { %v2776_v13 = vadd.f32 %v2760_v7, %v2744_v57   ;;  %v12331_v3 = vmul.f32 %v2487_v45, %v2245_v6  ;;  %v2745_v55 = vmul.f32 %v2487_v45, %v2261_v34  ;;  %v8639_v10 = vpop.f32.mrb[60].mxu0  ;;  %v2267_v35 = vld [vmem:[#allocation18 + $0x78] sm:$0xff]  ;;  %v2265_v57 = vld [vmem:[#allocation18 + $0x68] sm:$0xff] }
 0x5a1   : > { %v2779_v40 = vadd.f32 %v2763_v21, %v2747_v43   ;;  %v2673_v17 = vpop.f32.mrb[61].mxu0  ;;  %v2718_v34 = vmul.f32 %v8639_v10, %v2266_v63  ;;  %v2766_v45 = vmul.f32 %v8639_v10, %v2250_v44 }
 0x5a2   : > { %v2729_v27 = vsub.f32 %v12331_v3, %v12319_v22   ;;  %v2777_v33 = vadd.f32 %v2761_v26, %v2745_v55   ;;  %v8575_v7 = vpop.f32.mrb[108].mxu1  ;;  %v8640_v6 = vpop.f32.mrb[62].mxu0  ;;  %v2716_v60 = vmul.f32 %v2673_v17, %v2264_v42  ;;  %v2764_v21 = vmul.f32 %v2673_v17, %v2248_v59 }
 0x5a3   : > { %v2492_v15 = vsub.f32 %v12233_v41, %v8575_v7  ;;  %v2463_v61 = vpop.f32.mrb[109].mxu1  ;;  %v2676_v2 = vpop.f32.mrb[63].mxu0  ;;  %v2719_v43 = vmul.f32 %v8640_v6, %v2267_v35  ;;  %v2767_v20 = vmul.f32 %v8640_v6, %v2251_v14 }
 0x5a4   : > { %v2490_v54 = vsub.f32 %v12235_v25, %v2463_v61  ;;  %v8576_v39 = vpop.f32.mrb[110].mxu1  ;;  %v2717_v26 = vmul.f32 %v2676_v2, %v2265_v57  ;;  %v2765_v23 = vmul.f32 %v2676_v2, %v2249_v51 }
 0x5a5   : > { %v2702_v50 = vmul.f32 %v2492_v15, %v2250_v44  ;;  %v2750_v22 = vmul.f32 %v2492_v15, %v2266_v63  ;;  %v2493_v3 = vsub.f32 %v12237_v4, %v8576_v39  ;;  %v2466_v55 = vpop.f32.mrb[111].mxu1  ;;  %v14022_v4 = vsub.f32 %v12299_v30, %v12283_v11   ;;  %v14028_v39 = vld [vmem:[#allocation83_spill] sm:$0xff] }
 0x5a6   : > { %v2700_v36 = vmul.f32 %v2490_v54, %v2248_v59  ;;  %v2748_v10 = vmul.f32 %v2490_v54, %v2264_v42  ;;  %v2491_v41 = vsub.f32 %v12239_v47, %v2466_v55  ;;  %v14023_v47 = vld [vmem:[#allocation88_spill] sm:$0xff]  ;;  %v14026_v54 = vld [vmem:[#allocation82_spill] sm:$0xff] }
 0x5a7   : > { %v2734_v7 = vsub.f32 %v2702_v50, %v2718_v34   ;;  %v2782_v62 = vadd.f32 %v2766_v45, %v2750_v22   ;;  %v2703_v32 = vmul.f32 %v2493_v3, %v2251_v14  ;;  %v2751_v17 = vmul.f32 %v2493_v3, %v2267_v35 }
 0x5a8   : > { %v2732_v46 = vsub.f32 %v2700_v36, %v2716_v60   ;;  %v2780_v6 = vadd.f32 %v2764_v21, %v2748_v10   ;;  %v2701_v28 = vmul.f32 %v2491_v41, %v2249_v51  ;;  %v2749_v61 = vmul.f32 %v2491_v41, %v2265_v57  ;;  %v14029_v36 = vld [vmem:[#allocation80_spill] sm:$0xff] }
 0x5a9   : > { %v2735_v25 = vsub.f32 %v2703_v32, %v2719_v43   ;;  %v2783_v44 = vadd.f32 %v2767_v20, %v2751_v17   ;;  %v14017_v20 = vsub.f32 %v12327_v56, %v12314_v5   ;;  %v14018_v50 = vsub.f32 %v12317_v24, %v12309_v18  }
 0x5aa   : > { %v2733_v15 = vsub.f32 %v2701_v28, %v2717_v26   ;;  %v2781_v63 = vadd.f32 %v2765_v23, %v2749_v61   ;;  %v14019_v51 = vsub.f32 %v12322_v16, %v12311_v58   ;;  %v14020_v32 = vsub.f32 %v12293_v48, %v12278_v31   ;;  %v14025_v23 = vld [vmem:[#allocation86_spill] sm:$0xff]  ;;  %v14032_v28 = vld [vmem:[#allocation84_spill] sm:$0xff]  ;;  %v14034_v48 = vld [vmem:[#allocation85_spill] sm:$0xff] }
 0x5ab   : > { %v14021_v5 = vsub.f32 %v12281_v38, %v12273_v29   ;;  %v14024_v16 = vsub.f32 %v12286_v9, %v14023_v47   ;;  %v14027_v31 = vsub.f32 %v14025_v23, %v14026_v54   ;;  %v14030_v38 = vsub.f32 %v14028_v39, %v14029_v36   ;;  %v14031_v29 = vld [vmem:[#allocation87_spill] sm:$0xff]  ;;  %v14035_v58 = vld [vmem:[#allocation81_spill] sm:$0xff] }
 0x5ac   : > { %v14033_v11 = vsub.f32 %v14031_v29, %v14032_v28   ;;  %v14036_v9 = vsub.f32 %v14034_v48, %v14035_v58  }
 0x5ad LB: >> { %v12511_v30 = vld [vmem:[#allocation10] sm:$0xff]   ;;  %v2886_v18 = vpack.c.bf16 %v11117_v11, %v11121_v9  ;;  %v2887_v56 = vpack.c.bf16 %v11109_v31, %v11113_v38  ;;  %v2888_v60 = vpack.c.bf16 %v11101_v4, %v11105_v16  ;;  %v2889_v42 = vpack.c.bf16 %v11093_v32, %v11097_v5  ;;  %v12517_v57 = vld [vmem:[#allocation10 + $0x8] sm:$0xff]   ;;  %v12523_v45 = vld [vmem:[#allocation10 + $0x10] sm:$0xff]   ;;  %s14037_s24 = sld [smem:[#allocation90_spill]]  ;;  %s2789_s16 = sadd.s32 1, %s11125_s19   ;;  %s11125_s19 = sphi %s12446_s19, %s14107_s19   ;;  %v11121_v9 = vphi %v14036_v9, %v14106_v9   ;;  %v11117_v11 = vphi %v14033_v11, %v14105_v11   ;;  %v11113_v38 = vphi %v14030_v38, %v14104_v38   ;;  %v11109_v31 = vphi %v14027_v31, %v14103_v31   ;;  %v11105_v16 = vphi %v14024_v16, %v14102_v16   ;;  %v11101_v4 = vphi %v14022_v4, %v14101_v4   ;;  %v11097_v5 = vphi %v14021_v5, %v14100_v5   ;;  %v11093_v32 = vphi %v14020_v32, %v14099_v32   ;;  %v11089_v51 = vphi %v14019_v51, %v14098_v51   ;;  %v11085_v27 = vphi %v2729_v27, %v14097_v27   ;;  %v11081_v50 = vphi %v14018_v50, %v14096_v50   ;;  %v11077_v20 = vphi %v14017_v20, %v14095_v20   ;;  %v11073_v46 = vphi %v2732_v46, %v14094_v46   ;;  %v11069_v15 = vphi %v2733_v15, %v14093_v15   ;;  %v11065_v7 = vphi %v2734_v7, %v14092_v7   ;;  %v11061_v25 = vphi %v2735_v25, %v14091_v25   ;;  %v11057_v1 = vphi %v12261_v1, %v14090_v1   ;;  %v11053_v49 = vphi %v12271_v49, %v14089_v49   ;;  %v11049_v37 = vphi %v12255_v37, %v14088_v37   ;;  %v11045_v52 = vphi %v12267_v52, %v14087_v52   ;;  %v11041_v0 = vphi %v12297_v0, %v14086_v0   ;;  %v11037_v53 = vphi %v12307_v53, %v14085_v53   ;;  %v11033_v8 = vphi %v12291_v8, %v14084_v8   ;;  %v11029_v12 = vphi %v12303_v12, %v14083_v12   ;;  %v11025_v13 = vphi %v2776_v13, %v14082_v13   ;;  %v11021_v33 = vphi %v2777_v33, %v14081_v33   ;;  %v11017_v19 = vphi %v2778_v19, %v14080_v19   ;;  %v11013_v40 = vphi %v2779_v40, %v14079_v40   ;;  %v11009_v6 = vphi %v2780_v6, %v14078_v6   ;;  %v11005_v63 = vphi %v2781_v63, %v14077_v63   ;;  %v11001_v62 = vphi %v2782_v62, %v14076_v62   ;;  %v10997_v44 = vphi %v2783_v44, %v14075_v44  }
 0x5ae   : >> { %v12513_v24 = vld [vmem:[#allocation12] sm:$0xff]   ;;  %8657 = vmatprep.mubr.bf16.mxu1 %v12511_v30  ;;  %v2890_v2 = vpack.c.bf16 %v11085_v27, %v11089_v51  ;;  %v2891_v59 = vpack.c.bf16 %v11077_v20, %v11081_v50  ;;  %v2892_v14 = vpack.c.bf16 %v11069_v15, %v11073_v46  ;;  %v2893_v35 = vpack.c.bf16 %v11061_v25, %v11065_v7  ;;  %v12519_v34 = vld [vmem:[#allocation12 + $0x8] sm:$0xff]   ;;  %v12525_v21 = vld [vmem:[#allocation12 + $0x10] sm:$0xff]   ;;  %p13131_p9 = scmp.ge.s32.totalorder %s2789_s16, 5  }
 0x5af   : >> { %8721 = vmatprep.mubr.bf16.mxu0 %v12513_v24  ;;  %8641 = vmatprep.subr.bf16.mxu1 %v2886_v18  ;;  %v2894_v27 = vpack.c.bf16 %v11053_v49, %v11057_v1  ;;  %v2895_v46 = vpack.c.bf16 %v11045_v52, %v11049_v37  ;;  %v2896_v1 = vpack.c.bf16 %v11037_v53, %v11041_v0  ;;  %v12533_v37 = vld [vmem:[#allocation10 + $0x18] sm:$0xff]   ;;  %v12539_v43 = vld [vmem:[#allocation10 + $0x20] sm:$0xff]   ;;  %v12555_v26 = vld [vmem:[#allocation10 + $0x30] sm:$0xff]  }
 0x5b0   : >> { %8705 = vmatprep.subr.bf16.mxu0 %v2886_v18  ;;  %8642 = vmatpush3.bf16.msra.mxu1 %v2886_v18  ;;  %v12535_v52 = vld [vmem:[#allocation12 + $0x18] sm:$0xff]   ;;  %v2897_v49 = vpack.c.bf16 %v11029_v12, %v11033_v8  ;;  %v12541_v22 = vld [vmem:[#allocation12 + $0x20] sm:$0xff]   ;;  %v2898_v0 = vpack.c.bf16 %v11021_v33, %v11025_v13  ;;  %v12549_v8 = vld [vmem:[#allocation10 + $0x28] sm:$0xff]   ;;  %v2899_v53 = vpack.c.bf16 %v11013_v40, %v11017_v19 }
 0x5b1   : >> { %8706 = vmatpush3.bf16.msra.mxu0 %v2886_v18  ;;  %8643 = vmatprep.subr.bf16.mxu1 %v2887_v56  ;;  %v12551_v12 = vld [vmem:[#allocation12 + $0x28] sm:$0xff]   ;;  %v12557_v3 = vld [vmem:[#allocation12 + $0x30] sm:$0xff]   ;;  %v2900_v13 = vpack.c.bf16 %v11005_v63, %v11009_v6  ;;  %v12565_v19 = vld [vmem:[#allocation10 + $0x38] sm:$0xff]   ;;  %v2901_v33 = vpack.c.bf16 %v10997_v44, %v11001_v62 }
 0x5b2   : >> { %8707 = vmatprep.subr.bf16.mxu0 %v2887_v56  ;;  %v12567_v40 = vld [vmem:[#allocation12 + $0x38] sm:$0xff]  }
 0x5b4   : >> { %8644 = vmatpush3.bf16.msra.mxu1 %v2887_v56 }
 0x5b5   : >> { %8708 = vmatpush3.bf16.msra.mxu0 %v2887_v56  ;;  %8645 = vmatprep.subr.bf16.mxu1 %v2888_v60 }
 0x5b6   : >> { %8709 = vmatprep.subr.bf16.mxu0 %v2888_v60 }
 0x5b8   : >> { %8646 = vmatpush3.bf16.msra.mxu1 %v2888_v60 }
 0x5b9   : >> { %8710 = vmatpush3.bf16.msra.mxu0 %v2888_v60  ;;  %8647 = vmatprep.subr.bf16.mxu1 %v2889_v42 }
 0x5ba   : >> { %8711 = vmatprep.subr.bf16.mxu0 %v2889_v42 }
 0x5bc   : >> { %8648 = vmatpush3.bf16.msra.mxu1 %v2889_v42 }
 0x5bd   : >> { %8712 = vmatpush3.bf16.msra.mxu0 %v2889_v42  ;;  %8649 = vmatprep.subr.bf16.mxu1 %v2890_v2 }
 0x5be   : >> { %8713 = vmatprep.subr.bf16.mxu0 %v2890_v2 }
 0x5c0   : >> { %8650 = vmatpush3.bf16.msra.mxu1 %v2890_v2 }
 0x5c1   : >> { %8714 = vmatpush3.bf16.msra.mxu0 %v2890_v2  ;;  %8651 = vmatprep.subr.bf16.mxu1 %v2891_v59 }
 0x5c2   : >> { %8715 = vmatprep.subr.bf16.mxu0 %v2891_v59 }
 0x5c4   : >> { %8652 = vmatpush3.bf16.msra.mxu1 %v2891_v59 }
 0x5c5   : >> { %8716 = vmatpush3.bf16.msra.mxu0 %v2891_v59  ;;  %8653 = vmatprep.subr.bf16.mxu1 %v2892_v14 }
 0x5c6   : >> { %8717 = vmatprep.subr.bf16.mxu0 %v2892_v14 }
 0x5c8   : >> { %8654 = vmatpush3.bf16.msra.mxu1 %v2892_v14 }
 0x5c9   : >> { %8718 = vmatpush3.bf16.msra.mxu0 %v2892_v14  ;;  %8655 = vmatprep.subr.bf16.mxu1 %v2893_v35 }
 0x5ca   : >> { %8719 = vmatprep.subr.bf16.mxu0 %v2893_v35 }
 0x5cc   : >> { %8656 = vmatpush3.bf16.msra.mxu1 %v2893_v35 }
 0x5cd   : >> { %8720 = vmatpush3.bf16.msra.mxu0 %v2893_v35  ;;  %8673 = vmatprep.subr.bf16.mxu1 %v2894_v27 }
 0x5ce   : >> { %8737 = vmatprep.subr.bf16.mxu0 %v2894_v27 }
 0x5cf   : >> { %8658 = vmatmul.mubr.bf16.vlgmr.msra.gmra.mrb[0].mxu1 %v12517_v57 }
 0x5d0   : >> { %8722 = vmatmul.mubr.bf16.vlgmr.msra.gmra.mrb[0].mxu0 %v12519_v34  ;;  %8674 = vmatpush3.bf16.msra.mxu1 %v2894_v27 }
 0x5d1   : >> { %8738 = vmatpush3.bf16.msra.mxu0 %v2894_v27  ;;  %8675 = vmatprep.subr.bf16.mxu1 %v2895_v46 }
 0x5d2   : >> { %8739 = vmatprep.subr.bf16.mxu0 %v2895_v46  ;;  %8661 = vmatprep.mubr.bf16.mxu1 %v12523_v45 }
 0x5d3   : >> { %8725 = vmatprep.mubr.bf16.mxu0 %v12525_v21 }
 0x5d4   : >> { %8676 = vmatpush3.bf16.msra.mxu1 %v2895_v46 }
 0x5d5   : >> { %8740 = vmatpush3.bf16.msra.mxu0 %v2895_v46  ;;  %8677 = vmatprep.subr.bf16.mxu1 %v2896_v1 }
 0x5d6   : >> { %8741 = vmatprep.subr.bf16.mxu0 %v2896_v1 }
 0x5d7   : >> { %8662 = vmatmul.mubr.bf16.gmra.mrb[4].mxu1 %v12533_v37 }
 0x5d8   : >> { %8726 = vmatmul.mubr.bf16.gmra.mrb[4].mxu0 %v12535_v52  ;;  %8678 = vmatpush3.bf16.msra.mxu1 %v2896_v1 }
 0x5d9   : >> { %8742 = vmatpush3.bf16.msra.mxu0 %v2896_v1  ;;  %8679 = vmatprep.subr.bf16.mxu1 %v2897_v49 }
 0x5da   : >> { %8743 = vmatprep.subr.bf16.mxu0 %v2897_v49  ;;  %8665 = vmatprep.mubr.bf16.mxu1 %v12539_v43 }
 0x5db   : >> { %8729 = vmatprep.mubr.bf16.mxu0 %v12541_v22 }
 0x5dc   : >> { %8680 = vmatpush3.bf16.msra.mxu1 %v2897_v49 }
 0x5dd   : >> { %8744 = vmatpush3.bf16.msra.mxu0 %v2897_v49  ;;  %8681 = vmatprep.subr.bf16.mxu1 %v2898_v0 }
 0x5de   : >> { %8745 = vmatprep.subr.bf16.mxu0 %v2898_v0 }
 0x5df   : >> { %8666 = vmatmul.mubr.bf16.gmra.mrb[8].mxu1 %v12549_v8 }
 0x5e0   : >> { %8730 = vmatmul.mubr.bf16.gmra.mrb[8].mxu0 %v12551_v12  ;;  %8682 = vmatpush3.bf16.msra.mxu1 %v2898_v0 }
 0x5e1   : >> { %8746 = vmatpush3.bf16.msra.mxu0 %v2898_v0  ;;  %8683 = vmatprep.subr.bf16.mxu1 %v2899_v53 }
 0x5e2   : >> { %8747 = vmatprep.subr.bf16.mxu0 %v2899_v53  ;;  %8669 = vmatprep.mubr.bf16.mxu1 %v12555_v26 }
 0x5e3   : >> { %8733 = vmatprep.mubr.bf16.mxu0 %v12557_v3 }
 0x5e4   : >> { %8684 = vmatpush3.bf16.msra.mxu1 %v2899_v53 }
 0x5e5   : >> { %8748 = vmatpush3.bf16.msra.mxu0 %v2899_v53  ;;  %8685 = vmatprep.subr.bf16.mxu1 %v2900_v13 }
 0x5e6   : >> { %8749 = vmatprep.subr.bf16.mxu0 %v2900_v13 }
 0x5e7   : >> { %8670 = vmatmul.mubr.bf16.gmra.mrb[12].mxu1 %v12565_v19 }
 0x5e8   : >> { %8734 = vmatmul.mubr.bf16.gmra.mrb[12].mxu0 %v12567_v40  ;;  %8686 = vmatpush3.bf16.msra.mxu1 %v2900_v13 }
 0x5e9   : >> { %8750 = vmatpush3.bf16.msra.mxu0 %v2900_v13  ;;  %8687 = vmatprep.subr.bf16.mxu1 %v2901_v33 }
 0x5ea   : >> { %8751 = vmatprep.subr.bf16.mxu0 %v2901_v33  ;;  %8689 = vmatprep.mubr.bf16.mxu1 %v12513_v24 }
 0x5eb   : >> { %8753 = vmatprep.mubr.bf16.mxu0 %v12511_v30 }
 0x5ec   : >> { %8688 = vmatpush3.bf16.msra.mxu1 %v2901_v33 }
 0x5ed   : >> { %8752 = vmatpush3.bf16.msra.mxu0 %v2901_v33  ;;  %8769 = vmatprep.subr.bf16.mxu1 %v12511_v30 }
 0x5ee   : >> { %8833 = vmatprep.subr.bf16.mxu0 %v12511_v30 }
 0x5ef   : >> { %8690 = vmatmul.mubr.bf16.vlgmr.msra.gmra.mrb[16].mxu1 %v12519_v34 }
 0x5f0   : >> { %8754 = vmatmul.mubr.bf16.vlgmr.msra.gmra.mrb[0].mxu0 %v12517_v57  ;;  %8693 = vmatprep.mubr.bf16.mxu1 %v12525_v21 }
 0x5f1   : >> { %8757 = vmatprep.mubr.bf16.mxu0 %v12523_v45  ;;  %8834 = vmatpush3.bf16.msra.mxu0 %v12511_v30 }
 0x5f2   : >> { %8770 = vmatpush3.bf16.msra.mxu1 %v12511_v30  ;;  %8835 = vmatprep.subr.bf16.mxu0 %v12517_v57 }
 0x5f3   : >> { %8771 = vmatprep.subr.bf16.mxu1 %v12517_v57 }
 0x5f5   : >> { %8836 = vmatpush3.bf16.msra.mxu0 %v12517_v57 }
 0x5f6   : >> { %8772 = vmatpush3.bf16.msra.mxu1 %v12517_v57  ;;  %8837 = vmatprep.subr.bf16.mxu0 %v12523_v45 }
 0x5f7   : >> { %8773 = vmatprep.subr.bf16.mxu1 %v12523_v45  ;;  %8694 = vmatmul.mubr.bf16.gmra.mrb[20].mxu1 %v12535_v52 }
 0x5f8   : >> { %8758 = vmatmul.mubr.bf16.gmra.mrb[4].mxu0 %v12533_v37  ;;  %8697 = vmatprep.mubr.bf16.mxu1 %v12541_v22 }
 0x5f9   : >> { %8761 = vmatprep.mubr.bf16.mxu0 %v12539_v43  ;;  %8838 = vmatpush3.bf16.msra.mxu0 %v12523_v45 }
 0x5fa   : >> { %8774 = vmatpush3.bf16.msra.mxu1 %v12523_v45  ;;  %8839 = vmatprep.subr.bf16.mxu0 %v12533_v37 }
 0x5fb   : >> { %8775 = vmatprep.subr.bf16.mxu1 %v12533_v37 }
 0x5fd   : >> { %8840 = vmatpush3.bf16.msra.mxu0 %v12533_v37 }
 0x5fe   : >> { %8776 = vmatpush3.bf16.msra.mxu1 %v12533_v37  ;;  %8841 = vmatprep.subr.bf16.mxu0 %v12539_v43 }
 0x5ff   : >> { %8777 = vmatprep.subr.bf16.mxu1 %v12539_v43  ;;  %8698 = vmatmul.mubr.bf16.gmra.mrb[24].mxu1 %v12551_v12 }
 0x600   : >> { %8762 = vmatmul.mubr.bf16.gmra.mrb[8].mxu0 %v12549_v8  ;;  %8701 = vmatprep.mubr.bf16.mxu1 %v12557_v3 }
 0x601   : >> { %8765 = vmatprep.mubr.bf16.mxu0 %v12555_v26  ;;  %8842 = vmatpush3.bf16.msra.mxu0 %v12539_v43 }
 0x602   : >> { %8778 = vmatpush3.bf16.msra.mxu1 %v12539_v43  ;;  %8843 = vmatprep.subr.bf16.mxu0 %v12549_v8 }
 0x603   : >> { %8779 = vmatprep.subr.bf16.mxu1 %v12549_v8 }
 0x605   : >> { %8844 = vmatpush3.bf16.msra.mxu0 %v12549_v8 }
 0x606   : >> { %8780 = vmatpush3.bf16.msra.mxu1 %v12549_v8  ;;  %8845 = vmatprep.subr.bf16.mxu0 %v12555_v26 }
 0x607   : >> { %8781 = vmatprep.subr.bf16.mxu1 %v12555_v26  ;;  %8702 = vmatmul.mubr.bf16.gmra.mrb[28].mxu1 %v12567_v40 }
 0x608   : >> { %8766 = vmatmul.mubr.bf16.gmra.mrb[12].mxu0 %v12565_v19 }
 0x609   : >> { %8846 = vmatpush3.bf16.msra.mxu0 %v12555_v26 }
 0x60a   : >> { %8782 = vmatpush3.bf16.msra.mxu1 %v12555_v26  ;;  %8847 = vmatprep.subr.bf16.mxu0 %v12565_v19 }
 0x60b   : >> { %8783 = vmatprep.subr.bf16.mxu1 %v12565_v19 }
 0x60d   : >> { %8848 = vmatpush3.bf16.msra.mxu0 %v12565_v19 }
 0x60e   : >> { %8784 = vmatpush3.bf16.msra.mxu1 %v12565_v19  ;;  %8865 = vmatprep.subr.bf16.mxu0 %v12513_v24 }
 0x60f   : >> { %8801 = vmatprep.subr.bf16.mxu1 %v12513_v24 }
 0x6a2   : >> { %v8659_v62 = vpop.f32.mrb[0].mxu1 }
 0x6a3   : >> { %v2984_v55 = vpop.f32.mrb[1].mxu1 }
 0x6a4   : >> { %v8660_v10 = vpop.f32.mrb[2].mxu1 }
 0x6a5   : >> { %v2987_v41 = vpop.f32.mrb[3].mxu1 }
 0x6aa   : >> { %v8663_v7 = vpop.f32.mrb[4].mxu1 }
 0x6ab   : >> { %v3000_v17 = vpop.f32.mrb[5].mxu1 }
 0x6ac   : >> { %v8664_v6 = vpop.f32.mrb[6].mxu1 }
 0x6ad   : >> { %v3003_v61 = vpop.f32.mrb[7].mxu1 }
 0x6b2   : >> { %v12623_v25 = vpop.f32.mrb[8].mxu1 }
 0x6b3   : >> { %v12625_v44 = vpop.f32.mrb[9].mxu1 }
 0x6b4   : >> { %v12627_v15 = vpop.f32.mrb[10].mxu1 }
 0x6b5   : >> { %v12629_v63 = vpop.f32.mrb[11].mxu1 }
 0x6ba   : >> { %v12631_v20 = vpop.f32.mrb[12].mxu1 }
 0x6bb   : >> { %v12633_v50 = vpop.f32.mrb[13].mxu1 }
 0x6bc   : >> { %v12635_v51 = vpop.f32.mrb[14].mxu1 }
 0x6bd   : >> { %v12637_v32 = vpop.f32.mrb[15].mxu1 }
 0x6c2   : >> { %v8691_v5 = vpop.f32.mrb[16].mxu1 }
 0x6c3   : >> { %v8755_v4 = vpop.f32.mrb[0].mxu0  ;;  %v3194_v47 = vsub.f32 %v8659_v62, %v8691_v5  ;;  %v3129_v16 = vpop.f32.mrb[17].mxu1 }
 0x6c4   : >> { %v3339_v23 = vpop.f32.mrb[1].mxu0  ;;  %v3192_v54 = vsub.f32 %v2984_v55, %v3129_v16  ;;  %v8692_v31 = vpop.f32.mrb[18].mxu1 }
 0x6c5   : >> { %v8756_v39 = vpop.f32.mrb[2].mxu0  ;;  %v3195_v36 = vsub.f32 %v8660_v10, %v8692_v31  ;;  %v3132_v29 = vpop.f32.mrb[19].mxu1 }
 0x6c6   : >> { %v12639_v38 = vpack.c.bf16 %v8756_v39, %v8755_v4  ;;  %v3342_v28 = vpop.f32.mrb[3].mxu0  ;;  %v3193_v11 = vsub.f32 %v2987_v41, %v3132_v29 }
 0x6c7   : >> { %v12641_v48 = vpack.c.bf16 %v3342_v28, %v3339_v23  ;;  %v12643_v58 = vpack.c.bf16 %v3195_v36, %v3194_v47 }
 0x6c8   : >> { %v12645_v9 = vpack.c.bf16 %v3193_v11, %v3192_v54 }
 0x6c9   : >> { %8849 = vmatprep.mubr.bf16.mxu0 %v12641_v48 }
 0x6ca   : >> { %8850 = vmatmul.mubr.bf16.vlgmr.msra.gmra.mrb[16].mxu0 %v12639_v38  ;;  %v8695_v18 = vpop.f32.mrb[20].mxu1  ;;  %8785 = vmatprep.mubr.bf16.mxu1 %v12645_v9 }
 0x6cb   : >> { %v8759_v56 = vpop.f32.mrb[4].mxu0  ;;  %8866 = vmatpush3.bf16.msra.mxu0 %v12513_v24  ;;  %v3198_v60 = vsub.f32 %v8663_v7, %v8695_v18  ;;  %v3145_v42 = vpop.f32.mrb[21].mxu1  ;;  %8786 = vmatmul.mubr.bf16.vlgmr.msra.gmra.mrb[32].mxu1 %v12643_v58 }
 0x6cc   : >> { %v3355_v2 = vpop.f32.mrb[5].mxu0  ;;  %8867 = vmatprep.subr.bf16.mxu0 %v12519_v34  ;;  %v3196_v59 = vsub.f32 %v3000_v17, %v3145_v42  ;;  %v8696_v14 = vpop.f32.mrb[22].mxu1  ;;  %8802 = vmatpush3.bf16.msra.mxu1 %v12513_v24 }
 0x6cd   : >> { %v8760_v35 = vpop.f32.mrb[6].mxu0  ;;  %v3199_v27 = vsub.f32 %v8664_v6, %v8696_v14  ;;  %v3148_v46 = vpop.f32.mrb[23].mxu1  ;;  %8803 = vmatprep.subr.bf16.mxu1 %v12519_v34 }
 0x6ce   : >> { %v12654_v57 = vpack.c.bf16 %v8760_v35, %v8759_v56  ;;  %v3358_v45 = vpop.f32.mrb[7].mxu0  ;;  %v3197_v1 = vsub.f32 %v3003_v61, %v3148_v46  ;;  %v2870_v35 = vld [vmem:[#allocation15] sm:$0xff]  ;;  %v2857_v46 = vld [vmem:[#allocation13 + $0x18] sm:$0xff] }
 0x6cf   : >> { %v12657_v37 = vpack.c.bf16 %v3358_v45, %v3355_v2  ;;  %8868 = vmatpush3.bf16.msra.mxu0 %v12519_v34  ;;  %v12660_v49 = vpack.c.bf16 %v3199_v27, %v3198_v60  ;;  %v2856_v2 = vld [vmem:[#allocation13 + $0x10] sm:$0xff]  ;;  %v2854_v27 = vld [vmem:[#allocation13] sm:$0xff]  ;;  %v2873_v45 = vld [vmem:[#allocation15 + $0x18] sm:$0xff] }
 0x6d0   : >> { %8869 = vmatprep.subr.bf16.mxu0 %v12525_v21  ;;  %v12663_v43 = vpack.c.bf16 %v3197_v1, %v3196_v59  ;;  %8804 = vmatpush3.bf16.msra.mxu1 %v12519_v34  ;;  %v2872_v59 = vld [vmem:[#allocation15 + $0x10] sm:$0xff] }
 0x6d1   : >> { %8853 = vmatprep.mubr.bf16.mxu0 %v12657_v37  ;;  %8805 = vmatprep.subr.bf16.mxu1 %v12525_v21 }
 0x6d2   : >> { %8854 = vmatmul.mubr.bf16.gmra.mrb[20].mxu0 %v12654_v57  ;;  %v8699_v24 = vpop.f32.mrb[24].mxu1  ;;  %8789 = vmatprep.mubr.bf16.mxu1 %v12663_v43 }
 0x6d3   : >> { %v8763_v0 = vpop.f32.mrb[8].mxu0  ;;  %8870 = vmatpush3.bf16.msra.mxu0 %v12525_v21  ;;  %v3202_v53 = vsub.f32 %v12623_v25, %v8699_v24  ;;  %v3161_v13 = vpop.f32.mrb[25].mxu1  ;;  %8790 = vmatmul.mubr.bf16.gmra.mrb[36].mxu1 %v12660_v49 }
 0x6d4   : >> { %v3371_v33 = vpop.f32.mrb[9].mxu0  ;;  %8871 = vmatprep.subr.bf16.mxu0 %v12535_v52  ;;  %v3200_v34 = vsub.f32 %v12625_v44, %v3161_v13  ;;  %v8700_v62 = vpop.f32.mrb[26].mxu1  ;;  %8806 = vmatpush3.bf16.msra.mxu1 %v12525_v21 }
 0x6d5   : >> { %v8764_v55 = vpop.f32.mrb[10].mxu0  ;;  %v3203_v10 = vsub.f32 %v12627_v15, %v8700_v62  ;;  %v3164_v7 = vpop.f32.mrb[27].mxu1  ;;  %8807 = vmatprep.subr.bf16.mxu1 %v12535_v52 }
 0x6d6   : >> { %v3415_v41 = vpack.c.bf16 %v8764_v55, %v8763_v0  ;;  %v3374_v17 = vpop.f32.mrb[11].mxu0  ;;  %v3201_v6 = vsub.f32 %v12629_v63, %v3164_v7 }
 0x6d7   : >> { %v3414_v61 = vpack.c.bf16 %v3374_v17, %v3371_v33  ;;  %8872 = vmatpush3.bf16.msra.mxu0 %v12535_v52  ;;  %v3407_v25 = vpack.c.bf16 %v3203_v10, %v3202_v53  ;;  %v2855_v33 = vld [vmem:[#allocation13 + $0x8] sm:$0xff] }
 0x6d8   : >> { %8873 = vmatprep.subr.bf16.mxu0 %v12541_v22  ;;  %v3406_v44 = vpack.c.bf16 %v3201_v6, %v3200_v34  ;;  %8808 = vmatpush3.bf16.msra.mxu1 %v12535_v52 }
 0x6d9   : >> { %8857 = vmatprep.mubr.bf16.mxu0 %v3414_v61  ;;  %8809 = vmatprep.subr.bf16.mxu1 %v12541_v22 }
 0x6da   : >> { %8858 = vmatmul.mubr.bf16.gmra.mrb[24].mxu0 %v3415_v41  ;;  %v8703_v21 = vpop.f32.mrb[28].mxu1  ;;  %8793 = vmatprep.mubr.bf16.mxu1 %v3406_v44 }
 0x6db   : >> { %v8767_v15 = vpop.f32.mrb[12].mxu0  ;;  %8874 = vmatpush3.bf16.msra.mxu0 %v12541_v22  ;;  %v3206_v63 = vsub.f32 %v12631_v20, %v8703_v21  ;;  %v3177_v5 = vpop.f32.mrb[29].mxu1  ;;  %8794 = vmatmul.mubr.bf16.gmra.mrb[40].mxu1 %v3407_v25 }
 0x6dc   : >> { %v3387_v4 = vpop.f32.mrb[13].mxu0  ;;  %8875 = vmatprep.subr.bf16.mxu0 %v12551_v12  ;;  %v3204_v47 = vsub.f32 %v12633_v50, %v3177_v5  ;;  %v8704_v16 = vpop.f32.mrb[30].mxu1  ;;  %8810 = vmatpush3.bf16.msra.mxu1 %v12541_v22  ;;  %v12713_v22 = vld [vmem:[%s14037_s24] sm:$0xff]  }
 0x6dd   : >> { %v8768_v52 = vpop.f32.mrb[14].mxu0  ;;  %v3207_v23 = vsub.f32 %v12635_v51, %v8704_v16  ;;  %v3180_v31 = vpop.f32.mrb[31].mxu1  ;;  %8811 = vmatprep.subr.bf16.mxu1 %v12551_v12 }
 0x6de   : >> { %v3417_v54 = vpack.c.bf16 %v8768_v52, %v8767_v15  ;;  %v3390_v39 = vpop.f32.mrb[15].mxu0  ;;  %v3205_v20 = vsub.f32 %v12637_v32, %v3180_v31 }
 0x6df   : >> { %v3416_v36 = vpack.c.bf16 %v3390_v39, %v3387_v4  ;;  %8876 = vmatpush3.bf16.msra.mxu0 %v12551_v12  ;;  %v3409_v29 = vpack.c.bf16 %v3207_v23, %v3206_v63  ;;  %v2860_v23 = vld [vmem:[#allocation13 + $0x30] sm:$0xff] }
 0x6e0   : >> { %8877 = vmatprep.subr.bf16.mxu0 %v12557_v3  ;;  %v3408_v50 = vpack.c.bf16 %v3205_v20, %v3204_v47  ;;  %8812 = vmatpush3.bf16.msra.mxu1 %v12551_v12 }
 0x6e1   : >> { %8861 = vmatprep.mubr.bf16.mxu0 %v3416_v36  ;;  %8813 = vmatprep.subr.bf16.mxu1 %v12557_v3 }
 0x6e2   : >> { %8862 = vmatmul.mubr.bf16.gmra.mrb[28].mxu0 %v3417_v54  ;;  %8797 = vmatprep.mubr.bf16.mxu1 %v3408_v50 }
 0x6e3   : >> { %8878 = vmatpush3.bf16.msra.mxu0 %v12557_v3  ;;  %8881 = vmatprep.mubr.bf16.mxu0 %v12645_v9 }
 0x6e4   : >> { %8798 = vmatmul.mubr.bf16.gmra.mrb[44].mxu1 %v3409_v29  ;;  %8879 = vmatprep.subr.bf16.mxu0 %v12567_v40 }
 0x6e5   : >> { %8814 = vmatpush3.bf16.msra.mxu1 %v12557_v3  ;;  %8817 = vmatprep.mubr.bf16.mxu1 %v12641_v48 }
 0x6e6   : >> { %8815 = vmatprep.subr.bf16.mxu1 %v12567_v40 }
 0x6e7   : >> { %8880 = vmatpush3.bf16.msra.mxu0 %v12567_v40 }
 0x6e9   : >> { %8816 = vmatpush3.bf16.msra.mxu1 %v12567_v40 }
 0x6ea   : >> { %8882 = vmatmul.mubr.bf16.vlgmr.msra.gmra.mrb[16].mxu0 %v12643_v58 }
 0x6eb   : >> { %8885 = vmatprep.mubr.bf16.mxu0 %v12663_v43 }
 0x6ec   : >> { %8818 = vmatmul.mubr.bf16.vlgmr.msra.gmra.mrb[48].mxu1 %v12639_v38 }
 0x6ed   : >> { %8821 = vmatprep.mubr.bf16.mxu1 %v12657_v37 }
 0x6f2   : >> { %8886 = vmatmul.mubr.bf16.gmra.mrb[20].mxu0 %v12660_v49  ;;  %v2871_v49 = vld [vmem:[#allocation15 + $0x8] sm:$0xff] }
 0x6f3   : >> { %8889 = vmatprep.mubr.bf16.mxu0 %v3406_v44 }
 0x6f4   : >> { %8822 = vmatmul.mubr.bf16.gmra.mrb[52].mxu1 %v12654_v57 }
 0x6f5   : >> { %8825 = vmatprep.mubr.bf16.mxu1 %v3414_v61 }
 0x6fa   : >> { %8890 = vmatmul.mubr.bf16.gmra.mrb[24].mxu0 %v3407_v25 }
 0x6fb   : >> { %8893 = vmatprep.mubr.bf16.mxu0 %v3408_v50  ;;  %v2874_v50 = vld [vmem:[#allocation15 + $0x20] sm:$0xff] }
 0x6fc   : >> { %8826 = vmatmul.mubr.bf16.gmra.mrb[56].mxu1 %v3415_v41 }
 0x6fd   : >> { %8829 = vmatprep.mubr.bf16.mxu1 %v3416_v36 }
 0x702   : >> { %8894 = vmatmul.mubr.bf16.gmra.mrb[28].mxu0 %v3409_v29 }
 0x703   : >> { %8977 = vmatprep.mubr.bf16.mxu0 %v12713_v22 }
 0x704   : >> { %8830 = vmatmul.mubr.bf16.gmra.mrb[60].mxu1 %v3417_v54  ;;  %v2876_v54 = vld [vmem:[#allocation15 + $0x30] sm:$0xff] }
 0x705   : >> { %8913 = vmatprep.mubr.bf16.mxu1 %v12511_v30 }
 0x79e   : >> { %v8787_v12 = vpop.f32.mrb[32].mxu1 }
 0x79f   : >> { %v3452_v3 = vpop.f32.mrb[33].mxu1 }
 0x7a0   : >> { %v8788_v40 = vpop.f32.mrb[34].mxu1 }
 0x7a1   : >> { %v3455_v51 = vpop.f32.mrb[35].mxu1 }
 0x7a6   : >> { %v12716_v32 = vpop.f32.mrb[36].mxu1 }
 0x7a7   : >> { %v12718_v38 = vpop.f32.mrb[37].mxu1 }
 0x7a8   : >> { %v12720_v28 = vpop.f32.mrb[38].mxu1 }
 0x7a9   : >> { %v12722_v11 = vpop.f32.mrb[39].mxu1 }
 0x7ae   : >> { %v12724_v30 = vpop.f32.mrb[40].mxu1 }
 0x7af   : >> { %v12726_v48 = vpop.f32.mrb[41].mxu1 }
 0x7b0   : >> { %v12728_v58 = vpop.f32.mrb[42].mxu1 }
 0x7b1   : >> { %v12730_v9 = vpop.f32.mrb[43].mxu1 }
 0x7b7   : >> { %v12732_v18 = vpop.f32.mrb[44].mxu1 }
 0x7b8   : >> { %v12734_v56 = vpop.f32.mrb[45].mxu1 }
 0x7b9   : >> { %v12736_v60 = vpop.f32.mrb[46].mxu1 }
 0x7ba   : >> { %v12738_v42 = vpop.f32.mrb[47].mxu1 }
 0x7bd   : >> { %v8883_v14 = vpop.f32.mrb[16].mxu0 }
 0x7be   : >> { %v3759_v57 = vpop.f32.mrb[17].mxu0  ;;  %v3840_v43 = vmul.f32 %v8883_v14, %v2872_v59  ;;  %v3888_v24 = vmul.f32 %v8883_v14, %v2856_v2 }
 0x7bf   : >> { %v8819_v1 = vpop.f32.mrb[48].mxu1  ;;  %v8884_v37 = vpop.f32.mrb[18].mxu0  ;;  %v3838_v0 = vmul.f32 %v3759_v57, %v2870_v35  ;;  %v3886_v62 = vmul.f32 %v3759_v57, %v2854_v27  ;;  %v2861_v57 = vld [vmem:[#allocation13 + $0x38] sm:$0xff] }
 0x7c0   : >> { %v3614_v53 = vsub.f32 %v8787_v12, %v8819_v1  ;;  %v3549_v13 = vpop.f32.mrb[49].mxu1  ;;  %v3762_v34 = vpop.f32.mrb[19].mxu0  ;;  %v3841_v55 = vmul.f32 %v8884_v37, %v2873_v45  ;;  %v3889_v10 = vmul.f32 %v8884_v37, %v2857_v46 }
 0x7c1   : >> { %v3612_v41 = vsub.f32 %v3452_v3, %v3549_v13  ;;  %v8820_v7 = vpop.f32.mrb[50].mxu1  ;;  %v3839_v61 = vmul.f32 %v3762_v34, %v2871_v49  ;;  %v3887_v63 = vmul.f32 %v3762_v34, %v2855_v33 }
 0x7c2   : >> { %v3824_v17 = vmul.f32 %v3614_v53, %v2856_v2  ;;  %v3872_v6 = vmul.f32 %v3614_v53, %v2872_v59  ;;  %v3615_v25 = vsub.f32 %v8788_v40, %v8820_v7  ;;  %v3552_v44 = vpop.f32.mrb[51].mxu1  ;;  %v2858_v40 = vld [vmem:[#allocation13 + $0x20] sm:$0xff] }
 0x7c3   : >> { %v3822_v21 = vmul.f32 %v3612_v41, %v2854_v27  ;;  %v3870_v15 = vmul.f32 %v3612_v41, %v2870_v35  ;;  %v3613_v5 = vsub.f32 %v3455_v51, %v3552_v44  ;;  %v2859_v44 = vld [vmem:[#allocation13 + $0x28] sm:$0xff] }
 0x7c4   : >> { %v3856_v4 = vsub.f32 %v3824_v17, %v3840_v43  ;;  %v3904_v47 = vadd.f32 %v3888_v24, %v3872_v6  ;;  %v3825_v16 = vmul.f32 %v3615_v25, %v2857_v46  ;;  %v3873_v52 = vmul.f32 %v3615_v25, %v2873_v45  ;;  %v2877_v46 = vld [vmem:[#allocation15 + $0x38] sm:$0xff] }
 0x7c5   : >> { %v3854_v31 = vsub.f32 %v3822_v21, %v3838_v0  ;;  %v3902_v39 = vadd.f32 %v3886_v62, %v3870_v15  ;;  %v3823_v20 = vmul.f32 %v3613_v5, %v2855_v33  ;;  %v3871_v36 = vmul.f32 %v3613_v5, %v2871_v49  ;;  %v8887_v29 = vpop.f32.mrb[20].mxu0  ;;  %v2875_v62 = vld [vmem:[#allocation15 + $0x28] sm:$0xff]  ;;  %v2880_v15 = vld [vmem:[#allocation15 + $0x50] sm:$0xff] }
 0x7c6   : >> { %v3857_v12 = vsub.f32 %v3825_v16, %v3841_v55  ;;  %v3905_v3 = vadd.f32 %v3889_v10, %v3873_v52  ;;  %v3775_v2 = vpop.f32.mrb[21].mxu0  ;;  %v12740_v35 = vmul.f32 %v8887_v29, %v2876_v54  ;;  %v3892_v51 = vmul.f32 %v8887_v29, %v2860_v23 }
 0x7c7   : >> { %v3855_v59 = vsub.f32 %v3823_v20, %v3839_v61  ;;  %v3903_v14 = vadd.f32 %v3887_v63, %v3871_v36  ;;  %v8823_v27 = vpop.f32.mrb[52].mxu1  ;;  %v8888_v45 = vpop.f32.mrb[22].mxu0  ;;  %v12746_v49 = vmul.f32 %v3775_v2, %v2874_v50  ;;  %v3890_v33 = vmul.f32 %v3775_v2, %v2858_v40 }
 0x7c8   : >> { %v12742_v1 = vpack.c.bf16 %v3857_v12, %v3856_v4  ;;  %v12744_v37 = vpack.c.bf16 %v3905_v3, %v3904_v47  ;;  %v3618_v43 = vsub.f32 %v12716_v32, %v8823_v27  ;;  %v3565_v24 = vpop.f32.mrb[53].mxu1  ;;  %v3778_v0 = vpop.f32.mrb[23].mxu0  ;;  %v3845_v7 = vmul.f32 %v8888_v45, %v2877_v46  ;;  %v2864_v4 = vld [vmem:[#allocation13 + $0x50] sm:$0xff]  ;;  %v2878_v47 = vld [vmem:[#allocation15 + $0x40] sm:$0xff] }
 0x7c9   : >> { %v3934_v53 = vpack.c.bf16 %v3855_v59, %v3854_v31  ;;  %v12749_v13 = vpack.c.bf16 %v3903_v14, %v3902_v39  ;;  %v3616_v34 = vsub.f32 %v12718_v38, %v3565_v24  ;;  %v8824_v55 = vpop.f32.mrb[54].mxu1  ;;  %v3893_v17 = vmul.f32 %v8888_v45, %v2861_v57 }
 0x7ca   : >> { %v3828_v10 = vmul.f32 %v3618_v43, %v2860_v23  ;;  %v3876_v41 = vmul.f32 %v3618_v43, %v2876_v54  ;;  %v3568_v6 = vpop.f32.mrb[55].mxu1  ;;  %v3619_v32 = vsub.f32 %v12720_v28, %v8824_v55  ;;  %v3843_v38 = vmul.f32 %v3778_v0, %v2875_v62  ;;  %v2862_v28 = vld [vmem:[#allocation13 + $0x40] sm:$0xff] }
 0x7cb   : >> { %v3826_v61 = vmul.f32 %v3616_v34, %v2858_v40  ;;  %v3874_v25 = vmul.f32 %v3616_v34, %v2874_v50  ;;  %v3617_v21 = vsub.f32 %v12722_v11, %v3568_v6  ;;  %8897 = vmatprep.subr.bf16.mxu1 %v3934_v53  ;;  %8961 = vmatprep.subr.bf16.mxu0 %v3934_v53  ;;  %v2881_v50 = vld [vmem:[#allocation15 + $0x58] sm:$0xff] }
 0x7cc   : >> { %v3860_v63 = vsub.f32 %v3828_v10, %v12740_v35  ;;  %v3908_v5 = vadd.f32 %v3892_v51, %v3876_v41  ;;  %8898 = vmatpush3.bf16.msra.mxu1 %v3934_v53  ;;  %v3829_v23 = vmul.f32 %v3619_v32, %v2861_v57  ;;  %v3877_v54 = vmul.f32 %v3619_v32, %v2877_v46  ;;  %v2865_v46 = vld [vmem:[#allocation13 + $0x58] sm:$0xff]  ;;  %v2863_v41 = vld [vmem:[#allocation13 + $0x48] sm:$0xff] }
 0x7cd   : >> { %v3858_v16 = vsub.f32 %v3826_v61, %v12746_v49  ;;  %v3906_v52 = vadd.f32 %v3890_v33, %v3874_v25  ;;  %8962 = vmatpush3.bf16.msra.mxu0 %v3934_v53  ;;  %v8891_v31 = vpop.f32.mrb[24].mxu0  ;;  %v3891_v39 = vmul.f32 %v3778_v0, %v2859_v44  ;;  %v3827_v11 = vmul.f32 %v3617_v21, %v2859_v44  ;;  %v2879_v49 = vld [vmem:[#allocation15 + $0x48] sm:$0xff] }
 0x7ce   : >> { %v3875_v20 = vmul.f32 %v3617_v21, %v2875_v62  ;;  %v12756_v36 = vmul.f32 %v8891_v31, %v2880_v15  ;;  %8899 = vmatprep.subr.bf16.mxu1 %v12742_v1  ;;  %v3791_v29 = vpop.f32.mrb[25].mxu0  ;;  %v3861_v12 = vsub.f32 %v3829_v23, %v3845_v7  ;;  %v3909_v3 = vadd.f32 %v3893_v17, %v3877_v54 }
 0x7cf   : >> { %v3896_v40 = vmul.f32 %v8891_v31, %v2864_v4  ;;  %8963 = vmatprep.subr.bf16.mxu0 %v12742_v1  ;;  %v12760_v2 = vmul.f32 %v3791_v29, %v2878_v47  ;;  %v8827_v59 = vpop.f32.mrb[56].mxu1  ;;  %v8892_v14 = vpop.f32.mrb[26].mxu0  ;;  %v3859_v35 = vsub.f32 %v3827_v11, %v3843_v38  ;;  %v3894_v27 = vmul.f32 %v3791_v29, %v2862_v28  ;;  %v2866_v31 = vld [vmem:[#allocation13 + $0x60] sm:$0xff] }
 0x7d0   : >> { %v3907_v51 = vadd.f32 %v3891_v39, %v3875_v20  ;;  %v3622_v57 = vsub.f32 %v12724_v30, %v8827_v59  ;;  %v3581_v45 = vpop.f32.mrb[57].mxu1  ;;  %v3794_v43 = vpop.f32.mrb[27].mxu0  ;;  %8900 = vmatpush3.bf16.msra.mxu1 %v12742_v1  ;;  %v12764_v24 = vpack.c.bf16 %v3861_v12, %v3860_v63  ;;  %v12766_v0 = vpack.c.bf16 %v3909_v3, %v3908_v5  ;;  %v2884_v63 = vld [vmem:[#allocation15 + $0x70] sm:$0xff]  ;;  %v2882_v5 = vld [vmem:[#allocation15 + $0x60] sm:$0xff]  ;;  %v2883_v59 = vld [vmem:[#allocation15 + $0x68] sm:$0xff] }
 0x7d1   : >> { %v3849_v53 = vmul.f32 %v8892_v14, %v2881_v50  ;;  %v3620_v33 = vsub.f32 %v12726_v48, %v3581_v45  ;;  %8964 = vmatpush3.bf16.msra.mxu0 %v12742_v1  ;;  %v8828_v34 = vpop.f32.mrb[58].mxu1  ;;  %v3936_v62 = vpack.c.bf16 %v3859_v35, %v3858_v16  ;;  %v3897_v17 = vmul.f32 %v8892_v14, %v2865_v46  ;;  %v2868_v1 = vld [vmem:[#allocation13 + $0x70] sm:$0xff] }
 0x7d2   : >> { %v12770_v55 = vpack.c.bf16 %v3907_v51, %v3906_v52  ;;  %v3832_v30 = vmul.f32 %v3622_v57, %v2864_v4  ;;  %v3880_v10 = vmul.f32 %v3622_v57, %v2880_v15  ;;  %v3584_v7 = vpop.f32.mrb[59].mxu1  ;;  %v3847_v25 = vmul.f32 %v3794_v43, %v2879_v49 }
 0x7d3   : >> { %v3830_v6 = vmul.f32 %v3620_v33, %v2862_v28  ;;  %v3878_v61 = vmul.f32 %v3620_v33, %v2878_v47  ;;  %v3623_v21 = vsub.f32 %v12728_v58, %v8828_v34  ;;  %v3621_v48 = vsub.f32 %v12730_v9, %v3584_v7  ;;  %8901 = vmatprep.subr.bf16.mxu1 %v3936_v62  ;;  %v2869_v28 = vld [vmem:[#allocation13 + $0x78] sm:$0xff] }
 0x7d4   : >> { %v3864_v44 = vsub.f32 %v3832_v30, %v12756_v36  ;;  %v3912_v32 = vadd.f32 %v3896_v40, %v3880_v10  ;;  %v3895_v4 = vmul.f32 %v3794_v43, %v2863_v41  ;;  %8965 = vmatprep.subr.bf16.mxu0 %v3936_v62  ;;  %8902 = vmatpush3.bf16.msra.mxu1 %v3936_v62  ;;  %v2885_v9 = vld [vmem:[#allocation15 + $0x78] sm:$0xff] }
 0x7d5   : >> { %v3862_v38 = vsub.f32 %v3830_v6, %v12760_v2  ;;  %v3910_v15 = vadd.f32 %v3894_v27, %v3878_v61  ;;  %v8895_v16 = vpop.f32.mrb[28].mxu0  ;;  %v3833_v47 = vmul.f32 %v3623_v21, %v2865_v46  ;;  %v3881_v52 = vmul.f32 %v3623_v21, %v2881_v50  ;;  %8966 = vmatpush3.bf16.msra.mxu0 %v3936_v62  ;;  %v2867_v46 = vld [vmem:[#allocation13 + $0x68] sm:$0xff] }
 0x7d6   : >> { %v3831_v23 = vmul.f32 %v3621_v48, %v2863_v41  ;;  %v3879_v54 = vmul.f32 %v3621_v48, %v2879_v49  ;;  %v3807_v58 = vpop.f32.mrb[29].mxu0  ;;  %v3852_v39 = vmul.f32 %v8895_v16, %v2884_v63  ;;  %v3900_v11 = vmul.f32 %v8895_v16, %v2868_v1  ;;  %8903 = vmatprep.subr.bf16.mxu1 %v12764_v24 }
 0x7d7   : >> { %8967 = vmatprep.subr.bf16.mxu0 %v12764_v24  ;;  %v3850_v20 = vmul.f32 %v3807_v58, %v2882_v5  ;;  %v8831_v36 = vpop.f32.mrb[60].mxu1  ;;  %v8896_v29 = vpop.f32.mrb[30].mxu0  ;;  %v3865_v12 = vsub.f32 %v3833_v47, %v3849_v53  ;;  %v3913_v3 = vadd.f32 %v3897_v17, %v3881_v52  ;;  %v3898_v35 = vmul.f32 %v3807_v58, %v2866_v31  ;;  %v12793_v47 = vld [vmem:[%s14037_s24 + $0x8] sm:$0xff]   ;;  %v12829_v58 = vld [vmem:[%s14037_s24 + $0x20] sm:$0xff]  }
 0x7d8   : >> { %v3863_v40 = vsub.f32 %v3831_v23, %v3847_v25  ;;  %v3911_v50 = vadd.f32 %v3895_v4, %v3879_v54  ;;  %v3597_v2 = vpop.f32.mrb[61].mxu1  ;;  %v3810_v14 = vpop.f32.mrb[31].mxu0  ;;  %v3626_v51 = vsub.f32 %v12732_v18, %v8831_v36  ;;  %v3853_v27 = vmul.f32 %v8896_v29, %v2885_v9  ;;  %8904 = vmatpush3.bf16.msra.mxu1 %v12764_v24  ;;  %v12797_v52 = vld [vmem:[#allocation10 + $0x8] sm:$0xff]   ;;  %v12803_v23 = vld [vmem:[%s14037_s24 + $0x10] sm:$0xff]  }
 0x7d9   : >> { %v3901_v57 = vmul.f32 %v8896_v29, %v2869_v28  ;;  %v8832_v45 = vpop.f32.mrb[62].mxu1  ;;  %v3939_v49 = vpack.c.bf16 %v3865_v12, %v3864_v44  ;;  %v12780_v43 = vpack.c.bf16 %v3913_v3, %v3912_v32  ;;  %8968 = vmatpush3.bf16.msra.mxu0 %v12764_v24  ;;  %v3624_v10 = vsub.f32 %v12734_v56, %v3597_v2  ;;  %v12810_v54 = vld [vmem:[#allocation10 + $0x10] sm:$0xff]  }
 0x7da   : >> { %v3938_v33 = vpack.c.bf16 %v3863_v40, %v3862_v38  ;;  %v12782_v53 = vpack.c.bf16 %v3911_v50, %v3910_v15  ;;  %v3600_v34 = vpop.f32.mrb[63].mxu1  ;;  %v3836_v62 = vmul.f32 %v3626_v51, %v2868_v1  ;;  %v3884_v30 = vmul.f32 %v3626_v51, %v2884_v63 }
 0x7db   : >> { %v3851_v18 = vmul.f32 %v3810_v14, %v2883_v59  ;;  %v3899_v41 = vmul.f32 %v3810_v14, %v2867_v46  ;;  %v3627_v7 = vsub.f32 %v12736_v60, %v8832_v45  ;;  %v3625_v17 = vsub.f32 %v12738_v42, %v3600_v34 }
 0x7dc   : >> { %8905 = vmatprep.subr.bf16.mxu1 %v3938_v33  ;;  %8969 = vmatprep.subr.bf16.mxu0 %v3938_v33  ;;  %v3868_v6 = vsub.f32 %v3836_v62, %v3852_v39  ;;  %v3916_v61 = vadd.f32 %v3900_v11, %v3884_v30  ;;  %v3834_v25 = vmul.f32 %v3624_v10, %v2866_v31  ;;  %v12818_v31 = vld [vmem:[%s14037_s24 + $0x18] sm:$0xff]  }
 0x7dd   : >> { %v3882_v44 = vmul.f32 %v3624_v10, %v2882_v5  ;;  %8906 = vmatpush3.bf16.msra.mxu1 %v3938_v33  ;;  %v3837_v32 = vmul.f32 %v3627_v7, %v2869_v28  ;;  %v3885_v24 = vmul.f32 %v3627_v7, %v2885_v9  ;;  %v3835_v21 = vmul.f32 %v3625_v17, %v2867_v46  ;;  %v12844_v28 = vld [vmem:[%s14037_s24 + $0x28] sm:$0xff]   ;;  %v10428_v9 = vld [vmem:[#allocation10 + $0x38] sm:$0xff]  }
 0x7de   : >> { %v3883_v48 = vmul.f32 %v3625_v17, %v2883_v59  ;;  %8970 = vmatpush3.bf16.msra.mxu0 %v3938_v33  ;;  %v3866_v1 = vsub.f32 %v3834_v25, %v3850_v20  ;;  %8907 = vmatprep.subr.bf16.mxu1 %v3939_v49 }
 0x7df   : >> { %v3914_v56 = vadd.f32 %v3898_v35, %v3882_v44  ;;  %8971 = vmatprep.subr.bf16.mxu0 %v3939_v49  ;;  %v3869_v63 = vsub.f32 %v3837_v32, %v3853_v27  ;;  %v3917_v60 = vadd.f32 %v3901_v57, %v3885_v24  ;;  %v3867_v38 = vsub.f32 %v3835_v21, %v3851_v18 }
 0x7e0   : >> { %v3915_v42 = vadd.f32 %v3899_v41, %v3883_v48 }
 0x7e1   : >> { %8908 = vmatpush3.bf16.msra.mxu1 %v3939_v49  ;;  %v3941_v15 = vpack.c.bf16 %v3869_v63, %v3868_v6  ;;  %v12788_v4 = vpack.c.bf16 %v3917_v60, %v3916_v61  ;;  %v3940_v16 = vpack.c.bf16 %v3867_v38, %v3866_v1 }
 0x7e2   : >> { %v3948_v5 = vpack.c.bf16 %v3915_v42, %v3914_v56  ;;  %8972 = vmatpush3.bf16.msra.mxu0 %v3939_v49 }
 0x7e3   : >> { %8909 = vmatprep.subr.bf16.mxu1 %v3940_v16  ;;  %8973 = vmatprep.subr.bf16.mxu0 %v3940_v16 }
 0x7e5   : >> { %8910 = vmatpush3.bf16.msra.mxu1 %v3940_v16 }
 0x7e6   : >> { %8974 = vmatpush3.bf16.msra.mxu0 %v3940_v16  ;;  %8911 = vmatprep.subr.bf16.mxu1 %v3941_v15 }
 0x7e7   : >> { %8975 = vmatprep.subr.bf16.mxu0 %v3941_v15 }
 0x7e9   : >> { %8912 = vmatpush3.bf16.msra.mxu1 %v3941_v15 }
 0x7ea   : >> { %8976 = vmatpush3.bf16.msra.mxu0 %v3941_v15  ;;  %8929 = vmatprep.subr.bf16.mxu1 %v12749_v13 }
 0x7eb   : >> { %8993 = vmatprep.subr.bf16.mxu0 %v12749_v13 }
 0x7ec   : >> { %8914 = vmatmul.mubr.bf16.vlgmr.msra.gmra.mrb[64].mxu1 %v12797_v52 }
 0x7ed   : >> { %8978 = vmatmul.mubr.bf16.vlgmr.msra.gmra.mrb[32].mxu0 %v12793_v47  ;;  %8930 = vmatpush3.bf16.msra.mxu1 %v12749_v13 }
 0x7ee   : >> { %8994 = vmatpush3.bf16.msra.mxu0 %v12749_v13  ;;  %8931 = vmatprep.subr.bf16.mxu1 %v12744_v37  ;;  %v12823_v13 = vld [vmem:[#allocation10 + $0x18] sm:$0xff]  }
 0x7ef   : >> { %8995 = vmatprep.subr.bf16.mxu0 %v12744_v37  ;;  %8917 = vmatprep.mubr.bf16.mxu1 %v12810_v54 }
 0x7f0   : >> { %8981 = vmatprep.mubr.bf16.mxu0 %v12803_v23 }
 0x7f1   : >> { %8932 = vmatpush3.bf16.msra.mxu1 %v12744_v37 }
 0x7f2   : >> { %8996 = vmatpush3.bf16.msra.mxu0 %v12744_v37  ;;  %8933 = vmatprep.subr.bf16.mxu1 %v12770_v55  ;;  %v12836_v37 = vld [vmem:[#allocation10 + $0x20] sm:$0xff]  }
 0x7f3   : >> { %8997 = vmatprep.subr.bf16.mxu0 %v12770_v55 }
 0x7f4   : >> { %8918 = vmatmul.mubr.bf16.gmra.mrb[68].mxu1 %v12823_v13 }
 0x7f5   : >> { %8982 = vmatmul.mubr.bf16.gmra.mrb[36].mxu0 %v12818_v31  ;;  %8934 = vmatpush3.bf16.msra.mxu1 %v12770_v55 }
 0x7f6   : >> { %8998 = vmatpush3.bf16.msra.mxu0 %v12770_v55  ;;  %8935 = vmatprep.subr.bf16.mxu1 %v12766_v0  ;;  %v12853_v55 = vld [vmem:[%s14037_s24 + $0x30] sm:$0xff]  }
 0x7f7   : >> { %8999 = vmatprep.subr.bf16.mxu0 %v12766_v0  ;;  %8921 = vmatprep.mubr.bf16.mxu1 %v12836_v37 }
 0x7f8   : >> { %8985 = vmatprep.mubr.bf16.mxu0 %v12829_v58 }
 0x7f9   : >> { %8936 = vmatpush3.bf16.msra.mxu1 %v12766_v0 }
 0x7fa   : >> { %9000 = vmatpush3.bf16.msra.mxu0 %v12766_v0  ;;  %8937 = vmatprep.subr.bf16.mxu1 %v12782_v53  ;;  %v10427_v0 = vld [vmem:[#allocation10 + $0x30] sm:$0xff]  }
 0x7fb   : >> { %9001 = vmatprep.subr.bf16.mxu0 %v12782_v53 }
 0x7fc   : >> { %8922 = vmatmul.mubr.bf16.gmra.mrb[72].mxu1 %v12549_v8  ;;  %v12866_v8 = vld [vmem:[%s14037_s24 + $0x38] sm:$0xff]   ;;  %s7485_s24 = sshll.u32 %s11125_s19, 7  ;;  %s14107_s19 = smov %s2789_s16 }
 0x7fd   : >> { %8986 = vmatmul.mubr.bf16.gmra.mrb[40].mxu0 %v12844_v28  ;;  %8938 = vmatpush3.bf16.msra.mxu1 %v12782_v53  ;;  %s13016_s7 = scalar_lea.vmem [#allocation16], %s7485_s24  ;;  %s13019_s25 = scalar_lea.vmem [#allocation18], %s7485_s24 }
 0x7fe   : >> { %9002 = vmatpush3.bf16.msra.mxu0 %v12782_v53  ;;  %8939 = vmatprep.subr.bf16.mxu1 %v12780_v43 }
 0x7ff   : >> { %9003 = vmatprep.subr.bf16.mxu0 %v12780_v43  ;;  %8925 = vmatprep.mubr.bf16.mxu1 %v12555_v26  ;;  %v10425_v26 = vld [vmem:[#allocation10] sm:$0xff]  }
 0x800   : >> { %8989 = vmatprep.mubr.bf16.mxu0 %v12853_v55 }
 0x801   : >> { %8940 = vmatpush3.bf16.msra.mxu1 %v12780_v43 }
 0x802   : >> { %9004 = vmatpush3.bf16.msra.mxu0 %v12780_v43  ;;  %8941 = vmatprep.subr.bf16.mxu1 %v3948_v5 }
 0x803   : >> { %9005 = vmatprep.subr.bf16.mxu0 %v3948_v5 }
 0x804   : >> { %8926 = vmatmul.mubr.bf16.gmra.mrb[76].mxu1 %v12565_v19  ;;  %v10426_v19 = vld [vmem:[#allocation10 + $0x28] sm:$0xff]  }
 0x805   : >> { %8990 = vmatmul.mubr.bf16.gmra.mrb[44].mxu0 %v12866_v8  ;;  %8942 = vmatpush3.bf16.msra.mxu1 %v3948_v5 }
 0x806   : >> { %9006 = vmatpush3.bf16.msra.mxu0 %v3948_v5  ;;  %8943 = vmatprep.subr.bf16.mxu1 %v12788_v4 }
 0x807   : >> { %9007 = vmatprep.subr.bf16.mxu0 %v12788_v4  ;;  %8945 = vmatprep.mubr.bf16.mxu1 %v12713_v22 }
 0x808   : >> { %9009 = vmatprep.mubr.bf16.mxu0 %v10425_v26 }
 0x809   : >> { %8944 = vmatpush3.bf16.msra.mxu1 %v12788_v4 }
 0x80a   : >> { %9008 = vmatpush3.bf16.msra.mxu0 %v12788_v4  ;;  %9025 = vmatprep.subr.bf16.mxu1 %v10425_v26 }
 0x80b   : >> { %9089 = vmatprep.subr.bf16.mxu0 %v10425_v26 }
 0x80c   : >> { %8946 = vmatmul.mubr.bf16.vlgmr.msra.gmra.mrb[80].mxu1 %v12793_v47 }
 0x80d   : >> { %9010 = vmatmul.mubr.bf16.vlgmr.msra.gmra.mrb[32].mxu0 %v12797_v52  ;;  %8949 = vmatprep.mubr.bf16.mxu1 %v12803_v23 }
 0x80e   : >> { %9013 = vmatprep.mubr.bf16.mxu0 %v12810_v54  ;;  %9090 = vmatpush3.bf16.msra.mxu0 %v10425_v26 }
 0x80f   : >> { %9026 = vmatpush3.bf16.msra.mxu1 %v10425_v26  ;;  %9091 = vmatprep.subr.bf16.mxu0 %v12797_v52 }
 0x810   : >> { %9027 = vmatprep.subr.bf16.mxu1 %v12797_v52 }
 0x812   : >> { %9092 = vmatpush3.bf16.msra.mxu0 %v12797_v52 }
 0x813   : >> { %9028 = vmatpush3.bf16.msra.mxu1 %v12797_v52  ;;  %9093 = vmatprep.subr.bf16.mxu0 %v12810_v54 }
 0x814   : >> { %8950 = vmatmul.mubr.bf16.gmra.mrb[84].mxu1 %v12818_v31  ;;  %9029 = vmatprep.subr.bf16.mxu1 %v12810_v54 }
 0x815   : >> { %9014 = vmatmul.mubr.bf16.gmra.mrb[36].mxu0 %v12823_v13  ;;  %8953 = vmatprep.mubr.bf16.mxu1 %v12829_v58 }
 0x816   : >> { %9017 = vmatprep.mubr.bf16.mxu0 %v12836_v37  ;;  %9094 = vmatpush3.bf16.msra.mxu0 %v12810_v54 }
 0x817   : >> { %9030 = vmatpush3.bf16.msra.mxu1 %v12810_v54  ;;  %9095 = vmatprep.subr.bf16.mxu0 %v12823_v13 }
 0x818   : >> { %9031 = vmatprep.subr.bf16.mxu1 %v12823_v13 }
 0x81a   : >> { %9096 = vmatpush3.bf16.msra.mxu0 %v12823_v13 }
 0x81b   : >> { %9032 = vmatpush3.bf16.msra.mxu1 %v12823_v13  ;;  %9097 = vmatprep.subr.bf16.mxu0 %v12836_v37 }
 0x81c   : >> { %8954 = vmatmul.mubr.bf16.gmra.mrb[88].mxu1 %v12844_v28  ;;  %9033 = vmatprep.subr.bf16.mxu1 %v12836_v37 }
 0x81d   : >> { %9018 = vmatmul.mubr.bf16.gmra.mrb[40].mxu0 %v10426_v19  ;;  %8957 = vmatprep.mubr.bf16.mxu1 %v12853_v55 }
 0x81e   : >> { %9021 = vmatprep.mubr.bf16.mxu0 %v10427_v0  ;;  %9098 = vmatpush3.bf16.msra.mxu0 %v12836_v37 }
 0x81f   : >> { %9034 = vmatpush3.bf16.msra.mxu1 %v12836_v37  ;;  %9099 = vmatprep.subr.bf16.mxu0 %v10426_v19 }
 0x820   : >> { %9035 = vmatprep.subr.bf16.mxu1 %v10426_v19 }
 0x822   : >> { %9100 = vmatpush3.bf16.msra.mxu0 %v10426_v19 }
 0x823   : >> { %9036 = vmatpush3.bf16.msra.mxu1 %v10426_v19  ;;  %9101 = vmatprep.subr.bf16.mxu0 %v10427_v0 }
 0x824   : >> { %8958 = vmatmul.mubr.bf16.gmra.mrb[92].mxu1 %v12866_v8  ;;  %9037 = vmatprep.subr.bf16.mxu1 %v10427_v0 }
 0x825   : >> { %9022 = vmatmul.mubr.bf16.gmra.mrb[44].mxu0 %v10428_v9 }
 0x826   : >> { %9102 = vmatpush3.bf16.msra.mxu0 %v10427_v0 }
 0x827   : >> { %9038 = vmatpush3.bf16.msra.mxu1 %v10427_v0  ;;  %9103 = vmatprep.subr.bf16.mxu0 %v10428_v9 }
 0x828   : >> { %9039 = vmatprep.subr.bf16.mxu1 %v10428_v9 }
 0x82a   : >> { %9104 = vmatpush3.bf16.msra.mxu0 %v10428_v9 }
 0x82b   : >> { %9040 = vmatpush3.bf16.msra.mxu1 %v10428_v9  ;;  %9121 = vmatprep.subr.bf16.mxu0 %v12713_v22 }
 0x82c   : >> { %9057 = vmatprep.subr.bf16.mxu1 %v12713_v22 }
 0x8bf   : >> { %v8915_v39 = vpop.f32.mrb[64].mxu1 }
 0x8c0   : >> { %v3984_v11 = vpop.f32.mrb[65].mxu1 }
 0x8c1   : >> { %v8916_v20 = vpop.f32.mrb[66].mxu1 }
 0x8c2   : >> { %v3987_v36 = vpop.f32.mrb[67].mxu1 }
 0x8c7   : >> { %v8919_v29 = vpop.f32.mrb[68].mxu1 }
 0x8c8   : >> { %v4000_v12 = vpop.f32.mrb[69].mxu1 }
 0x8c9   : >> { %v8920_v3 = vpop.f32.mrb[70].mxu1 }
 0x8ca   : >> { %v4003_v40 = vpop.f32.mrb[71].mxu1 }
 0x8cf   : >> { %v12905_v50 = vpop.f32.mrb[72].mxu1 }
 0x8d0   : >> { %v12907_v2 = vpop.f32.mrb[73].mxu1 }
 0x8d1   : >> { %v12909_v59 = vpop.f32.mrb[74].mxu1 }
 0x8d2   : >> { %v12911_v14 = vpop.f32.mrb[75].mxu1 }
 0x8d7   : >> { %v12913_v35 = vpop.f32.mrb[76].mxu1 }
 0x8d8   : >> { %v12915_v51 = vpop.f32.mrb[77].mxu1 }
 0x8d9   : >> { %v12917_v27 = vpop.f32.mrb[78].mxu1 }
 0x8da   : >> { %v12919_v57 = vpop.f32.mrb[79].mxu1 }
 0x8df   : >> { %v8947_v46 = vpop.f32.mrb[80].mxu1 }
 0x8e0   : >> { %v4194_v45 = vsub.f32 %v8915_v39, %v8947_v46  ;;  %v9011_v49 = vpop.f32.mrb[32].mxu0  ;;  %v4129_v43 = vpop.f32.mrb[81].mxu1 }
 0x8e1   : >> { %v4192_v33 = vsub.f32 %v3984_v11, %v4129_v43  ;;  %v4339_v53 = vpop.f32.mrb[33].mxu0  ;;  %v8948_v34 = vpop.f32.mrb[82].mxu1 }
 0x8e2   : >> { %v4195_v62 = vsub.f32 %v8916_v20, %v8948_v34  ;;  %v9012_v30 = vpop.f32.mrb[34].mxu0  ;;  %v4132_v10 = vpop.f32.mrb[83].mxu1 }
 0x8e3   : >> { %v12921_v18 = vpack.c.bf16 %v9012_v30, %v9011_v49  ;;  %v4193_v41 = vsub.f32 %v3987_v36, %v4132_v10  ;;  %v4342_v7 = vpop.f32.mrb[35].mxu0 }
 0x8e4   : >> { %v12923_v17 = vpack.c.bf16 %v4195_v62, %v4194_v45  ;;  %v12925_v6 = vpack.c.bf16 %v4342_v7, %v4339_v53 }
 0x8e5   : >> { %v12927_v61 = vpack.c.bf16 %v4193_v41, %v4192_v33 }
 0x8e6   : >> { %9105 = vmatprep.mubr.bf16.mxu0 %v12925_v6 }
 0x8e7   : >> { %9106 = vmatmul.mubr.bf16.vlgmr.msra.gmra.mrb[48].mxu0 %v12921_v18  ;;  %v8951_v25 = vpop.f32.mrb[84].mxu1  ;;  %9041 = vmatprep.mubr.bf16.mxu1 %v12927_v61 }
 0x8e8   : >> { %v4198_v44 = vsub.f32 %v8919_v29, %v8951_v25  ;;  %v9015_v32 = vpop.f32.mrb[36].mxu0  ;;  %9122 = vmatpush3.bf16.msra.mxu0 %v12713_v22  ;;  %v4145_v24 = vpop.f32.mrb[85].mxu1  ;;  %9042 = vmatmul.mubr.bf16.vlgmr.msra.gmra.mrb[96].mxu1 %v12923_v17  ;;  %v4406_v25 = vld [vmem:[%s13016_s7 + $0x10] sm:$0xff] }
 0x8e9   : >> { %v4196_v21 = vsub.f32 %v4000_v12, %v4145_v24  ;;  %v4355_v48 = vpop.f32.mrb[37].mxu0  ;;  %v8952_v1 = vpop.f32.mrb[86].mxu1  ;;  %9058 = vmatpush3.bf16.msra.mxu1 %v12713_v22  ;;  %9123 = vmatprep.subr.bf16.mxu0 %v12793_v47  ;;  %v4421_v24 = vld [vmem:[%s13019_s25] sm:$0xff] }
 0x8ea   : >> { %v4199_v56 = vsub.f32 %v8920_v3, %v8952_v1  ;;  %v9016_v63 = vpop.f32.mrb[38].mxu0  ;;  %v4148_v60 = vpop.f32.mrb[87].mxu1  ;;  %9059 = vmatprep.subr.bf16.mxu1 %v12793_v47  ;;  %v4407_v1 = vld [vmem:[%s13016_s7 + $0x18] sm:$0xff] }
 0x8eb   : >> { %v12937_v38 = vpack.c.bf16 %v9016_v63, %v9015_v32  ;;  %v4197_v42 = vsub.f32 %v4003_v40, %v4148_v60  ;;  %v4358_v15 = vpop.f32.mrb[39].mxu0 }
 0x8ec   : >> { %v12939_v4 = vpack.c.bf16 %v4199_v56, %v4198_v44  ;;  %v12941_v16 = vpack.c.bf16 %v4358_v15, %v4355_v48  ;;  %9124 = vmatpush3.bf16.msra.mxu0 %v12793_v47  ;;  %v4423_v44 = vld [vmem:[%s13019_s25 + $0x10] sm:$0xff]  ;;  %v4424_v56 = vld [vmem:[%s13019_s25 + $0x18] sm:$0xff] }
 0x8ed   : >> { %v12944_v5 = vpack.c.bf16 %v4197_v42, %v4196_v21  ;;  %9060 = vmatpush3.bf16.msra.mxu1 %v12793_v47  ;;  %9125 = vmatprep.subr.bf16.mxu0 %v12803_v23  ;;  %v4404_v21 = vld [vmem:[%s13016_s7] sm:$0xff] }
 0x8ee   : >> { %9109 = vmatprep.mubr.bf16.mxu0 %v12941_v16  ;;  %9061 = vmatprep.subr.bf16.mxu1 %v12803_v23 }
 0x8ef   : >> { %9110 = vmatmul.mubr.bf16.gmra.mrb[52].mxu0 %v12937_v38  ;;  %v8955_v22 = vpop.f32.mrb[88].mxu1  ;;  %9045 = vmatprep.mubr.bf16.mxu1 %v12944_v5 }
 0x8f0   : >> { %v4202_v52 = vsub.f32 %v12905_v50, %v8955_v22  ;;  %v9019_v54 = vpop.f32.mrb[40].mxu0  ;;  %9126 = vmatpush3.bf16.msra.mxu0 %v12803_v23  ;;  %v4161_v13 = vpop.f32.mrb[89].mxu1  ;;  %9046 = vmatmul.mubr.bf16.gmra.mrb[100].mxu1 %v12939_v4  ;;  %v4405_v22 = vld [vmem:[%s13016_s7 + $0x8] sm:$0xff] }
 0x8f1   : >> { %v4200_v47 = vsub.f32 %v12907_v2, %v4161_v13  ;;  %v4371_v37 = vpop.f32.mrb[41].mxu0  ;;  %v8956_v26 = vpop.f32.mrb[90].mxu1  ;;  %9062 = vmatpush3.bf16.msra.mxu1 %v12803_v23  ;;  %9127 = vmatprep.subr.bf16.mxu0 %v12818_v31 }
 0x8f2   : >> { %v4203_v19 = vsub.f32 %v12909_v59, %v8956_v26  ;;  %v9020_v0 = vpop.f32.mrb[42].mxu0  ;;  %v4164_v9 = vpop.f32.mrb[91].mxu1  ;;  %9063 = vmatprep.subr.bf16.mxu1 %v12818_v31 }
 0x8f3   : >> { %v4450_v39 = vpack.c.bf16 %v9020_v0, %v9019_v54  ;;  %v4201_v11 = vsub.f32 %v12911_v14, %v4164_v9  ;;  %v4374_v20 = vpop.f32.mrb[43].mxu0 }
 0x8f4   : >> { %v4442_v36 = vpack.c.bf16 %v4203_v19, %v4202_v52  ;;  %v4449_v29 = vpack.c.bf16 %v4374_v20, %v4371_v37  ;;  %9128 = vmatpush3.bf16.msra.mxu0 %v12818_v31 }
 0x8f5   : >> { %v4441_v12 = vpack.c.bf16 %v4201_v11, %v4200_v47  ;;  %9064 = vmatpush3.bf16.msra.mxu1 %v12818_v31  ;;  %9129 = vmatprep.subr.bf16.mxu0 %v12829_v58 }
 0x8f6   : >> { %9113 = vmatprep.mubr.bf16.mxu0 %v4449_v29  ;;  %9065 = vmatprep.subr.bf16.mxu1 %v12829_v58 }
 0x8f7   : >> { %9114 = vmatmul.mubr.bf16.gmra.mrb[56].mxu0 %v4450_v39  ;;  %v8959_v23 = vpop.f32.mrb[92].mxu1  ;;  %9049 = vmatprep.mubr.bf16.mxu1 %v4441_v12 }
 0x8f8   : >> { %v4206_v3 = vsub.f32 %v12913_v35, %v8959_v23  ;;  %v9023_v40 = vpop.f32.mrb[44].mxu0  ;;  %9130 = vmatpush3.bf16.msra.mxu0 %v12829_v58  ;;  %v4177_v50 = vpop.f32.mrb[93].mxu1  ;;  %9050 = vmatmul.mubr.bf16.gmra.mrb[104].mxu1 %v4442_v36 }
 0x8f9   : >> { %v4204_v2 = vsub.f32 %v12915_v51, %v4177_v50  ;;  %v4387_v59 = vpop.f32.mrb[45].mxu0  ;;  %v8960_v14 = vpop.f32.mrb[94].mxu1  ;;  %9066 = vmatpush3.bf16.msra.mxu1 %v12829_v58  ;;  %9131 = vmatprep.subr.bf16.mxu0 %v12844_v28 }
 0x8fa   : >> { %v4207_v31 = vsub.f32 %v12917_v27, %v8960_v14  ;;  %v9024_v46 = vpop.f32.mrb[46].mxu0  ;;  %v4180_v45 = vpop.f32.mrb[95].mxu1  ;;  %9067 = vmatprep.subr.bf16.mxu1 %v12844_v28 }
 0x8fb   : >> { %v4452_v35 = vpack.c.bf16 %v9024_v46, %v9023_v40  ;;  %v4205_v49 = vsub.f32 %v12919_v57, %v4180_v45  ;;  %v4390_v43 = vpop.f32.mrb[47].mxu0  ;;  %v4410_v46 = vld [vmem:[%s13016_s7 + $0x30] sm:$0xff] }
 0x8fc   : >> { %v4444_v33 = vpack.c.bf16 %v4207_v31, %v4206_v3  ;;  %v4451_v53 = vpack.c.bf16 %v4390_v43, %v4387_v59  ;;  %9132 = vmatpush3.bf16.msra.mxu0 %v12844_v28  ;;  %v4427_v45 = vld [vmem:[%s13019_s25 + $0x30] sm:$0xff] }
 0x8fd   : >> { %v4443_v51 = vpack.c.bf16 %v4205_v49, %v4204_v2  ;;  %9068 = vmatpush3.bf16.msra.mxu1 %v12844_v28  ;;  %9133 = vmatprep.subr.bf16.mxu0 %v12853_v55  ;;  %v4425_v49 = vld [vmem:[%s13019_s25 + $0x20] sm:$0xff] }
 0x8fe   : >> { %9117 = vmatprep.mubr.bf16.mxu0 %v4451_v53  ;;  %9069 = vmatprep.subr.bf16.mxu1 %v12853_v55 }
 0x8ff   : >> { %9118 = vmatmul.mubr.bf16.gmra.mrb[60].mxu0 %v4452_v35  ;;  %9053 = vmatprep.mubr.bf16.mxu1 %v4443_v51 }
 0x900   : >> { %9134 = vmatpush3.bf16.msra.mxu0 %v12853_v55  ;;  %9137 = vmatprep.mubr.bf16.mxu0 %v12927_v61 }
 0x901   : >> { %9054 = vmatmul.mubr.bf16.gmra.mrb[108].mxu1 %v4444_v33  ;;  %9135 = vmatprep.subr.bf16.mxu0 %v12866_v8 }
 0x902   : >> { %9070 = vmatpush3.bf16.msra.mxu1 %v12853_v55  ;;  %9073 = vmatprep.mubr.bf16.mxu1 %v12925_v6 }
 0x903   : >> { %9071 = vmatprep.subr.bf16.mxu1 %v12866_v8 }
 0x904   : >> { %9136 = vmatpush3.bf16.msra.mxu0 %v12866_v8 }
 0x906   : >> { %9072 = vmatpush3.bf16.msra.mxu1 %v12866_v8 }
 0x907   : >> { %9138 = vmatmul.mubr.bf16.vlgmr.msra.gmra.mrb[48].mxu0 %v12923_v17 }
 0x908   : >> { %9141 = vmatprep.mubr.bf16.mxu0 %v12944_v5 }
 0x909   : >> { %9074 = vmatmul.mubr.bf16.vlgmr.msra.gmra.mrb[112].mxu1 %v12921_v18 }
 0x90a   : >> { %9077 = vmatprep.mubr.bf16.mxu1 %v12941_v16 }
 0x90f   : >> { %9142 = vmatmul.mubr.bf16.gmra.mrb[52].mxu0 %v12939_v4 }
 0x910   : >> { %9145 = vmatprep.mubr.bf16.mxu0 %v4441_v12 }
 0x911   : >> { %9078 = vmatmul.mubr.bf16.gmra.mrb[116].mxu1 %v12937_v38  ;;  %v4422_v38 = vld [vmem:[%s13019_s25 + $0x8] sm:$0xff] }
 0x912   : >> { %9081 = vmatprep.mubr.bf16.mxu1 %v4449_v29 }
 0x917   : >> { %9146 = vmatmul.mubr.bf16.gmra.mrb[56].mxu0 %v4442_v36 }
 0x918   : >> { %9149 = vmatprep.mubr.bf16.mxu0 %v4443_v51  ;;  %v4411_v51 = vld [vmem:[%s13016_s7 + $0x38] sm:$0xff] }
 0x919   : >> { %9082 = vmatmul.mubr.bf16.gmra.mrb[120].mxu1 %v4450_v39 }
 0x91a   : >> { %9085 = vmatprep.mubr.bf16.mxu1 %v4451_v53 }
 0x91f   : >> { %9150 = vmatmul.mubr.bf16.gmra.mrb[60].mxu0 %v4444_v33  ;;  %v4408_v33 = vld [vmem:[%s13016_s7 + $0x20] sm:$0xff] }
 0x921   : >> { %9086 = vmatmul.mubr.bf16.gmra.mrb[124].mxu1 %v4452_v35 }
 0x9bb   : >> { %v9043_v58 = vpop.f32.mrb[96].mxu1 }
 0x9bc   : >> { %v4487_v28 = vpop.f32.mrb[97].mxu1 }
 0x9bd   : >> { %v9044_v55 = vpop.f32.mrb[98].mxu1 }
 0x9be   : >> { %v4490_v8 = vpop.f32.mrb[99].mxu1 }
 0x9c3   : >> { %v12991_v27 = vpop.f32.mrb[100].mxu1 }
 0x9c4   : >> { %v12993_v57 = vpop.f32.mrb[101].mxu1 }
 0x9c5   : >> { %v12995_v34 = vpop.f32.mrb[102].mxu1 }
 0x9c6   : >> { %v12997_v62 = vpop.f32.mrb[103].mxu1 }
 0x9cb   : >> { %v12999_v30 = vpop.f32.mrb[104].mxu1 }
 0x9cc   : >> { %v13001_v10 = vpop.f32.mrb[105].mxu1 }
 0x9cd   : >> { %v13003_v18 = vpop.f32.mrb[106].mxu1 }
 0x9ce   : >> { %v13005_v41 = vpop.f32.mrb[107].mxu1 }
 0x9d4   : >> { %v13007_v7 = vpop.f32.mrb[108].mxu1 }
 0x9d5   : >> { %v13010_v17 = vpop.f32.mrb[109].mxu1 }
 0x9d6   : >> { %v13012_v6 = vpop.f32.mrb[110].mxu1 }
 0x9d7   : >> { %v13014_v61 = vpop.f32.mrb[111].mxu1 }
 0x9da   : >> { %v9139_v32 = vpop.f32.mrb[48].mxu0 }
 0x9db   : >> { %v4794_v48 = vpop.f32.mrb[49].mxu0  ;;  %v4875_v42 = vmul.f32 %v9139_v32, %v4423_v44  ;;  %v4923_v15 = vmul.f32 %v9139_v32, %v4406_v25  ;;  %v4426_v32 = vld [vmem:[%s13019_s25 + $0x28] sm:$0xff] }
 0x9dc   : >> { %v9075_v63 = vpop.f32.mrb[112].mxu1  ;;  %v9140_v60 = vpop.f32.mrb[50].mxu0  ;;  %v4873_v4 = vmul.f32 %v4794_v48, %v4421_v24  ;;  %v4921_v54 = vmul.f32 %v4794_v48, %v4404_v21 }
 0x9dd   : >> { %v4649_v16 = vsub.f32 %v9043_v58, %v9075_v63  ;;  %v4584_v5 = vpop.f32.mrb[113].mxu1  ;;  %v4797_v52 = vpop.f32.mrb[51].mxu0  ;;  %v4876_v13 = vmul.f32 %v9140_v60, %v4424_v56  ;;  %v4924_v47 = vmul.f32 %v9140_v60, %v4407_v1  ;;  %v4409_v60 = vld [vmem:[%s13016_s7 + $0x28] sm:$0xff] }
 0x9de   : >> { %v4647_v37 = vsub.f32 %v4487_v28, %v4584_v5  ;;  %v9076_v26 = vpop.f32.mrb[114].mxu1  ;;  %v4874_v9 = vmul.f32 %v4797_v52, %v4422_v38  ;;  %v4922_v29 = vmul.f32 %v4797_v52, %v4405_v22  ;;  %v4428_v28 = vld [vmem:[%s13019_s25 + $0x38] sm:$0xff] }
 0x9df   : >> { %v4859_v19 = vmul.f32 %v4649_v16, %v4406_v25  ;;  %v4907_v0 = vmul.f32 %v4649_v16, %v4423_v44  ;;  %v4650_v39 = vsub.f32 %v9044_v55, %v9076_v26  ;;  %v4587_v11 = vpop.f32.mrb[115].mxu1 }
 0x9e0   : >> { %v4857_v20 = vmul.f32 %v4647_v37, %v4404_v21  ;;  %v4905_v36 = vmul.f32 %v4647_v37, %v4421_v24  ;;  %v4648_v12 = vsub.f32 %v4490_v8, %v4587_v11 }
 0x9e1   : >> { %v13028_v23 = vsub.f32 %v4859_v19, %v4875_v42   ;;  %v13030_v37 = vadd.f32 %v4923_v15, %v4907_v0   ;;  %v4860_v40 = vmul.f32 %v4650_v39, %v4407_v1  ;;  %v4908_v50 = vmul.f32 %v4650_v39, %v4424_v56 }
 0x9e2   : >> { %v13032_v2 = vsub.f32 %v4857_v20, %v4873_v4   ;;  %v13034_v1 = vadd.f32 %v4921_v54, %v4905_v36   ;;  %v4858_v14 = vmul.f32 %v4648_v12, %v4405_v22  ;;  %v4906_v31 = vmul.f32 %v4648_v12, %v4422_v38  ;;  %v9143_v35 = vpop.f32.mrb[52].mxu0  ;;  %v4414_v12 = vld [vmem:[%s13016_s7 + $0x50] sm:$0xff] }
 0x9e3   : >> { %14038 = vst [vmem:[#allocation88_spill] sm:$0xff] %v13028_v23  ;;  %v14039_v3 = vmov %v13030_v37  ;;  %v13039_v43 = vsub.f32 %v4860_v40, %v4876_v13   ;;  %v13041_v52 = vadd.f32 %v4924_v47, %v4908_v50   ;;  %v4810_v53 = vpop.f32.mrb[53].mxu0  ;;  %v4879_v21 = vmul.f32 %v9143_v35, %v4427_v45  ;;  %v4431_v40 = vld [vmem:[%s13019_s25 + $0x50] sm:$0xff] }
 0x9e4   : >> { %14040 = vst [vmem:[#allocation86_spill] sm:$0xff] %v13032_v2  ;;  %v14041_v59 = vmov %v13034_v1  ;;  %v13046_v11 = vsub.f32 %v4858_v14, %v4874_v9   ;;  %v13048_v8 = vadd.f32 %v4922_v29, %v4906_v31   ;;  %v9079_v25 = vpop.f32.mrb[116].mxu1  ;;  %v9144_v44 = vpop.f32.mrb[54].mxu0  ;;  %v4927_v48 = vmul.f32 %v9143_v35, %v4410_v46  ;;  %v4429_v14 = vld [vmem:[%s13019_s25 + $0x40] sm:$0xff] }
 0x9e5   : >> { %14042 = vst [vmem:[#allocation82_spill] sm:$0xff] %v13039_v43  ;;  %v14043_v58 = vmov %v13041_v52  ;;  %v4877_v1 = vmul.f32 %v4810_v53, %v4425_v49  ;;  %v4653_v56 = vsub.f32 %v12991_v27, %v9079_v25  ;;  %v4600_v63 = vpop.f32.mrb[117].mxu1  ;;  %v4813_v38 = vpop.f32.mrb[55].mxu0  ;;  %v4925_v42 = vmul.f32 %v4810_v53, %v4408_v33  ;;  %v4412_v31 = vld [vmem:[%s13016_s7 + $0x40] sm:$0xff]  ;;  %v4430_v25 = vld [vmem:[%s13019_s25 + $0x48] sm:$0xff] }
 0x9e6   : >> { %14044 = vst [vmem:[#allocation83_spill] sm:$0xff] %v13046_v11  ;;  %v14045_v24 = vmov %v13048_v8  ;;  %v4880_v15 = vmul.f32 %v9144_v44, %v4428_v28  ;;  %v4928_v4 = vmul.f32 %v9144_v44, %v4411_v51  ;;  %v4651_v16 = vsub.f32 %v12993_v57, %v4600_v63  ;;  %v9080_v5 = vpop.f32.mrb[118].mxu1  ;;  %v4413_v63 = vld [vmem:[%s13016_s7 + $0x48] sm:$0xff] }
 0x9e7   : >> { %v4863_v22 = vmul.f32 %v4653_v56, %v4410_v46  ;;  %v4911_v52 = vmul.f32 %v4653_v56, %v4427_v45  ;;  %v4878_v54 = vmul.f32 %v4813_v38, %v4426_v32  ;;  %v4654_v13 = vsub.f32 %v12995_v34, %v9080_v5  ;;  %v4603_v47 = vpop.f32.mrb[119].mxu1 }
 0x9e8   : >> { %v4861_v37 = vmul.f32 %v4651_v16, %v4408_v33  ;;  %v4909_v27 = vmul.f32 %v4651_v16, %v4425_v49  ;;  %v4926_v26 = vmul.f32 %v4813_v38, %v4409_v60  ;;  %v4652_v19 = vsub.f32 %v12997_v62, %v4603_v47  ;;  %v4415_v49 = vld [vmem:[%s13016_s7 + $0x58] sm:$0xff] }
 0x9e9   : >> { %v13056_v5 = vsub.f32 %v4863_v22, %v4879_v21   ;;  %v13058_v8 = vadd.f32 %v4927_v48, %v4911_v52   ;;  %v4864_v0 = vmul.f32 %v4654_v13, %v4411_v51  ;;  %v4912_v9 = vmul.f32 %v4654_v13, %v4428_v28  ;;  %v4432_v33 = vld [vmem:[%s13019_s25 + $0x58] sm:$0xff] }
 0x9ea   : >> { %v13060_v16 = vsub.f32 %v4861_v37, %v4877_v1   ;;  %v13062_v11 = vadd.f32 %v4925_v42, %v4909_v27   ;;  %v4862_v20 = vmul.f32 %v4652_v19, %v4409_v60  ;;  %v4910_v29 = vmul.f32 %v4652_v19, %v4426_v32  ;;  %v9147_v50 = vpop.f32.mrb[56].mxu0 }
 0x9eb   : >> { %v14046_v39 = vmov %v13056_v5  ;;  %v14047_v57 = vmov %v13058_v8  ;;  %v13067_v32 = vsub.f32 %v4864_v0, %v4880_v15   ;;  %v13069_v62 = vadd.f32 %v4928_v4, %v4912_v9   ;;  %v4826_v46 = vpop.f32.mrb[57].mxu0 }
 0x9ec   : >> { %v14048_v36 = vmov %v13060_v16  ;;  %v14049_v34 = vmov %v13062_v11  ;;  %v13074_v4 = vsub.f32 %v4862_v20, %v4878_v54   ;;  %v13076_v53 = vadd.f32 %v4926_v26, %v4910_v29   ;;  %v9083_v51 = vpop.f32.mrb[120].mxu1  ;;  %v9148_v8 = vpop.f32.mrb[58].mxu0  ;;  %v4418_v20 = vld [vmem:[%s13016_s7 + $0x70] sm:$0xff] }
 0x9ed   : >> { %v14050_v45 = vmov %v13067_v32  ;;  %v14051_v35 = vmov %v13069_v62  ;;  %v4883_v44 = vmul.f32 %v9147_v50, %v4431_v40  ;;  %v4931_v48 = vmul.f32 %v9147_v50, %v4414_v12  ;;  %v4616_v32 = vpop.f32.mrb[121].mxu1  ;;  %v4829_v60 = vpop.f32.mrb[59].mxu0 }
 0x9ee   : >> { %v14052_v28 = vmov %v13074_v4  ;;  %v14053_v21 = vmov %v13076_v53  ;;  %v4881_v1 = vmul.f32 %v4826_v46, %v4429_v14  ;;  %v4657_v56 = vsub.f32 %v12999_v30, %v9083_v51  ;;  %v9084_v5 = vpop.f32.mrb[122].mxu1 }
 0x9ef   : >> { %v4929_v38 = vmul.f32 %v4826_v46, %v4412_v31  ;;  %v4884_v42 = vmul.f32 %v9148_v8, %v4432_v33  ;;  %v4932_v15 = vmul.f32 %v9148_v8, %v4415_v49  ;;  %v4655_v16 = vsub.f32 %v13001_v10, %v4616_v32  ;;  %v4619_v54 = vpop.f32.mrb[123].mxu1  ;;  %v4436_v46 = vld [vmem:[%s13019_s25 + $0x78] sm:$0xff]  ;;  %v4434_v8 = vld [vmem:[%s13019_s25 + $0x68] sm:$0xff] }
 0x9f0   : >> { %v4867_v4 = vmul.f32 %v4657_v56, %v4414_v12  ;;  %v4915_v22 = vmul.f32 %v4657_v56, %v4431_v40  ;;  %v4882_v53 = vmul.f32 %v4829_v60, %v4430_v25  ;;  %v4658_v52 = vsub.f32 %v13003_v18, %v9084_v5  ;;  %v4435_v12 = vld [vmem:[%s13019_s25 + $0x70] sm:$0xff] }
 0x9f1   : >> { %v4865_v13 = vmul.f32 %v4655_v16, %v4412_v31  ;;  %v4913_v30 = vmul.f32 %v4655_v16, %v4429_v14  ;;  %v4930_v47 = vmul.f32 %v4829_v60, %v4413_v63  ;;  %v4656_v37 = vsub.f32 %v13005_v41, %v4619_v54  ;;  %v4433_v14 = vld [vmem:[%s13019_s25 + $0x60] sm:$0xff]  ;;  %v4419_v31 = vld [vmem:[%s13016_s7 + $0x78] sm:$0xff] }
 0x9f2   : >> { %v13084_v50 = vsub.f32 %v4867_v4, %v4883_v44   ;;  %v13086_v19 = vadd.f32 %v4931_v48, %v4915_v22   ;;  %v4868_v27 = vmul.f32 %v4658_v52, %v4415_v49  ;;  %v4916_v0 = vmul.f32 %v4658_v52, %v4432_v33  ;;  %v9151_v40 = vpop.f32.mrb[60].mxu0 }
 0x9f3   : >> { %v13088_v51 = vsub.f32 %v4865_v13, %v4881_v1   ;;  %v13090_v13 = vadd.f32 %v4929_v38, %v4913_v30   ;;  %v4866_v9 = vmul.f32 %v4656_v37, %v4413_v63  ;;  %v4914_v11 = vmul.f32 %v4656_v37, %v4430_v25  ;;  %v4842_v62 = vpop.f32.mrb[61].mxu0  ;;  %v4417_v38 = vld [vmem:[%s13016_s7 + $0x68] sm:$0xff] }
 0x9f4   : >> { %v14054_v26 = vmov %v13084_v50  ;;  %v14055_v10 = vmov %v13086_v19  ;;  %v13095_v41 = vsub.f32 %v4868_v27, %v4884_v42   ;;  %v13097_v50 = vadd.f32 %v4932_v15, %v4916_v0   ;;  %v4416_v19 = vld [vmem:[%s13016_s7 + $0x60] sm:$0xff]  ;;  %v9087_v49 = vpop.f32.mrb[124].mxu1 }
 0x9f5   : >> { %v14056_v29 = vmov %v13088_v51  ;;  %v14057_v18 = vmov %v13090_v13  ;;  %v13102_v27 = vsub.f32 %v4866_v9, %v4882_v53   ;;  %v13104_v33 = vadd.f32 %v4930_v47, %v4914_v11   ;;  %v9152_v51 = vpop.f32.mrb[62].mxu0  ;;  %v4632_v63 = vpop.f32.mrb[125].mxu1 }
 0x9f6   : >> { %v14058_v48 = vmov %v13097_v50  ;;  %v4887_v25 = vmul.f32 %v9151_v40, %v4435_v12  ;;  %v4935_v44 = vmul.f32 %v9151_v40, %v4418_v20  ;;  %v4885_v1 = vmul.f32 %v4842_v62, %v4433_v14  ;;  %v4845_v42 = vpop.f32.mrb[63].mxu0  ;;  %v9088_v22 = vpop.f32.mrb[126].mxu1 }
 0x9f7   : >> { %v14059_v56 = vmov %v13102_v27  ;;  %v14060_v60 = vmov %v13104_v33  ;;  %v4661_v32 = vsub.f32 %v13007_v7, %v9087_v49  ;;  %v4933_v15 = vmul.f32 %v4842_v62, %v4416_v19  ;;  %v4635_v13 = vpop.f32.mrb[127].mxu1 }
 0x9f8   : >> { %v4888_v16 = vmul.f32 %v9152_v51, %v4436_v46  ;;  %v4936_v5 = vmul.f32 %v9152_v51, %v4419_v31  ;;  %v4659_v4 = vsub.f32 %v13010_v17, %v4632_v63  ;;  %v4886_v33 = vmul.f32 %v4845_v42, %v4434_v8 }
 0x9f9   : >> { %v4871_v53 = vmul.f32 %v4661_v32, %v4418_v20  ;;  %v4919_v52 = vmul.f32 %v4661_v32, %v4435_v12  ;;  %v4662_v54 = vsub.f32 %v13012_v6, %v9088_v22  ;;  %v4934_v37 = vmul.f32 %v4845_v42, %v4417_v38  ;;  %v14108_v42 = vld [vmem:[#allocation86_spill] sm:$0xff] (%p13131_p9) }
 0x9fa   : >> { %v4869_v30 = vmul.f32 %v4659_v4, %v4416_v19  ;;  %v4917_v47 = vmul.f32 %v4659_v4, %v4433_v14  ;;  %v4660_v7 = vsub.f32 %v13014_v61, %v4635_v13  ;;  %v14079_v40 = vmov %v14058_v48 }
 0x9fb   : >> { %v13112_v27 = vsub.f32 %v4871_v53, %v4887_v25   ;;  %v13114_v62 = vadd.f32 %v4935_v44, %v4919_v52   ;;  %v4872_v0 = vmul.f32 %v4662_v54, %v4419_v31  ;;  %v4920_v9 = vmul.f32 %v4662_v54, %v4436_v46  ;;  %v14103_v31 = vld [vmem:[#allocation82_spill] sm:$0xff]  ;;  %v14109_v54 = vld [vmem:[#allocation83_spill] sm:$0xff] (%p13131_p9) }
 0x9fc   : >> { %v13116_v46 = vsub.f32 %v4869_v30, %v4885_v1   ;;  %v13118_v6 = vadd.f32 %v4933_v15, %v4917_v47   ;;  %v4870_v11 = vmul.f32 %v4660_v7, %v4417_v38  ;;  %v4918_v20 = vmul.f32 %v4660_v7, %v4434_v8  ;;  %v14104_v38 = vld [vmem:[#allocation88_spill] sm:$0xff]  ;;  %v13315_v40 = vld [vmem:[#allocation12 + $0x18] sm:$0xff] (%p13131_p9)   ;;  %v14122_v31 = vld [vmem:[#allocation74_spill] sm:$0xff] (%p13131_p9) }
 0x9fd   : >> { %14061 = vst [vmem:[#allocation80_spill] sm:$0xff] %v13112_v27  ;;  %v14062_v2 = vmov %v13112_v27  ;;  %14063 = vst [vmem:[#allocation87_spill] sm:$0xff] %v13114_v62  ;;  %v14064_v55 = vmov %v13114_v62  ;;  %v13120_v25 = vsub.f32 %v4872_v0, %v4888_v16   ;;  %v13122_v44 = vadd.f32 %v4936_v5, %v4920_v9   ;;  %v14106_v9 = vld [vmem:[#allocation86_spill] sm:$0xff] }
 0x9fe   : >> { %v14065_v17 = vmov %v13116_v46  ;;  %v14066_v23 = vmov %v13118_v6  ;;  %v13124_v15 = vsub.f32 %v4870_v11, %v4886_v33   ;;  %v13126_v63 = vadd.f32 %v4934_v37, %v4918_v20   ;;  %v14105_v11 = vld [vmem:[#allocation83_spill] sm:$0xff]  ;;  %v14112_v9 = vld [vmem:[#allocation32_spill] sm:$0xff] (%p13131_p9) }
 0x9ff   : >> { %14067 = vst [vmem:[#allocation84_spill] sm:$0xff] %v13120_v25  ;;  %v14068_v22 = vmov %v13120_v25  ;;  %14069 = vst [vmem:[#allocation85_spill] sm:$0xff] %v13122_v44  ;;  %v14070_v43 = vmov %v13122_v44  ;;  %v14076_v62 = vmov %v14064_v55  ;;  %v14078_v6 = vmov %v14066_v23  ;;  %v14111_v55 = vld [vmem:[#allocation82_spill] sm:$0xff] (%p13131_p9)  ;;  %9169 = vmatprep.mubr.bf16.mxu0 (%p13131_p9), %v14112_v9 }
 0xa00   : >> { %v14071_v14 = vmov %v13124_v15  ;;  %14072 = vst [vmem:[#allocation81_spill] sm:$0xff] %v13126_v63  ;;  %v14073_v61 = vmov %v13126_v63  ;;  %v14075_v44 = vmov %v14070_v43  ;;  %v14080_v19 = vmov %v14055_v10  ;;  %2788 = sbr.rel (!%p13131_p9) target bundleno = 1453 (0x5ad), region = 173  ;;  %v14110_v43 = vld [vmem:[#allocation88_spill] sm:$0xff] (%p13131_p9)  ;;  %v13330_v62 = vld [vmem:[#allocation12 + $0x30] sm:$0xff] (%p13131_p9)  }
 0xa01   : >> { %v14077_v63 = vmov %v14073_v61  ;;  %v14081_v33 = vmov %v14060_v60  ;;  %v14082_v13 = vmov %v14057_v18  ;;  %v14083_v12 = vmov %v14051_v35  ;;  %v13250_v61 = vld [vmem:[#allocation12] sm:$0xff] (%p13131_p9)   ;;  %v13326_v19 = vld [vmem:[#allocation12 + $0x28] sm:$0xff] (%p13131_p9)  }
 0xa02   : >> { %v14084_v8 = vmov %v14047_v57  ;;  %v14085_v53 = vmov %v14053_v21  ;;  %v14086_v0 = vmov %v14049_v34  ;;  %v14087_v52 = vmov %v14043_v58  ;;  %9201 = vmatprep.mubr.bf16.mxu1 (%p13131_p9), %v13250_v61  ;;  %v14119_v12 = vld [vmem:[#allocation68_spill] sm:$0xff] (%p13131_p9) }
 0xa03   : >> { %v14088_v37 = vmov %v14039_v3  ;;  %v14089_v49 = vmov %v14045_v24  ;;  %v14090_v1 = vmov %v14041_v59  ;;  %v14091_v25 = vmov %v14068_v22 }
 0xa04   : >> { %v14092_v7 = vmov %v14062_v2  ;;  %v14093_v15 = vmov %v14071_v14  ;;  %v14094_v46 = vmov %v14065_v17  ;;  %v14095_v20 = vmov %v13095_v41 }
 0xa05   : >> { %v14096_v50 = vmov %v14054_v26  ;;  %v14097_v27 = vmov %v14059_v56  ;;  %v14098_v51 = vmov %v14056_v29  ;;  %v14099_v32 = vmov %v14050_v45  ;;  %v14123_v46 = vld [vmem:[#allocation76_spill] sm:$0xff] (%p13131_p9) }
 0xa06   : >> { %v14100_v5 = vmov %v14046_v39  ;;  %v14101_v4 = vmov %v14052_v28  ;;  %v14102_v16 = vmov %v14048_v36  ;;  %v4969_v30 = vpack.c.bf16 (%p13131_p9), %v14109_v54, %v14108_v42  ;;  %v14120_v50 = vld [vmem:[#allocation70_spill] sm:$0xff] (%p13131_p9) }
 0xa07   : > { %v13241_v47 = vpack.c.bf16 %v14045_v24, %v14041_v59  ;;  %v4970_v22 = vpack.c.bf16 %v14111_v55, %v14110_v43  ;;  %v13247_v2 = vpack.c.bf16 %v14043_v58, %v14039_v3  ;;  %v4971_v6 = vpack.c.bf16 %v14052_v28, %v14048_v36  ;;  %v14113_v36 = vld [vmem:[#allocation81_spill] sm:$0xff] }
 0xa08   : > { %9153 = vmatprep.subr.bf16.mxu0 %v4969_v30  ;;  %v13259_v3 = vpack.c.bf16 %v14053_v21, %v14049_v34  ;;  %v4972_v59 = vpack.c.bf16 %v14050_v45, %v14046_v39  ;;  %v13268_v43 = vpack.c.bf16 %v14051_v35, %v14047_v57  ;;  %v4973_v58 = vpack.c.bf16 %v14059_v56, %v14056_v29  ;;  %v14114_v45 = vld [vmem:[#allocation80_spill] sm:$0xff]  ;;  %v14116_v21 = vld [vmem:[#allocation87_spill] sm:$0xff]  ;;  %v13307_v29 = vld [vmem:[#allocation12 + $0x10] sm:$0xff]  }
 0xa09   : > { %9185 = vmatprep.subr.bf16.mxu1 %v13241_v47  ;;  %9154 = vmatpush3.bf16.msra.mxu0 %v4969_v30  ;;  %v13276_v55 = vpack.c.bf16 %v14060_v60, %v14057_v18  ;;  %v4974_v24 = vpack.c.bf16 %v13095_v41, %v14054_v26  ;;  %v13284_v39 = vpack.c.bf16 %v14058_v48, %v14055_v10  ;;  %v14115_v35 = vld [vmem:[#allocation84_spill] sm:$0xff]  ;;  %v14117_v26 = vld [vmem:[#allocation85_spill] sm:$0xff]  ;;  %v14118_v18 = vld [vmem:[#allocation66_spill] sm:$0xff] }
 0xa0a   : > { %9186 = vmatpush3.bf16.msra.mxu1 %v13241_v47  ;;  %9155 = vmatprep.subr.bf16.mxu0 %v4970_v22  ;;  %v4975_v57 = vpack.c.bf16 %v14071_v14, %v14065_v17  ;;  %v13292_v34 = vpack.c.bf16 %v14113_v36, %v14066_v23  ;;  %v4976_v28 = vpack.c.bf16 %v14115_v35, %v14114_v45  ;;  %v13304_v23 = vld [vmem:[#allocation12 + $0x8] sm:$0xff]   ;;  %v13318_v41 = vld [vmem:[#allocation12 + $0x20] sm:$0xff]   ;;  %v13337_v56 = vld [vmem:[#allocation12 + $0x38] sm:$0xff]  }
 0xa0b   : > { %9187 = vmatprep.subr.bf16.mxu1 %v13247_v2  ;;  %v13300_v10 = vpack.c.bf16 %v14117_v26, %v14116_v21  ;;  %v14121_v48 = vld [vmem:[#allocation72_spill] sm:$0xff]  ;;  %v14124_v60 = vld [vmem:[#allocation78_spill] sm:$0xff] }
 0xa0d   : > { %9156 = vmatpush3.bf16.msra.mxu0 %v4970_v22 }
 0xa0e   : > { %9188 = vmatpush3.bf16.msra.mxu1 %v13247_v2  ;;  %9157 = vmatprep.subr.bf16.mxu0 %v4971_v6 }
 0xa0f   : > { %9189 = vmatprep.subr.bf16.mxu1 %v13259_v3 }
 0xa11   : > { %9158 = vmatpush3.bf16.msra.mxu0 %v4971_v6 }
 0xa12   : > { %9190 = vmatpush3.bf16.msra.mxu1 %v13259_v3  ;;  %9159 = vmatprep.subr.bf16.mxu0 %v4972_v59 }
 0xa13   : > { %9191 = vmatprep.subr.bf16.mxu1 %v13268_v43 }
 0xa15   : > { %9160 = vmatpush3.bf16.msra.mxu0 %v4972_v59 }
 0xa16   : > { %9192 = vmatpush3.bf16.msra.mxu1 %v13268_v43  ;;  %9161 = vmatprep.subr.bf16.mxu0 %v4973_v58 }
 0xa17   : > { %9193 = vmatprep.subr.bf16.mxu1 %v13276_v55 }
 0xa19   : > { %9162 = vmatpush3.bf16.msra.mxu0 %v4973_v58 }
 0xa1a   : > { %9194 = vmatpush3.bf16.msra.mxu1 %v13276_v55  ;;  %9163 = vmatprep.subr.bf16.mxu0 %v4974_v24 }
 0xa1b   : > { %9195 = vmatprep.subr.bf16.mxu1 %v13284_v39 }
 0xa1d   : > { %9164 = vmatpush3.bf16.msra.mxu0 %v4974_v24 }
 0xa1e   : > { %9196 = vmatpush3.bf16.msra.mxu1 %v13284_v39  ;;  %9165 = vmatprep.subr.bf16.mxu0 %v4975_v57 }
 0xa1f   : > { %9197 = vmatprep.subr.bf16.mxu1 %v13292_v34 }
 0xa21   : > { %9166 = vmatpush3.bf16.msra.mxu0 %v4975_v57 }
 0xa22   : > { %9198 = vmatpush3.bf16.msra.mxu1 %v13292_v34  ;;  %9167 = vmatprep.subr.bf16.mxu0 %v4976_v28 }
 0xa23   : > { %9199 = vmatprep.subr.bf16.mxu1 %v13300_v10 }
 0xa25   : > { %9168 = vmatpush3.bf16.msra.mxu0 %v4976_v28 }
 0xa26   : > { %9200 = vmatpush3.bf16.msra.mxu1 %v13300_v10  ;;  %9217 = vmatprep.subr.bf16.mxu0 %v4969_v30 }
 0xa27   : > { %9281 = vmatprep.subr.bf16.mxu1 %v14112_v9 }
 0xa28   : > { %9170 = vmatmul.mubr.bf16.vlgmr.msra.gmra.mrb[0].mxu0 %v14118_v18 }
 0xa29   : > { %9202 = vmatmul.mubr.bf16.vlgmr.msra.gmra.mrb[0].mxu1 %v13304_v23  ;;  %9218 = vmatpush3.bf16.msra.mxu0 %v4969_v30 }
 0xa2a   : > { %9173 = vmatprep.mubr.bf16.mxu0 %v14119_v12  ;;  %9219 = vmatprep.subr.bf16.mxu0 %v4970_v22 }
 0xa2b   : > { %9205 = vmatprep.mubr.bf16.mxu1 %v13307_v29  ;;  %9282 = vmatpush3.bf16.msra.mxu1 %v14112_v9 }
 0xa2c   : > { %9283 = vmatprep.subr.bf16.mxu1 %v14118_v18 }
 0xa2d   : > { %9220 = vmatpush3.bf16.msra.mxu0 %v4970_v22 }
 0xa2e   : > { %9221 = vmatprep.subr.bf16.mxu0 %v4971_v6 }
 0xa2f   : > { %9284 = vmatpush3.bf16.msra.mxu1 %v14118_v18 }
 0xa30   : > { %9174 = vmatmul.mubr.bf16.gmra.mrb[4].mxu0 %v14120_v50  ;;  %9285 = vmatprep.subr.bf16.mxu1 %v14119_v12 }
 0xa31   : > { %9206 = vmatmul.mubr.bf16.gmra.mrb[4].mxu1 %v13315_v40  ;;  %9222 = vmatpush3.bf16.msra.mxu0 %v4971_v6 }
 0xa32   : > { %9177 = vmatprep.mubr.bf16.mxu0 %v14121_v48  ;;  %9223 = vmatprep.subr.bf16.mxu0 %v4972_v59 }
 0xa33   : > { %9209 = vmatprep.mubr.bf16.mxu1 %v13318_v41  ;;  %9286 = vmatpush3.bf16.msra.mxu1 %v14119_v12 }
 0xa34   : > { %9287 = vmatprep.subr.bf16.mxu1 %v14120_v50 }
 0xa35   : > { %9224 = vmatpush3.bf16.msra.mxu0 %v4972_v59 }
 0xa36   : > { %9225 = vmatprep.subr.bf16.mxu0 %v4973_v58 }
 0xa37   : > { %9288 = vmatpush3.bf16.msra.mxu1 %v14120_v50 }
 0xa38   : > { %9178 = vmatmul.mubr.bf16.gmra.mrb[8].mxu0 %v14122_v31  ;;  %9289 = vmatprep.subr.bf16.mxu1 %v14121_v48 }
 0xa39   : > { %9210 = vmatmul.mubr.bf16.gmra.mrb[8].mxu1 %v13326_v19  ;;  %9226 = vmatpush3.bf16.msra.mxu0 %v4973_v58 }
 0xa3a   : > { %9181 = vmatprep.mubr.bf16.mxu0 %v14123_v46  ;;  %9227 = vmatprep.subr.bf16.mxu0 %v4974_v24 }
 0xa3b   : > { %9213 = vmatprep.mubr.bf16.mxu1 %v13330_v62  ;;  %9290 = vmatpush3.bf16.msra.mxu1 %v14121_v48 }
 0xa3c   : > { %9291 = vmatprep.subr.bf16.mxu1 %v14122_v31 }
 0xa3d   : > { %9228 = vmatpush3.bf16.msra.mxu0 %v4974_v24 }
 0xa3e   : > { %9229 = vmatprep.subr.bf16.mxu0 %v4975_v57 }
 0xa3f   : > { %9292 = vmatpush3.bf16.msra.mxu1 %v14122_v31 }
 0xa40   : > { %9182 = vmatmul.mubr.bf16.gmra.mrb[12].mxu0 %v14124_v60  ;;  %9293 = vmatprep.subr.bf16.mxu1 %v14123_v46 }
 0xa41   : > { %9214 = vmatmul.mubr.bf16.gmra.mrb[12].mxu1 %v13337_v56  ;;  %9230 = vmatpush3.bf16.msra.mxu0 %v4975_v57 }
 0xa42   : > { %9233 = vmatprep.mubr.bf16.mxu0 %v13250_v61  ;;  %9231 = vmatprep.subr.bf16.mxu0 %v4976_v28 }
 0xa43   : > { %9294 = vmatpush3.bf16.msra.mxu1 %v14123_v46 }
 0xa44   : > { %9295 = vmatprep.subr.bf16.mxu1 %v14124_v60 }
 0xa45   : > { %9232 = vmatpush3.bf16.msra.mxu0 %v4976_v28 }
 0xa46   : > { %9249 = vmatprep.subr.bf16.mxu0 %v13241_v47 }
 0xa47   : > { %9296 = vmatpush3.bf16.msra.mxu1 %v14124_v60 }
 0xa48   : > { %9234 = vmatmul.mubr.bf16.vlgmr.msra.gmra.mrb[16].mxu0 %v13304_v23  ;;  %9313 = vmatprep.subr.bf16.mxu1 %v13250_v61 }
 0xa49   : > { %9250 = vmatpush3.bf16.msra.mxu0 %v13241_v47  ;;  %9237 = vmatprep.mubr.bf16.mxu0 %v13307_v29 }
 0xa4a   : > { %9251 = vmatprep.subr.bf16.mxu0 %v13247_v2 }
 0xa4d   : > { %9252 = vmatpush3.bf16.msra.mxu0 %v13247_v2 }
 0xa4e   : > { %9253 = vmatprep.subr.bf16.mxu0 %v13259_v3 }
 0xa50   : > { %9238 = vmatmul.mubr.bf16.gmra.mrb[20].mxu0 %v13315_v40 }
 0xa51   : > { %9254 = vmatpush3.bf16.msra.mxu0 %v13259_v3  ;;  %9241 = vmatprep.mubr.bf16.mxu0 %v13318_v41 }
 0xa52   : > { %9255 = vmatprep.subr.bf16.mxu0 %v13268_v43 }
 0xa55   : > { %9256 = vmatpush3.bf16.msra.mxu0 %v13268_v43 }
 0xa56   : > { %9257 = vmatprep.subr.bf16.mxu0 %v13276_v55 }
 0xa58   : > { %9242 = vmatmul.mubr.bf16.gmra.mrb[24].mxu0 %v13326_v19 }
 0xa59   : > { %9258 = vmatpush3.bf16.msra.mxu0 %v13276_v55  ;;  %9245 = vmatprep.mubr.bf16.mxu0 %v13330_v62 }
 0xa5a   : > { %9259 = vmatprep.subr.bf16.mxu0 %v13284_v39 }
 0xa5d   : > { %9260 = vmatpush3.bf16.msra.mxu0 %v13284_v39 }
 0xa5e   : > { %9261 = vmatprep.subr.bf16.mxu0 %v13292_v34 }
 0xa60   : > { %9246 = vmatmul.mubr.bf16.gmra.mrb[28].mxu0 %v13337_v56 }
 0xa61   : > { %9262 = vmatpush3.bf16.msra.mxu0 %v13292_v34  ;;  %9265 = vmatprep.mubr.bf16.mxu0 %v14112_v9 }
 0xa62   : > { %9263 = vmatprep.subr.bf16.mxu0 %v13300_v10 }
 0xa65   : > { %9264 = vmatpush3.bf16.msra.mxu0 %v13300_v10 }
 0xa66   : > { %9345 = vmatprep.subr.bf16.mxu0 %v14112_v9 }
 0xa68   : > { %9266 = vmatmul.mubr.bf16.vlgmr.msra.gmra.mrb[16].mxu0 %v14118_v18 }
 0xa69   : > { %9269 = vmatprep.mubr.bf16.mxu0 %v14119_v12  ;;  %9346 = vmatpush3.bf16.msra.mxu0 %v14112_v9 }
 0xa6a   : > { %9347 = vmatprep.subr.bf16.mxu0 %v14118_v18 }
 0xa6d   : > { %9348 = vmatpush3.bf16.msra.mxu0 %v14118_v18 }
 0xa6e   : > { %9349 = vmatprep.subr.bf16.mxu0 %v14119_v12 }
 0xa70   : > { %9270 = vmatmul.mubr.bf16.gmra.mrb[20].mxu0 %v14120_v50 }
 0xa71   : > { %9273 = vmatprep.mubr.bf16.mxu0 %v14121_v48  ;;  %9350 = vmatpush3.bf16.msra.mxu0 %v14119_v12 }
 0xa72   : > { %9351 = vmatprep.subr.bf16.mxu0 %v14120_v50 }
 0xa75   : > { %9352 = vmatpush3.bf16.msra.mxu0 %v14120_v50 }
 0xa76   : > { %9353 = vmatprep.subr.bf16.mxu0 %v14121_v48 }
 0xa78   : > { %9274 = vmatmul.mubr.bf16.gmra.mrb[24].mxu0 %v14122_v31 }
 0xa79   : > { %9277 = vmatprep.mubr.bf16.mxu0 %v14123_v46  ;;  %9354 = vmatpush3.bf16.msra.mxu0 %v14121_v48 }
 0xa7a   : > { %9355 = vmatprep.subr.bf16.mxu0 %v14122_v31 }
 0xa7d   : > { %9356 = vmatpush3.bf16.msra.mxu0 %v14122_v31 }
 0xa7e   : > { %9357 = vmatprep.subr.bf16.mxu0 %v14123_v46 }
 0xa80   : > { %9278 = vmatmul.mubr.bf16.gmra.mrb[28].mxu0 %v14124_v60 }
 0xa81   : > { %9358 = vmatpush3.bf16.msra.mxu0 %v14123_v46 }
 0xa82   : > { %9359 = vmatprep.subr.bf16.mxu0 %v14124_v60 }
 0xa85   : > { %9360 = vmatpush3.bf16.msra.mxu0 %v14124_v60 }
 0xa86   : > { %9377 = vmatprep.subr.bf16.mxu0 %v13250_v61 }
 0xafb   : > { %v9171_v2 = vpop.f32.mrb[0].mxu0 }
 0xafc   : > { %v9203_v49 = vpop.f32.mrb[0].mxu1  ;;  %v5019_v8 = vpop.f32.mrb[1].mxu0 }
 0xafd   : > { %v5229_v51 = vsub.f32 %v9171_v2, %v9203_v49  ;;  %v5164_v25 = vpop.f32.mrb[1].mxu1  ;;  %v9172_v1 = vpop.f32.mrb[2].mxu0 }
 0xafe   : > { %v5227_v44 = vsub.f32 %v5019_v8, %v5164_v25  ;;  %v9204_v32 = vpop.f32.mrb[2].mxu1  ;;  %v5022_v38 = vpop.f32.mrb[3].mxu0 }
 0xaff   : > { %v5230_v63 = vsub.f32 %v9172_v1, %v9204_v32  ;;  %v5167_v15 = vpop.f32.mrb[3].mxu1 }
 0xb00   : > { %v5228_v16 = vsub.f32 %v5022_v38, %v5167_v15 }
 0xb01   : > { %v13399_v5 = vpack.c.bf16 %v5230_v63, %v5229_v51 }
 0xb02   : > { %v13401_v4 = vpack.c.bf16 %v5228_v16, %v5227_v44 }
 0xb03   : > { %v9175_v53 = vpop.f32.mrb[4].mxu0 }
 0xb04   : > { %v9207_v52 = vpop.f32.mrb[4].mxu1  ;;  %9297 = vmatprep.mubr.bf16.mxu1 %v13401_v4  ;;  %v5035_v13 = vpop.f32.mrb[5].mxu0 }
 0xb05   : > { %v5233_v33 = vsub.f32 %v9175_v53, %v9207_v52  ;;  %v5180_v37 = vpop.f32.mrb[5].mxu1  ;;  %9298 = vmatmul.mubr.bf16.vlgmr.msra.gmra.mrb[16].mxu1 %v13399_v5  ;;  %v9176_v27 = vpop.f32.mrb[6].mxu0 }
 0xb06   : > { %v5231_v7 = vsub.f32 %v5035_v13, %v5180_v37  ;;  %v9208_v0 = vpop.f32.mrb[6].mxu1  ;;  %9314 = vmatpush3.bf16.msra.mxu1 %v13250_v61  ;;  %v5038_v11 = vpop.f32.mrb[7].mxu0 }
 0xb07   : > { %v5234_v17 = vsub.f32 %v9176_v27, %v9208_v0  ;;  %v5183_v20 = vpop.f32.mrb[7].mxu1  ;;  %9315 = vmatprep.subr.bf16.mxu1 %v13304_v23 }
 0xb08   : > { %v5232_v22 = vsub.f32 %v5038_v11, %v5183_v20 }
 0xb09   : > { %v13407_v14 = vpack.c.bf16 %v5234_v17, %v5233_v33 }
 0xb0a   : > { %v13409_v42 = vpack.c.bf16 %v5232_v22, %v5231_v7  ;;  %9316 = vmatpush3.bf16.msra.mxu1 %v13304_v23 }
 0xb0b   : > { %9317 = vmatprep.subr.bf16.mxu1 %v13307_v29  ;;  %v9179_v54 = vpop.f32.mrb[8].mxu0 }
 0xb0c   : > { %v9211_v30 = vpop.f32.mrb[8].mxu1  ;;  %9301 = vmatprep.mubr.bf16.mxu1 %v13409_v42  ;;  %v5051_v6 = vpop.f32.mrb[9].mxu0 }
 0xb0d   : > { %v5237_v47 = vsub.f32 %v9179_v54, %v9211_v30  ;;  %v5196_v3 = vpop.f32.mrb[9].mxu1  ;;  %9302 = vmatmul.mubr.bf16.gmra.mrb[20].mxu1 %v13407_v14  ;;  %v9180_v43 = vpop.f32.mrb[10].mxu0 }
 0xb0e   : > { %v5235_v59 = vsub.f32 %v5051_v6, %v5196_v3  ;;  %v9212_v58 = vpop.f32.mrb[10].mxu1  ;;  %9318 = vmatpush3.bf16.msra.mxu1 %v13307_v29  ;;  %v5054_v24 = vpop.f32.mrb[11].mxu0 }
 0xb0f   : > { %v5238_v55 = vsub.f32 %v9180_v43, %v9212_v58  ;;  %v5199_v39 = vpop.f32.mrb[11].mxu1  ;;  %9319 = vmatprep.subr.bf16.mxu1 %v13315_v40 }
 0xb10   : > { %v5236_v57 = vsub.f32 %v5054_v24, %v5199_v39 }
 0xb11   : > { %v13417_v36 = vpack.c.bf16 %v5238_v55, %v5237_v47 }
 0xb12   : > { %v13419_v34 = vpack.c.bf16 %v5236_v57, %v5235_v59  ;;  %9320 = vmatpush3.bf16.msra.mxu1 %v13315_v40 }
 0xb13   : > { %9321 = vmatprep.subr.bf16.mxu1 %v13318_v41  ;;  %v9183_v45 = vpop.f32.mrb[12].mxu0 }
 0xb14   : > { %v9215_v35 = vpop.f32.mrb[12].mxu1  ;;  %9305 = vmatprep.mubr.bf16.mxu1 %v13419_v34  ;;  %v5067_v21 = vpop.f32.mrb[13].mxu0 }
 0xb15   : > { %v5241_v28 = vsub.f32 %v9183_v45, %v9215_v35  ;;  %v5212_v26 = vpop.f32.mrb[13].mxu1  ;;  %9306 = vmatmul.mubr.bf16.gmra.mrb[24].mxu1 %v13417_v36  ;;  %v9184_v2 = vpop.f32.mrb[14].mxu0 }
 0xb16   : > { %v5239_v10 = vsub.f32 %v5067_v21, %v5212_v26  ;;  %v9216_v49 = vpop.f32.mrb[14].mxu1  ;;  %9322 = vmatpush3.bf16.msra.mxu1 %v13318_v41  ;;  %v5070_v8 = vpop.f32.mrb[15].mxu0 }
 0xb17   : > { %v5242_v51 = vsub.f32 %v9184_v2, %v9216_v49  ;;  %v5215_v25 = vpop.f32.mrb[15].mxu1  ;;  %9323 = vmatprep.subr.bf16.mxu1 %v13326_v19 }
 0xb18   : > { %v5240_v44 = vsub.f32 %v5070_v8, %v5215_v25 }
 0xb19   : > { %v13427_v1 = vpack.c.bf16 %v5242_v51, %v5241_v28 }
 0xb1a   : > { %v13429_v32 = vpack.c.bf16 %v5240_v44, %v5239_v10  ;;  %9324 = vmatpush3.bf16.msra.mxu1 %v13326_v19 }
 0xb1b   : > { %9325 = vmatprep.subr.bf16.mxu1 %v13330_v62 }
 0xb1c   : > { %9309 = vmatprep.mubr.bf16.mxu1 %v13429_v32 }
 0xb1d   : > { %9310 = vmatmul.mubr.bf16.gmra.mrb[28].mxu1 %v13427_v1 }
 0xb1e   : > { %9326 = vmatpush3.bf16.msra.mxu1 %v13330_v62 }
 0xb1f   : > { %9327 = vmatprep.subr.bf16.mxu1 %v13337_v56 }
 0xb22   : > { %9328 = vmatpush3.bf16.msra.mxu1 %v13337_v56 }
 0xb3b   : > { %v9267_v63 = vpop.f32.mrb[16].mxu0 }
 0xb3c   : > { %v5374_v38 = vpop.f32.mrb[17].mxu0 }
 0xb3d   : > { %v9268_v15 = vpop.f32.mrb[18].mxu0 }
 0xb3e   : > { %v5446_v16 = vpack.c.bf16 %v9268_v15, %v9267_v63  ;;  %v5377_v53 = vpop.f32.mrb[19].mxu0 }
 0xb3f   : > { %v5445_v52 = vpack.c.bf16 %v5377_v53, %v5374_v38 }
 0xb41   : > { %9329 = vmatprep.mubr.bf16.mxu1 %v5445_v52  ;;  %9361 = vmatprep.mubr.bf16.mxu0 %v5445_v52 }
 0xb42   : > { %9330 = vmatmul.mubr.bf16.vlgmr.msra.gmra.mrb[32].mxu1 %v5446_v16  ;;  %9362 = vmatmul.mubr.bf16.vlgmr.msra.gmra.mrb[32].mxu0 %v5446_v16 }
 0xb43   : > { %v9271_v33 = vpop.f32.mrb[20].mxu0  ;;  %9378 = vmatpush3.bf16.msra.mxu0 %v13250_v61 }
 0xb44   : > { %v5390_v13 = vpop.f32.mrb[21].mxu0  ;;  %9379 = vmatprep.subr.bf16.mxu0 %v13304_v23 }
 0xb45   : > { %v9272_v37 = vpop.f32.mrb[22].mxu0 }
 0xb46   : > { %v5448_v7 = vpack.c.bf16 %v9272_v37, %v9271_v33  ;;  %v5393_v27 = vpop.f32.mrb[23].mxu0 }
 0xb47   : > { %v5447_v0 = vpack.c.bf16 %v5393_v27, %v5390_v13  ;;  %9380 = vmatpush3.bf16.msra.mxu0 %v13304_v23 }
 0xb48   : > { %9381 = vmatprep.subr.bf16.mxu0 %v13307_v29 }
 0xb49   : > { %9333 = vmatprep.mubr.bf16.mxu1 %v5447_v0  ;;  %9365 = vmatprep.mubr.bf16.mxu0 %v5447_v0 }
 0xb4a   : > { %9334 = vmatmul.mubr.bf16.gmra.mrb[36].mxu1 %v5448_v7  ;;  %9366 = vmatmul.mubr.bf16.gmra.mrb[36].mxu0 %v5448_v7 }
 0xb4b   : > { %v9275_v17 = vpop.f32.mrb[24].mxu0  ;;  %9382 = vmatpush3.bf16.msra.mxu0 %v13307_v29 }
 0xb4c   : > { %v5406_v11 = vpop.f32.mrb[25].mxu0  ;;  %9383 = vmatprep.subr.bf16.mxu0 %v13315_v40 }
 0xb4d   : > { %v9276_v61 = vpop.f32.mrb[26].mxu0 }
 0xb4e   : > { %v5450_v20 = vpack.c.bf16 %v9276_v61, %v9275_v17  ;;  %v5409_v22 = vpop.f32.mrb[27].mxu0 }
 0xb4f   : > { %v5449_v54 = vpack.c.bf16 %v5409_v22, %v5406_v11  ;;  %9384 = vmatpush3.bf16.msra.mxu0 %v13315_v40  ;;  %v14125_v40 = vld [vmem:[#allocation33_spill] sm:$0xff] }
 0xb50   : > { %9385 = vmatprep.subr.bf16.mxu0 %v13318_v41 }
 0xb51   : > { %9337 = vmatprep.mubr.bf16.mxu1 %v5449_v54  ;;  %9369 = vmatprep.mubr.bf16.mxu0 %v5449_v54  ;;  %v14126_v54 = vld [vmem:[#allocation34_spill] sm:$0xff] }
 0xb52   : > { %9338 = vmatmul.mubr.bf16.gmra.mrb[40].mxu1 %v5450_v20  ;;  %9370 = vmatmul.mubr.bf16.gmra.mrb[40].mxu0 %v5450_v20 }
 0xb53   : > { %v9279_v23 = vpop.f32.mrb[28].mxu0  ;;  %9386 = vmatpush3.bf16.msra.mxu0 %v13318_v41 }
 0xb54   : > { %v5422_v30 = vpop.f32.mrb[29].mxu0  ;;  %9387 = vmatprep.subr.bf16.mxu0 %v13326_v19 }
 0xb55   : > { %v9280_v29 = vpop.f32.mrb[30].mxu0 }
 0xb56   : > { %v5452_v47 = vpack.c.bf16 %v9280_v29, %v9279_v23  ;;  %v5425_v6 = vpop.f32.mrb[31].mxu0 }
 0xb57   : > { %v5451_v3 = vpack.c.bf16 %v5425_v6, %v5422_v30  ;;  %9388 = vmatpush3.bf16.msra.mxu0 %v13326_v19  ;;  %v14127_v30 = vld [vmem:[#allocation35_spill] sm:$0xff] }
 0xb58   : > { %9389 = vmatprep.subr.bf16.mxu0 %v13330_v62 }
 0xb59   : > { %9341 = vmatprep.mubr.bf16.mxu1 %v5451_v3  ;;  %9373 = vmatprep.mubr.bf16.mxu0 %v5451_v3  ;;  %v14129_v3 = vld [vmem:[#allocation37_spill] sm:$0xff] }
 0xb5a   : > { %9342 = vmatmul.mubr.bf16.gmra.mrb[44].mxu1 %v5452_v47  ;;  %9374 = vmatmul.mubr.bf16.gmra.mrb[44].mxu0 %v5452_v47  ;;  %v14128_v47 = vld [vmem:[#allocation36_spill] sm:$0xff] }
 0xb5b   : > { %9390 = vmatpush3.bf16.msra.mxu0 %v13330_v62  ;;  %9393 = vmatprep.mubr.bf16.mxu0 %v13401_v4 }
 0xb5c   : > { %9391 = vmatprep.subr.bf16.mxu0 %v13337_v56  ;;  %9425 = vmatprep.mubr.bf16.mxu1 %v14112_v9 }
 0xb5f   : > { %9392 = vmatpush3.bf16.msra.mxu0 %v13337_v56 }
 0xb62   : > { %9394 = vmatmul.mubr.bf16.vlgmr.msra.gmra.mrb[32].mxu0 %v13399_v5 }
 0xb63   : > { %9397 = vmatprep.mubr.bf16.mxu0 %v13409_v42 }
 0xb6a   : > { %9398 = vmatmul.mubr.bf16.gmra.mrb[36].mxu0 %v13407_v14 }
 0xb6b   : > { %9401 = vmatprep.mubr.bf16.mxu0 %v13419_v34 }
 0xb72   : > { %9402 = vmatmul.mubr.bf16.gmra.mrb[40].mxu0 %v13417_v36 }
 0xb73   : > { %9405 = vmatprep.mubr.bf16.mxu0 %v13429_v32 }
 0xb7a   : > { %9406 = vmatmul.mubr.bf16.gmra.mrb[44].mxu0 %v13427_v1 }
 0xb7b   : > { %9489 = vmatprep.mubr.bf16.mxu0 %v14125_v40 }
 0xbd8   : > { %v9299_v41 = vpop.f32.mrb[16].mxu1 }
 0xbd9   : > { %v5487_v19 = vpop.f32.mrb[17].mxu1 }
 0xbda   : > { %v9300_v62 = vpop.f32.mrb[18].mxu1 }
 0xbdb   : > { %v5490_v56 = vpop.f32.mrb[19].mxu1 }
 0xbe0   : > { %v9303_v4 = vpop.f32.mrb[20].mxu1 }
 0xbe1   : > { %v5503_v5 = vpop.f32.mrb[21].mxu1 }
 0xbe2   : > { %v9304_v59 = vpop.f32.mrb[22].mxu1 }
 0xbe3   : > { %v5506_v42 = vpop.f32.mrb[23].mxu1 }
 0xbe8   : > { %v9307_v43 = vpop.f32.mrb[24].mxu1 }
 0xbe9   : > { %v5519_v14 = vpop.f32.mrb[25].mxu1 }
 0xbea   : > { %v9308_v58 = vpop.f32.mrb[26].mxu1 }
 0xbeb   : > { %v5522_v55 = vpop.f32.mrb[27].mxu1 }
 0xbf0   : > { %v9311_v24 = vpop.f32.mrb[28].mxu1 }
 0xbf1   : > { %v5535_v39 = vpop.f32.mrb[29].mxu1 }
 0xbf2   : > { %v9312_v57 = vpop.f32.mrb[30].mxu1 }
 0xbf3   : > { %v5538_v36 = vpop.f32.mrb[31].mxu1 }
 0xc15   : > { %v9331_v34 = vpop.f32.mrb[32].mxu1 }
 0xc16   : > { %v5649_v45 = vsub.f32 %v9299_v41, %v9331_v34  ;;  %v5584_v35 = vpop.f32.mrb[33].mxu1 }
 0xc17   : > { %v5647_v28 = vsub.f32 %v5487_v19, %v5584_v35  ;;  %v9332_v21 = vpop.f32.mrb[34].mxu1 }
 0xc18   : > { %v5650_v26 = vsub.f32 %v9300_v62, %v9332_v21  ;;  %v5587_v10 = vpop.f32.mrb[35].mxu1  ;;  %v5859_v23 = vmul.f32 %v5649_v45, %v14126_v54  ;;  %v5907_v29 = vmul.f32 %v5649_v45, %v14127_v30  ;;  %v14130_v62 = vld [vmem:[#allocation38_spill] sm:$0xff] }
 0xc19   : > { %v5648_v2 = vsub.f32 %v5490_v56, %v5587_v10  ;;  %v5857_v6 = vmul.f32 %v5647_v28, %v14128_v47  ;;  %v5905_v41 = vmul.f32 %v5647_v28, %v14129_v3 }
 0xc1a   : > { %v5860_v56 = vmul.f32 %v5650_v26, %v14130_v62 }
 0xc1d   : > { %v9335_v49 = vpop.f32.mrb[36].mxu1 }
 0xc1e   : > { %v5653_v51 = vsub.f32 %v9303_v4, %v9335_v49  ;;  %v5600_v8 = vpop.f32.mrb[37].mxu1  ;;  %v14131_v4 = vld [vmem:[#allocation39_spill] sm:$0xff] }
 0xc1f   : > { %v5651_v25 = vsub.f32 %v5503_v5, %v5600_v8  ;;  %v9336_v44 = vpop.f32.mrb[38].mxu1  ;;  %v5908_v5 = vmul.f32 %v5650_v26, %v14131_v4 }
 0xc20   : > { %v5654_v1 = vsub.f32 %v9304_v59, %v9336_v44  ;;  %v5603_v32 = vpop.f32.mrb[39].mxu1 }
 0xc21   : > { %v5652_v63 = vsub.f32 %v5506_v42, %v5603_v32  ;;  %v14134_v32 = vld [vmem:[#allocation42_spill] sm:$0xff] }
 0xc25   : > { %v9339_v38 = vpop.f32.mrb[40].mxu1 }
 0xc26   : > { %v13463_v15 = vsub.f32 %v9307_v43, %v9339_v38  ;;  %v5616_v16 = vpop.f32.mrb[41].mxu1  ;;  %v5863_v38 = vmul.f32 %v5653_v51, %v14134_v32 }
 0xc27   : > { %v13465_v53 = vsub.f32 %v5519_v14, %v5616_v16  ;;  %v9340_v52 = vpop.f32.mrb[42].mxu1  ;;  %v14132_v14 = vld [vmem:[#allocation40_spill] sm:$0xff] }
 0xc28   : > { %v13467_v33 = vsub.f32 %v9308_v58, %v9340_v52  ;;  %v5619_v13 = vpop.f32.mrb[43].mxu1  ;;  %v5858_v58 = vmul.f32 %v5648_v2, %v14132_v14 }
 0xc29   : > { %v13469_v37 = vsub.f32 %v5522_v55, %v5619_v13  ;;  %v14133_v55 = vld [vmem:[#allocation41_spill] sm:$0xff]  ;;  %v14135_v13 = vld [vmem:[#allocation43_spill] sm:$0xff] }
 0xc2d   : > { %v9343_v7 = vpop.f32.mrb[44].mxu1 }
 0xc2e   : > { %v13471_v27 = vsub.f32 %v9311_v24, %v9343_v7  ;;  %v5632_v0 = vpop.f32.mrb[45].mxu1  ;;  %v5906_v24 = vmul.f32 %v5648_v2, %v14133_v55  ;;  %v5911_v7 = vmul.f32 %v5653_v51, %v14135_v13 }
 0xc2f   : > { %v13473_v17 = vsub.f32 %v5535_v39, %v5632_v0  ;;  %v9344_v11 = vpop.f32.mrb[46].mxu1  ;;  %v14136_v0 = vld [vmem:[#allocation44_spill] sm:$0xff] }
 0xc30   : > { %v13475_v61 = vsub.f32 %v9312_v57, %v9344_v11  ;;  %v5635_v20 = vpop.f32.mrb[47].mxu1  ;;  %v5861_v11 = vmul.f32 %v5651_v25, %v14136_v0 }
 0xc31   : > { %v13477_v22 = vsub.f32 %v5538_v36, %v5635_v20 }
 0xc35   : > { %v9395_v19 = vpop.f32.mrb[32].mxu0 }
 0xc36   : > { %v5875_v59 = vmul.f32 %v9395_v19, %v14127_v30  ;;  %v5923_v42 = vmul.f32 %v9395_v19, %v14126_v54  ;;  %v5794_v43 = vpop.f32.mrb[33].mxu0  ;;  %v14139_v19 = vld [vmem:[#allocation47_spill] sm:$0xff] }
 0xc37   : > { %v5873_v39 = vmul.f32 %v5794_v43, %v14129_v3  ;;  %v5921_v57 = vmul.f32 %v5794_v43, %v14128_v47  ;;  %v9396_v36 = vpop.f32.mrb[34].mxu0 }
 0xc38   : > { %v5891_v34 = vsub.f32 %v5859_v23, %v5875_v59  ;;  %v5939_v45 = vadd.f32 %v5923_v42, %v5907_v29  ;;  %v5876_v35 = vmul.f32 %v9396_v36, %v14131_v4  ;;  %v5924_v28 = vmul.f32 %v9396_v36, %v14130_v62  ;;  %v5797_v21 = vpop.f32.mrb[35].mxu0  ;;  %v14137_v23 = vld [vmem:[#allocation45_spill] sm:$0xff]  ;;  %v14138_v29 = vld [vmem:[#allocation46_spill] sm:$0xff] }
 0xc39   : > { %v5889_v26 = vsub.f32 %v5857_v6, %v5873_v39  ;;  %v5937_v10 = vadd.f32 %v5921_v57, %v5905_v41  ;;  %v5874_v49 = vmul.f32 %v5797_v21, %v14133_v55  ;;  %v5922_v8 = vmul.f32 %v5797_v21, %v14132_v14  ;;  %v14141_v42 = vld [vmem:[#allocation49_spill] sm:$0xff]  ;;  %v14142_v21 = vld [vmem:[#allocation50_spill] sm:$0xff] }
 0xc3a   : > { %v5892_v44 = vsub.f32 %v5860_v56, %v5876_v35  ;;  %v5940_v2 = vadd.f32 %v5924_v28, %v5908_v5  ;;  %v5909_v30 = vmul.f32 %v5651_v25, %v14137_v23  ;;  %v5864_v47 = vmul.f32 %v5654_v1, %v14138_v29  ;;  %v14140_v56 = vld [vmem:[#allocation48_spill] sm:$0xff] }
 0xc3b   : > { %v5890_v16 = vsub.f32 %v5858_v58, %v5874_v49  ;;  %v5938_v52 = vadd.f32 %v5922_v8, %v5906_v24  ;;  %v5912_v62 = vmul.f32 %v5654_v1, %v14139_v19  ;;  %v5862_v4 = vmul.f32 %v5652_v63, %v14140_v56  ;;  %v14143_v8 = vld [vmem:[#allocation51_spill] sm:$0xff] }
 0xc3c   : > { %v5954_v20 = vpack.c.bf16 %v5892_v44, %v5891_v34  ;;  %v13498_v54 = vpack.c.bf16 %v5940_v2, %v5939_v45  ;;  %v5910_v43 = vmul.f32 %v5652_v63, %v14141_v42  ;;  %v5915_v44 = vmul.f32 %v13463_v15, %v14143_v8  ;;  %v14144_v2 = vld [vmem:[#allocation52_spill] sm:$0xff] }
 0xc3d   : > { %v5953_v6 = vpack.c.bf16 %v5890_v16, %v5889_v26  ;;  %v13502_v3 = vpack.c.bf16 %v5938_v52, %v5937_v10  ;;  %v9399_v41 = vpop.f32.mrb[36].mxu0  ;;  %v5867_v26 = vmul.f32 %v13463_v15, %v14142_v21  ;;  %v14145_v52 = vld [vmem:[#allocation53_spill] sm:$0xff] }
 0xc3e   : > { %v5879_v5 = vmul.f32 %v9399_v41, %v14135_v13  ;;  %v5927_v51 = vmul.f32 %v9399_v41, %v14134_v32  ;;  %v5810_v59 = vpop.f32.mrb[37].mxu0  ;;  %v5865_v32 = vmul.f32 %v13465_v53, %v14144_v2  ;;  %v5913_v13 = vmul.f32 %v13465_v53, %v14145_v52  ;;  %v14149_v53 = vld [vmem:[#allocation57_spill] sm:$0xff] }
 0xc3f   : > { %v5877_v14 = vmul.f32 %v5810_v59, %v14137_v23  ;;  %v5925_v25 = vmul.f32 %v5810_v59, %v14136_v0  ;;  %v9400_v58 = vpop.f32.mrb[38].mxu0  ;;  %9409 = vmatprep.subr.bf16.mxu1 %v5953_v6  ;;  %9473 = vmatprep.subr.bf16.mxu0 %v5953_v6 }
 0xc40   : > { %v5895_v55 = vsub.f32 %v5863_v38, %v5879_v5  ;;  %v5943_v24 = vadd.f32 %v5927_v51, %v5911_v7  ;;  %v5880_v1 = vmul.f32 %v9400_v58, %v14139_v19  ;;  %v5928_v39 = vmul.f32 %v9400_v58, %v14138_v29  ;;  %v5813_v57 = vpop.f32.mrb[39].mxu0  ;;  %9410 = vmatpush3.bf16.msra.mxu1 %v5953_v6  ;;  %v14146_v7 = vld [vmem:[#allocation54_spill] sm:$0xff]  ;;  %v14147_v29 = vld [vmem:[#allocation55_spill] sm:$0xff] }
 0xc41   : > { %v5893_v36 = vsub.f32 %v5861_v11, %v5877_v14  ;;  %v5941_v34 = vadd.f32 %v5925_v25, %v5909_v30  ;;  %v5878_v45 = vmul.f32 %v5813_v57, %v14141_v42  ;;  %v5926_v63 = vmul.f32 %v5813_v57, %v14140_v56  ;;  %9474 = vmatpush3.bf16.msra.mxu0 %v5953_v6 }
 0xc42   : > { %v5896_v35 = vsub.f32 %v5864_v47, %v5880_v1  ;;  %v5944_v28 = vadd.f32 %v5928_v39, %v5912_v62  ;;  %9411 = vmatprep.subr.bf16.mxu1 %v5954_v20  ;;  %9475 = vmatprep.subr.bf16.mxu0 %v5954_v20  ;;  %v5868_v0 = vmul.f32 %v13467_v33, %v14146_v7  ;;  %v14148_v47 = vld [vmem:[#allocation56_spill] sm:$0xff]  ;;  %v14150_v1 = vld [vmem:[#allocation58_spill] sm:$0xff] }
 0xc43   : > { %v5894_v10 = vsub.f32 %v5862_v4, %v5878_v45  ;;  %v5942_v49 = vadd.f32 %v5926_v63, %v5910_v43  ;;  %v5916_v15 = vmul.f32 %v13467_v33, %v14147_v29  ;;  %v5866_v6 = vmul.f32 %v13469_v37, %v14148_v47  ;;  %v14152_v63 = vld [vmem:[#allocation60_spill] sm:$0xff] }
 0xc44   : > { %v5956_v38 = vpack.c.bf16 %v5896_v35, %v5895_v55  ;;  %v13521_v16 = vpack.c.bf16 %v5944_v28, %v5943_v24  ;;  %9412 = vmatpush3.bf16.msra.mxu1 %v5954_v20  ;;  %v5914_v56 = vmul.f32 %v13469_v37, %v14149_v53  ;;  %v5871_v39 = vmul.f32 %v13471_v27, %v14150_v1 }
 0xc45   : > { %v5955_v11 = vpack.c.bf16 %v5894_v10, %v5893_v36  ;;  %v13527_v23 = vpack.c.bf16 %v5942_v49, %v5941_v34  ;;  %9476 = vmatpush3.bf16.msra.mxu0 %v5954_v20  ;;  %v9403_v30 = vpop.f32.mrb[40].mxu0  ;;  %v14151_v34 = vld [vmem:[#allocation59_spill] sm:$0xff]  ;;  %v5869_v35 = vmul.f32 %v13473_v17, %v14152_v63  ;;  %v14154_v49 = vld [vmem:[#allocation62_spill] sm:$0xff] }
 0xc46   : > { %v5883_v41 = vmul.f32 %v9403_v30, %v14143_v8  ;;  %v5931_v19 = vmul.f32 %v9403_v30, %v14142_v21  ;;  %v5826_v62 = vpop.f32.mrb[41].mxu0  ;;  %v5919_v45 = vmul.f32 %v13471_v27, %v14151_v34  ;;  %v5872_v8 = vmul.f32 %v13475_v61, %v14154_v49 }
 0xc47   : > { %v5881_v4 = vmul.f32 %v5826_v62, %v14145_v52  ;;  %v5929_v5 = vmul.f32 %v5826_v62, %v14144_v2  ;;  %v9404_v20 = vpop.f32.mrb[42].mxu0  ;;  %9413 = vmatprep.subr.bf16.mxu1 %v5955_v11  ;;  %9477 = vmatprep.subr.bf16.mxu0 %v5955_v11  ;;  %v14155_v52 = vld [vmem:[#allocation63_spill] sm:$0xff] }
 0xc48   : > { %v5899_v51 = vsub.f32 %v5867_v26, %v5883_v41  ;;  %v5947_v33 = vadd.f32 %v5931_v19, %v5915_v44  ;;  %v5884_v59 = vmul.f32 %v9404_v20, %v14147_v29  ;;  %v5932_v42 = vmul.f32 %v9404_v20, %v14146_v7  ;;  %v5829_v43 = vpop.f32.mrb[43].mxu0  ;;  %9414 = vmatpush3.bf16.msra.mxu1 %v5955_v11  ;;  %v14153_v26 = vld [vmem:[#allocation61_spill] sm:$0xff] }
 0xc49   : > { %v5897_v14 = vsub.f32 %v5865_v32, %v5881_v4  ;;  %v5945_v25 = vadd.f32 %v5929_v5, %v5913_v13  ;;  %v5882_v58 = vmul.f32 %v5829_v43, %v14149_v53  ;;  %v5930_v37 = vmul.f32 %v5829_v43, %v14148_v47  ;;  %9478 = vmatpush3.bf16.msra.mxu0 %v5955_v11  ;;  %v14156_v13 = vld [vmem:[#allocation64_spill] sm:$0xff] }
 0xc4a   : > { %v5900_v55 = vsub.f32 %v5868_v0, %v5884_v59  ;;  %v5948_v24 = vadd.f32 %v5932_v42, %v5916_v15  ;;  %9415 = vmatprep.subr.bf16.mxu1 %v5956_v38  ;;  %9479 = vmatprep.subr.bf16.mxu0 %v5956_v38  ;;  %v5917_v10 = vmul.f32 %v13473_v17, %v14153_v26  ;;  %v14157_v17 = vld [vmem:[#allocation65_spill] sm:$0xff] }
 0xc4b   : > { %v5898_v57 = vsub.f32 %v5866_v6, %v5882_v58  ;;  %v5946_v36 = vadd.f32 %v5930_v37, %v5914_v56  ;;  %v5920_v27 = vmul.f32 %v13475_v61, %v14155_v52  ;;  %v5870_v7 = vmul.f32 %v13477_v22, %v14156_v13  ;;  %v14159_v58 = vld [vmem:[#allocation69_spill] sm:$0xff]  ;;  %v14160_v37 = vld [vmem:[#allocation71_spill] sm:$0xff] }
 0xc4c   : > { %v5958_v28 = vpack.c.bf16 %v5900_v55, %v5899_v51  ;;  %v13549_v21 = vpack.c.bf16 %v5948_v24, %v5947_v33  ;;  %9416 = vmatpush3.bf16.msra.mxu1 %v5956_v38  ;;  %v5918_v29 = vmul.f32 %v13477_v22, %v14157_v17 }
 0xc4d   : > { %v5957_v44 = vpack.c.bf16 %v5898_v57, %v5897_v14  ;;  %v13555_v2 = vpack.c.bf16 %v5946_v36, %v5945_v25  ;;  %9480 = vmatpush3.bf16.msra.mxu0 %v5956_v38  ;;  %v9407_v32 = vpop.f32.mrb[44].mxu0  ;;  %v14158_v25 = vld [vmem:[#allocation67_spill] sm:$0xff] }
 0xc4e   : > { %v5887_v0 = vmul.f32 %v9407_v32, %v14151_v34  ;;  %v5935_v11 = vmul.f32 %v9407_v32, %v14150_v1  ;;  %v5842_v30 = vpop.f32.mrb[45].mxu0 }
 0xc4f   : > { %v5885_v15 = vmul.f32 %v5842_v30, %v14153_v26  ;;  %v5933_v47 = vmul.f32 %v5842_v30, %v14152_v63  ;;  %v9408_v38 = vpop.f32.mrb[46].mxu0  ;;  %9417 = vmatprep.subr.bf16.mxu1 %v5957_v44  ;;  %9481 = vmatprep.subr.bf16.mxu0 %v5957_v44 }
 0xc50   : > { %v5903_v6 = vsub.f32 %v5871_v39, %v5887_v0  ;;  %v5951_v61 = vadd.f32 %v5935_v11, %v5919_v45  ;;  %v5888_v41 = vmul.f32 %v9408_v38, %v14155_v52  ;;  %v5936_v19 = vmul.f32 %v9408_v38, %v14154_v49  ;;  %v5845_v62 = vpop.f32.mrb[47].mxu0  ;;  %9418 = vmatpush3.bf16.msra.mxu1 %v5957_v44 }
 0xc51   : > { %v5901_v53 = vsub.f32 %v5869_v35, %v5885_v15  ;;  %v5949_v56 = vadd.f32 %v5933_v47, %v5917_v10  ;;  %v5886_v4 = vmul.f32 %v5845_v62, %v14157_v17  ;;  %v5934_v22 = vmul.f32 %v5845_v62, %v14156_v13  ;;  %9482 = vmatpush3.bf16.msra.mxu0 %v5957_v44 }
 0xc52   : > { %v5904_v5 = vsub.f32 %v5872_v8, %v5888_v41  ;;  %v5952_v20 = vadd.f32 %v5936_v19, %v5920_v27  ;;  %9419 = vmatprep.subr.bf16.mxu1 %v5958_v28  ;;  %9483 = vmatprep.subr.bf16.mxu0 %v5958_v28 }
 0xc53   : > { %v5902_v51 = vsub.f32 %v5870_v7, %v5886_v4  ;;  %v5950_v33 = vadd.f32 %v5934_v22, %v5918_v29 }
 0xc54   : > { %v5960_v59 = vpack.c.bf16 %v5904_v5, %v5903_v6  ;;  %v5968_v42 = vpack.c.bf16 %v5952_v20, %v5951_v61  ;;  %9420 = vmatpush3.bf16.msra.mxu1 %v5958_v28 }
 0xc55   : > { %v5959_v43 = vpack.c.bf16 %v5902_v51, %v5901_v53  ;;  %v5967_v14 = vpack.c.bf16 %v5950_v33, %v5949_v56  ;;  %9484 = vmatpush3.bf16.msra.mxu0 %v5958_v28 }
 0xc57   : > { %9421 = vmatprep.subr.bf16.mxu1 %v5959_v43  ;;  %9485 = vmatprep.subr.bf16.mxu0 %v5959_v43 }
 0xc58   : > { %9422 = vmatpush3.bf16.msra.mxu1 %v5959_v43 }
 0xc59   : > { %9486 = vmatpush3.bf16.msra.mxu0 %v5959_v43  ;;  %9423 = vmatprep.subr.bf16.mxu1 %v5960_v59 }
 0xc5a   : > { %9487 = vmatprep.subr.bf16.mxu0 %v5960_v59 }
 0xc5c   : > { %9424 = vmatpush3.bf16.msra.mxu1 %v5960_v59 }
 0xc5d   : > { %9488 = vmatpush3.bf16.msra.mxu0 %v5960_v59  ;;  %9441 = vmatprep.subr.bf16.mxu1 %v13502_v3 }
 0xc5e   : > { %9505 = vmatprep.subr.bf16.mxu0 %v13502_v3 }
 0xc5f   : > { %9426 = vmatmul.mubr.bf16.vlgmr.msra.gmra.mrb[48].mxu1 %v14118_v18 }
 0xc60   : > { %9490 = vmatmul.mubr.bf16.vlgmr.msra.gmra.mrb[48].mxu0 %v14158_v25  ;;  %9442 = vmatpush3.bf16.msra.mxu1 %v13502_v3 }
 0xc61   : > { %9506 = vmatpush3.bf16.msra.mxu0 %v13502_v3  ;;  %9443 = vmatprep.subr.bf16.mxu1 %v13498_v54  ;;  %v14161_v3 = vld [vmem:[#allocation73_spill] sm:$0xff] }
 0xc62   : > { %9507 = vmatprep.subr.bf16.mxu0 %v13498_v54  ;;  %9429 = vmatprep.mubr.bf16.mxu1 %v14119_v12 }
 0xc63   : > { %9493 = vmatprep.mubr.bf16.mxu0 %v14159_v58 }
 0xc64   : > { %9444 = vmatpush3.bf16.msra.mxu1 %v13498_v54 }
 0xc65   : > { %9508 = vmatpush3.bf16.msra.mxu0 %v13498_v54  ;;  %9445 = vmatprep.subr.bf16.mxu1 %v13527_v23  ;;  %v14162_v54 = vld [vmem:[#allocation75_spill] sm:$0xff] }
 0xc66   : > { %9509 = vmatprep.subr.bf16.mxu0 %v13527_v23 }
 0xc67   : > { %9430 = vmatmul.mubr.bf16.gmra.mrb[52].mxu1 %v14120_v50 }
 0xc68   : > { %9494 = vmatmul.mubr.bf16.gmra.mrb[52].mxu0 %v14160_v37  ;;  %9446 = vmatpush3.bf16.msra.mxu1 %v13527_v23 }
 0xc69   : > { %9510 = vmatpush3.bf16.msra.mxu0 %v13527_v23  ;;  %9447 = vmatprep.subr.bf16.mxu1 %v13521_v16  ;;  %v14163_v23 = vld [vmem:[#allocation77_spill] sm:$0xff] }
 0xc6a   : > { %9511 = vmatprep.subr.bf16.mxu0 %v13521_v16  ;;  %9433 = vmatprep.mubr.bf16.mxu1 %v14121_v48 }
 0xc6b   : > { %9497 = vmatprep.mubr.bf16.mxu0 %v14161_v3 }
 0xc6c   : > { %9448 = vmatpush3.bf16.msra.mxu1 %v13521_v16 }
 0xc6d   : > { %9512 = vmatpush3.bf16.msra.mxu0 %v13521_v16  ;;  %9449 = vmatprep.subr.bf16.mxu1 %v13555_v2  ;;  %v14164_v16 = vld [vmem:[#allocation79_spill] sm:$0xff] }
 0xc6e   : > { %9513 = vmatprep.subr.bf16.mxu0 %v13555_v2 }
 0xc6f   : > { %9434 = vmatmul.mubr.bf16.gmra.mrb[56].mxu1 %v14122_v31 }
 0xc70   : > { %9498 = vmatmul.mubr.bf16.gmra.mrb[56].mxu0 %v14162_v54  ;;  %9450 = vmatpush3.bf16.msra.mxu1 %v13555_v2 }
 0xc71   : > { %9514 = vmatpush3.bf16.msra.mxu0 %v13555_v2  ;;  %9451 = vmatprep.subr.bf16.mxu1 %v13549_v21 }
 0xc72   : > { %9515 = vmatprep.subr.bf16.mxu0 %v13549_v21  ;;  %9437 = vmatprep.mubr.bf16.mxu1 %v14123_v46 }
 0xc73   : > { %9501 = vmatprep.mubr.bf16.mxu0 %v14163_v23 }
 0xc74   : > { %9452 = vmatpush3.bf16.msra.mxu1 %v13549_v21 }
 0xc75   : > { %9516 = vmatpush3.bf16.msra.mxu0 %v13549_v21  ;;  %9453 = vmatprep.subr.bf16.mxu1 %v5967_v14 }
 0xc76   : > { %9517 = vmatprep.subr.bf16.mxu0 %v5967_v14 }
 0xc77   : > { %9438 = vmatmul.mubr.bf16.gmra.mrb[60].mxu1 %v14124_v60 }
 0xc78   : > { %9502 = vmatmul.mubr.bf16.gmra.mrb[60].mxu0 %v14164_v16  ;;  %9454 = vmatpush3.bf16.msra.mxu1 %v5967_v14 }
 0xc79   : > { %9518 = vmatpush3.bf16.msra.mxu0 %v5967_v14  ;;  %9455 = vmatprep.subr.bf16.mxu1 %v5968_v42 }
 0xc7a   : > { %9519 = vmatprep.subr.bf16.mxu0 %v5968_v42  ;;  %9457 = vmatprep.mubr.bf16.mxu1 %v14125_v40 }
 0xc7b   : > { %9521 = vmatprep.mubr.bf16.mxu0 %v14112_v9 }
 0xc7c   : > { %9456 = vmatpush3.bf16.msra.mxu1 %v5968_v42 }
 0xc7d   : > { %9520 = vmatpush3.bf16.msra.mxu0 %v5968_v42  ;;  %9537 = vmatprep.subr.bf16.mxu1 %v14112_v9 }
 0xc7e   : > { %9601 = vmatprep.subr.bf16.mxu0 %v14112_v9 }
 0xc7f   : > { %9458 = vmatmul.mubr.bf16.vlgmr.msra.gmra.mrb[64].mxu1 %v14158_v25 }
 0xc80   : > { %9522 = vmatmul.mubr.bf16.vlgmr.msra.gmra.mrb[48].mxu0 %v14118_v18  ;;  %9461 = vmatprep.mubr.bf16.mxu1 %v14159_v58 }
 0xc81   : > { %9525 = vmatprep.mubr.bf16.mxu0 %v14119_v12  ;;  %9602 = vmatpush3.bf16.msra.mxu0 %v14112_v9 }
 0xc82   : > { %9538 = vmatpush3.bf16.msra.mxu1 %v14112_v9  ;;  %9603 = vmatprep.subr.bf16.mxu0 %v14118_v18 }
 0xc83   : > { %9539 = vmatprep.subr.bf16.mxu1 %v14118_v18 }
 0xc85   : > { %9604 = vmatpush3.bf16.msra.mxu0 %v14118_v18 }
 0xc86   : > { %9540 = vmatpush3.bf16.msra.mxu1 %v14118_v18  ;;  %9605 = vmatprep.subr.bf16.mxu0 %v14119_v12 }
 0xc87   : > { %9462 = vmatmul.mubr.bf16.gmra.mrb[68].mxu1 %v14160_v37  ;;  %9541 = vmatprep.subr.bf16.mxu1 %v14119_v12 }
 0xc88   : > { %9526 = vmatmul.mubr.bf16.gmra.mrb[52].mxu0 %v14120_v50  ;;  %9465 = vmatprep.mubr.bf16.mxu1 %v14161_v3 }
 0xc89   : > { %9529 = vmatprep.mubr.bf16.mxu0 %v14121_v48  ;;  %9606 = vmatpush3.bf16.msra.mxu0 %v14119_v12 }
 0xc8a   : > { %9542 = vmatpush3.bf16.msra.mxu1 %v14119_v12  ;;  %9607 = vmatprep.subr.bf16.mxu0 %v14120_v50 }
 0xc8b   : > { %9543 = vmatprep.subr.bf16.mxu1 %v14120_v50 }
 0xc8d   : > { %9608 = vmatpush3.bf16.msra.mxu0 %v14120_v50 }
 0xc8e   : > { %9544 = vmatpush3.bf16.msra.mxu1 %v14120_v50  ;;  %9609 = vmatprep.subr.bf16.mxu0 %v14121_v48 }
 0xc8f   : > { %9466 = vmatmul.mubr.bf16.gmra.mrb[72].mxu1 %v14162_v54  ;;  %9545 = vmatprep.subr.bf16.mxu1 %v14121_v48 }
 0xc90   : > { %9530 = vmatmul.mubr.bf16.gmra.mrb[56].mxu0 %v14122_v31  ;;  %9469 = vmatprep.mubr.bf16.mxu1 %v14163_v23 }
 0xc91   : > { %9533 = vmatprep.mubr.bf16.mxu0 %v14123_v46  ;;  %9610 = vmatpush3.bf16.msra.mxu0 %v14121_v48 }
 0xc92   : > { %9546 = vmatpush3.bf16.msra.mxu1 %v14121_v48  ;;  %9611 = vmatprep.subr.bf16.mxu0 %v14122_v31 }
 0xc93   : > { %9547 = vmatprep.subr.bf16.mxu1 %v14122_v31 }
 0xc95   : > { %9612 = vmatpush3.bf16.msra.mxu0 %v14122_v31 }
 0xc96   : > { %9548 = vmatpush3.bf16.msra.mxu1 %v14122_v31  ;;  %9613 = vmatprep.subr.bf16.mxu0 %v14123_v46 }
 0xc97   : > { %9470 = vmatmul.mubr.bf16.gmra.mrb[76].mxu1 %v14164_v16  ;;  %9549 = vmatprep.subr.bf16.mxu1 %v14123_v46 }
 0xc98   : > { %9534 = vmatmul.mubr.bf16.gmra.mrb[60].mxu0 %v14124_v60 }
 0xc99   : > { %9614 = vmatpush3.bf16.msra.mxu0 %v14123_v46 }
 0xc9a   : > { %9550 = vmatpush3.bf16.msra.mxu1 %v14123_v46  ;;  %9615 = vmatprep.subr.bf16.mxu0 %v14124_v60 }
 0xc9b   : > { %9551 = vmatprep.subr.bf16.mxu1 %v14124_v60 }
 0xc9d   : > { %9616 = vmatpush3.bf16.msra.mxu0 %v14124_v60 }
 0xc9e   : > { %9552 = vmatpush3.bf16.msra.mxu1 %v14124_v60  ;;  %9633 = vmatprep.subr.bf16.mxu0 %v14125_v40 }
 0xc9f   : > { %9569 = vmatprep.subr.bf16.mxu1 %v14125_v40 }
 0xd32   : > { %v9427_v9 = vpop.f32.mrb[48].mxu1 }
 0xd33   : > { %v6003_v18 = vpop.f32.mrb[49].mxu1 }
 0xd34   : > { %v9428_v12 = vpop.f32.mrb[50].mxu1 }
 0xd35   : > { %v6006_v50 = vpop.f32.mrb[51].mxu1 }
 0xd3a   : > { %v9431_v48 = vpop.f32.mrb[52].mxu1 }
 0xd3b   : > { %v6019_v31 = vpop.f32.mrb[53].mxu1 }
 0xd3c   : > { %v9432_v55 = vpop.f32.mrb[54].mxu1 }
 0xd3d   : > { %v6022_v46 = vpop.f32.mrb[55].mxu1 }
 0xd42   : > { %v13659_v24 = vpop.f32.mrb[56].mxu1 }
 0xd43   : > { %v13661_v1 = vpop.f32.mrb[57].mxu1 }
 0xd44   : > { %v13663_v39 = vpop.f32.mrb[58].mxu1 }
 0xd45   : > { %v13665_v57 = vpop.f32.mrb[59].mxu1 }
 0xd4a   : > { %v13667_v60 = vpop.f32.mrb[60].mxu1 }
 0xd4b   : > { %v13669_v36 = vpop.f32.mrb[61].mxu1 }
 0xd4c   : > { %v13671_v34 = vpop.f32.mrb[62].mxu1 }
 0xd4d   : > { %v13673_v45 = vpop.f32.mrb[63].mxu1 }
 0xd52   : > { %v9459_v63 = vpop.f32.mrb[64].mxu1 }
 0xd53   : > { %v6165_v35 = vsub.f32 %v9427_v9, %v9459_v63  ;;  %v9523_v28 = vpop.f32.mrb[48].mxu0  ;;  %v6100_v21 = vpop.f32.mrb[65].mxu1 }
 0xd54   : > { %v6163_v26 = vsub.f32 %v6003_v18, %v6100_v21  ;;  %v6310_v10 = vpop.f32.mrb[49].mxu0  ;;  %v9460_v49 = vpop.f32.mrb[66].mxu1 }
 0xd55   : > { %v6166_v8 = vsub.f32 %v9428_v12, %v9460_v49  ;;  %v9524_v44 = vpop.f32.mrb[50].mxu0  ;;  %v6103_v2 = vpop.f32.mrb[67].mxu1  ;;  %v6813_v49 = vld [vmem:[#allocation21 + $0x20] sm:$0xff] }
 0xd56   : > { %v13675_v32 = vpack.c.bf16 %v9524_v44, %v9523_v28  ;;  %v6164_v52 = vsub.f32 %v6006_v50, %v6103_v2  ;;  %v6313_v27 = vpop.f32.mrb[51].mxu0  ;;  %v6815_v2 = vld [vmem:[#allocation21 + $0x30] sm:$0xff] }
 0xd57   : > { %v13677_v13 = vpack.c.bf16 %v6166_v8, %v6165_v35  ;;  %v13679_v7 = vpack.c.bf16 %v6313_v27, %v6310_v10  ;;  %v6814_v8 = vld [vmem:[#allocation21 + $0x28] sm:$0xff]  ;;  %v6817_v27 = vld [vmem:[#allocation21 + $0x40] sm:$0xff] }
 0xd58   : > { %v13681_v0 = vpack.c.bf16 %v6164_v52, %v6163_v26  ;;  %v9729_v44 = vpack.c.bf16 %v6814_v8, %v6813_v49 }
 0xd59   : > { %9617 = vmatprep.mubr.bf16.mxu0 %v13679_v7 }
 0xd5a   : > { %9618 = vmatmul.mubr.bf16.vlgmr.msra.gmra.mrb[64].mxu0 %v13675_v32  ;;  %v9463_v11 = vpop.f32.mrb[68].mxu1  ;;  %9553 = vmatprep.mubr.bf16.mxu1 %v13681_v0 }
 0xd5b   : > { %v6169_v30 = vsub.f32 %v9431_v48, %v9463_v11  ;;  %v9527_v17 = vpop.f32.mrb[52].mxu0  ;;  %9634 = vmatpush3.bf16.msra.mxu0 %v14125_v40  ;;  %v6116_v29 = vpop.f32.mrb[69].mxu1  ;;  %9554 = vmatmul.mubr.bf16.vlgmr.msra.gmra.mrb[80].mxu1 %v13677_v13  ;;  %v6820_v11 = vld [vmem:[#allocation21 + $0x58] sm:$0xff] }
 0xd5c   : > { %v6167_v15 = vsub.f32 %v6019_v31, %v6116_v29  ;;  %v6326_v47 = vpop.f32.mrb[53].mxu0  ;;  %v9464_v38 = vpop.f32.mrb[70].mxu1  ;;  %9570 = vmatpush3.bf16.msra.mxu1 %v14125_v40  ;;  %9635 = vmatprep.subr.bf16.mxu0 %v14158_v25  ;;  %v6822_v29 = vld [vmem:[#allocation21 + $0x68] sm:$0xff] }
 0xd5d   : > { %v6170_v6 = vsub.f32 %v9432_v55, %v9464_v38  ;;  %v9528_v61 = vpop.f32.mrb[54].mxu0  ;;  %v6119_v41 = vpop.f32.mrb[71].mxu1  ;;  %9571 = vmatprep.subr.bf16.mxu1 %v14158_v25  ;;  %v6824_v38 = vld [vmem:[#allocation21 + $0x78] sm:$0xff] }
 0xd5e   : > { %v13691_v19 = vpack.c.bf16 %v9528_v61, %v9527_v17  ;;  %v6168_v62 = vsub.f32 %v6022_v46, %v6119_v41  ;;  %v6329_v53 = vpop.f32.mrb[55].mxu0  ;;  %v6821_v17 = vld [vmem:[#allocation21 + $0x60] sm:$0xff] }
 0xd5f   : > { %v13693_v56 = vpack.c.bf16 %v6170_v6, %v6169_v30  ;;  %v13695_v4 = vpack.c.bf16 %v6329_v53, %v6326_v47  ;;  %9636 = vmatpush3.bf16.msra.mxu0 %v14158_v25  ;;  %v6823_v47 = vld [vmem:[#allocation21 + $0x70] sm:$0xff] }
 0xd60   : > { %v13698_v22 = vpack.c.bf16 %v6168_v62, %v6167_v15  ;;  %9572 = vmatpush3.bf16.msra.mxu1 %v14158_v25  ;;  %9637 = vmatprep.subr.bf16.mxu0 %v14159_v58  ;;  %v9745_v15 = vpack.c.bf16 %v6822_v29, %v6821_v17  ;;  %v9749_v6 = vpack.c.bf16 %v6824_v38, %v6823_v47 }
 0xd61   : > { %9621 = vmatprep.mubr.bf16.mxu0 %v13695_v4  ;;  %9573 = vmatprep.subr.bf16.mxu1 %v14159_v58 }
 0xd62   : > { %9622 = vmatmul.mubr.bf16.gmra.mrb[68].mxu0 %v13691_v19  ;;  %v9467_v40 = vpop.f32.mrb[72].mxu1  ;;  %9557 = vmatprep.mubr.bf16.mxu1 %v13698_v22 }
 0xd63   : > { %v6173_v5 = vsub.f32 %v13659_v24, %v9467_v40  ;;  %v9531_v20 = vpop.f32.mrb[56].mxu0  ;;  %9638 = vmatpush3.bf16.msra.mxu0 %v14159_v58  ;;  %v6132_v51 = vpop.f32.mrb[73].mxu1  ;;  %9558 = vmatmul.mubr.bf16.gmra.mrb[84].mxu1 %v13693_v56 }
 0xd64   : > { %v6171_v33 = vsub.f32 %v13661_v1, %v6132_v51  ;;  %v6342_v59 = vpop.f32.mrb[57].mxu0  ;;  %v9468_v42 = vpop.f32.mrb[74].mxu1  ;;  %9574 = vmatpush3.bf16.msra.mxu1 %v14159_v58  ;;  %9639 = vmatprep.subr.bf16.mxu0 %v14160_v37 }
 0xd65   : > { %v6174_v43 = vsub.f32 %v13663_v39, %v9468_v42  ;;  %v9532_v14 = vpop.f32.mrb[58].mxu0  ;;  %v6135_v25 = vpop.f32.mrb[75].mxu1  ;;  %9575 = vmatprep.subr.bf16.mxu1 %v14160_v37 }
 0xd66   : > { %v6386_v9 = vpack.c.bf16 %v9532_v14, %v9531_v20  ;;  %v6172_v18 = vsub.f32 %v13665_v57, %v6135_v25  ;;  %v6345_v12 = vpop.f32.mrb[59].mxu0 }
 0xd67   : > { %v6378_v50 = vpack.c.bf16 %v6174_v43, %v6173_v5  ;;  %v6385_v48 = vpack.c.bf16 %v6345_v12, %v6342_v59  ;;  %9640 = vmatpush3.bf16.msra.mxu0 %v14160_v37 }
 0xd68   : > { %v6377_v31 = vpack.c.bf16 %v6172_v18, %v6171_v33  ;;  %9576 = vmatpush3.bf16.msra.mxu1 %v14160_v37  ;;  %9641 = vmatprep.subr.bf16.mxu0 %v14161_v3 }
 0xd69   : > { %9625 = vmatprep.mubr.bf16.mxu0 %v6385_v48  ;;  %9577 = vmatprep.subr.bf16.mxu1 %v14161_v3 }
 0xd6a   : > { %9626 = vmatmul.mubr.bf16.gmra.mrb[72].mxu0 %v6386_v9  ;;  %v9471_v58 = vpop.f32.mrb[76].mxu1  ;;  %9561 = vmatprep.mubr.bf16.mxu1 %v6377_v31 }
 0xd6b   : > { %v6177_v55 = vsub.f32 %v13667_v60, %v9471_v58  ;;  %v9535_v46 = vpop.f32.mrb[60].mxu0  ;;  %9642 = vmatpush3.bf16.msra.mxu0 %v14161_v3  ;;  %v6148_v24 = vpop.f32.mrb[77].mxu1  ;;  %9562 = vmatmul.mubr.bf16.gmra.mrb[88].mxu1 %v6378_v50 }
 0xd6c   : > { %v6175_v1 = vsub.f32 %v13669_v36, %v6148_v24  ;;  %v6358_v39 = vpop.f32.mrb[61].mxu0  ;;  %v9472_v57 = vpop.f32.mrb[78].mxu1  ;;  %9578 = vmatpush3.bf16.msra.mxu1 %v14161_v3  ;;  %9643 = vmatprep.subr.bf16.mxu0 %v14162_v54  ;;  %v6809_v3 = vld [vmem:[#allocation21] sm:$0xff] }
 0xd6d   : > { %v6178_v37 = vsub.f32 %v13671_v34, %v9472_v57  ;;  %v9536_v63 = vpop.f32.mrb[62].mxu0  ;;  %v6151_v35 = vpop.f32.mrb[79].mxu1  ;;  %9579 = vmatprep.subr.bf16.mxu1 %v14162_v54  ;;  %v6812_v34 = vld [vmem:[#allocation21 + $0x18] sm:$0xff] }
 0xd6e   : > { %v6388_v60 = vpack.c.bf16 %v9536_v63, %v9535_v46  ;;  %v6176_v28 = vsub.f32 %v13673_v45, %v6151_v35  ;;  %v6361_v21 = vpop.f32.mrb[63].mxu0 }
 0xd6f   : > { %v6380_v26 = vpack.c.bf16 %v6178_v37, %v6177_v55  ;;  %v6387_v10 = vpack.c.bf16 %v6361_v21, %v6358_v39  ;;  %9644 = vmatpush3.bf16.msra.mxu0 %v14162_v54 }
 0xd70   : > { %v6379_v36 = vpack.c.bf16 %v6176_v28, %v6175_v1  ;;  %9580 = vmatpush3.bf16.msra.mxu1 %v14162_v54  ;;  %9645 = vmatprep.subr.bf16.mxu0 %v14163_v23  ;;  %v6810_v54 = vld [vmem:[#allocation21 + $0x8] sm:$0xff] }
 0xd71   : > { %9629 = vmatprep.mubr.bf16.mxu0 %v6387_v10  ;;  %9581 = vmatprep.subr.bf16.mxu1 %v14163_v23 }
 0xd72   : > { %9630 = vmatmul.mubr.bf16.gmra.mrb[76].mxu0 %v6388_v60  ;;  %9565 = vmatprep.mubr.bf16.mxu1 %v6379_v36 }
 0xd73   : > { %9646 = vmatpush3.bf16.msra.mxu0 %v14163_v23  ;;  %9649 = vmatprep.mubr.bf16.mxu0 %v13681_v0  ;;  %v6819_v0 = vld [vmem:[#allocation21 + $0x50] sm:$0xff] }
 0xd74   : > { %9566 = vmatmul.mubr.bf16.gmra.mrb[92].mxu1 %v6380_v26  ;;  %9647 = vmatprep.subr.bf16.mxu0 %v14164_v16  ;;  %v9741_v30 = vpack.c.bf16 %v6820_v11, %v6819_v0 }
 0xd75   : > { %9582 = vmatpush3.bf16.msra.mxu1 %v14163_v23  ;;  %9585 = vmatprep.mubr.bf16.mxu1 %v13679_v7  ;;  %v9721_v23 = vpack.c.bf16 %v6810_v54, %v6809_v3 }
 0xd76   : > { %9583 = vmatprep.subr.bf16.mxu1 %v14164_v16 }
 0xd77   : > { %9648 = vmatpush3.bf16.msra.mxu0 %v14164_v16 }
 0xd79   : > { %9584 = vmatpush3.bf16.msra.mxu1 %v14164_v16  ;;  %v6811_v16 = vld [vmem:[#allocation21 + $0x10] sm:$0xff] }
 0xd7a   : > { %9650 = vmatmul.mubr.bf16.vlgmr.msra.gmra.mrb[64].mxu0 %v13677_v13  ;;  %9722 = vmatprep.subr.bf16.mxu1 %v9721_v23  ;;  %v9725_v45 = vpack.c.bf16 %v6812_v34, %v6811_v16  ;;  %v6818_v13 = vld [vmem:[#allocation21 + $0x48] sm:$0xff] }
 0xd7b   : > { %9653 = vmatprep.mubr.bf16.mxu0 %v13698_v22  ;;  %v9737_v7 = vpack.c.bf16 %v6818_v13, %v6817_v27 }
 0xd7c   : > { %9586 = vmatmul.mubr.bf16.vlgmr.msra.gmra.mrb[96].mxu1 %v13675_v32  ;;  %v6816_v32 = vld [vmem:[#allocation21 + $0x38] sm:$0xff] }
 0xd7d   : > { %9589 = vmatprep.mubr.bf16.mxu1 %v13695_v4  ;;  %9724 = vmatpush3.bf16.msra.mxu1 %v9721_v23  ;;  %v9733_v52 = vpack.c.bf16 %v6816_v32, %v6815_v2 }
 0xd7e   : > { %9726 = vmatprep.subr.bf16.mxu1 %v9725_v45 }
 0xd81   : > { %9728 = vmatpush3.bf16.msra.mxu1 %v9725_v45 }
 0xd82   : > { %9654 = vmatmul.mubr.bf16.gmra.mrb[68].mxu0 %v13693_v56  ;;  %9730 = vmatprep.subr.bf16.mxu1 %v9729_v44 }
 0xd83   : > { %9657 = vmatprep.mubr.bf16.mxu0 %v6377_v31 }
 0xd84   : > { %9590 = vmatmul.mubr.bf16.gmra.mrb[100].mxu1 %v13691_v19 }
 0xd85   : > { %9593 = vmatprep.mubr.bf16.mxu1 %v6385_v48  ;;  %9732 = vmatpush3.bf16.msra.mxu1 %v9729_v44 }
 0xd86   : > { %9734 = vmatprep.subr.bf16.mxu1 %v9733_v52 }
 0xd89   : > { %9736 = vmatpush3.bf16.msra.mxu1 %v9733_v52 }
 0xd8a   : > { %9658 = vmatmul.mubr.bf16.gmra.mrb[72].mxu0 %v6378_v50  ;;  %9738 = vmatprep.subr.bf16.mxu1 %v9737_v7 }
 0xd8b   : > { %9661 = vmatprep.mubr.bf16.mxu0 %v6379_v36 }
 0xd8c   : > { %9594 = vmatmul.mubr.bf16.gmra.mrb[104].mxu1 %v6386_v9 }
 0xd8d   : > { %9597 = vmatprep.mubr.bf16.mxu1 %v6387_v10  ;;  %9740 = vmatpush3.bf16.msra.mxu1 %v9737_v7 }
 0xd8e   : > { %9742 = vmatprep.subr.bf16.mxu1 %v9741_v30 }
 0xd91   : > { %9744 = vmatpush3.bf16.msra.mxu1 %v9741_v30 }
 0xd92   : > { %9662 = vmatmul.mubr.bf16.gmra.mrb[76].mxu0 %v6380_v26  ;;  %9746 = vmatprep.subr.bf16.mxu1 %v9745_v15 }
 0xd94   : > { %9598 = vmatmul.mubr.bf16.gmra.mrb[108].mxu1 %v6388_v60 }
 0xd95   : > { %9748 = vmatpush3.bf16.msra.mxu1 %v9745_v15 }
 0xd96   : > { %9750 = vmatprep.subr.bf16.mxu1 %v9749_v6 }
 0xd99   : > { %9752 = vmatpush3.bf16.msra.mxu1 %v9749_v6 }
 0xe2e   : > { %v9555_v61 = vpop.f32.mrb[80].mxu1 }
 0xe2f   : > { %v6423_v41 = vpop.f32.mrb[81].mxu1 }
 0xe30   : > { %v9556_v19 = vpop.f32.mrb[82].mxu1 }
 0xe31   : > { %v6426_v62 = vpop.f32.mrb[83].mxu1 }
 0xe36   : > { %v9559_v53 = vpop.f32.mrb[84].mxu1 }
 0xe37   : > { %v6439_v56 = vpop.f32.mrb[85].mxu1 }
 0xe38   : > { %v9560_v4 = vpop.f32.mrb[86].mxu1 }
 0xe39   : > { %v6442_v22 = vpop.f32.mrb[87].mxu1 }
 0xe3e   : > { %v13745_v40 = vpop.f32.mrb[88].mxu1 }
 0xe3f   : > { %v13747_v5 = vpop.f32.mrb[89].mxu1 }
 0xe40   : > { %v13749_v20 = vpop.f32.mrb[90].mxu1 }
 0xe41   : > { %v13751_v51 = vpop.f32.mrb[91].mxu1 }
 0xe47   : > { %v13753_v33 = vpop.f32.mrb[92].mxu1 }
 0xe48   : > { %v13755_v59 = vpop.f32.mrb[93].mxu1 }
 0xe49   : > { %v13757_v42 = vpop.f32.mrb[94].mxu1 }
 0xe4a   : > { %v13759_v43 = vpop.f32.mrb[95].mxu1 }
 0xe4d   : > { %v9651_v14 = vpop.f32.mrb[64].mxu0 }
 0xe4e   : > { %v6730_v25 = vpop.f32.mrb[65].mxu0  ;;  %v6843_v55 = vmul.f32 %v9651_v14, %v9651_v14 }
 0xe4f   : > { %v9587_v9 = vpop.f32.mrb[96].mxu1  ;;  %v9652_v18 = vpop.f32.mrb[66].mxu0  ;;  %v6841_v39 = vmul.f32 %v6730_v25, %v6730_v25 }
 0xe50   : > { %v6585_v12 = vsub.f32 %v9555_v61, %v9587_v9  ;;  %v6520_v50 = vpop.f32.mrb[97].mxu1  ;;  %v6733_v48 = vpop.f32.mrb[67].mxu0  ;;  %v6844_v35 = vmul.f32 %v9652_v18, %v9652_v18 }
 0xe51   : > { %v6583_v31 = vsub.f32 %v6423_v41, %v6520_v50  ;;  %v9588_v58 = vpop.f32.mrb[98].mxu1  ;;  %v6842_v21 = vmul.f32 %v6733_v48, %v6733_v48 }
 0xe52   : > { %v6827_v46 = vmul.f32 %v6585_v12, %v6585_v12  ;;  %v6586_v24 = vsub.f32 %v9556_v19, %v9588_v58  ;;  %v6523_v1 = vpop.f32.mrb[99].mxu1 }
 0xe53   : > { %v6825_v57 = vmul.f32 %v6583_v31, %v6583_v31  ;;  %v6584_v37 = vsub.f32 %v6426_v62, %v6523_v1 }
 0xe54   : > { %v6859_v63 = vadd.f32 %v6843_v55, %v6827_v46  ;;  %v6828_v60 = vmul.f32 %v6586_v24, %v6586_v24 }
 0xe55   : > { %v6857_v28 = vadd.f32 %v6841_v39, %v6825_v57  ;;  %v6826_v26 = vmul.f32 %v6584_v37, %v6584_v37  ;;  %v9655_v10 = vpop.f32.mrb[68].mxu0 }
 0xe56   : > { %v6860_v36 = vadd.f32 %v6844_v35, %v6828_v60  ;;  %v6746_v3 = vpop.f32.mrb[69].mxu0  ;;  %v6847_v2 = vmul.f32 %v9655_v10, %v9655_v10 }
 0xe57   : > { %v6858_v54 = vadd.f32 %v6842_v21, %v6826_v26  ;;  %v9591_v23 = vpop.f32.mrb[100].mxu1  ;;  %v9656_v16 = vpop.f32.mrb[70].mxu0  ;;  %9697 = vmatprep.mubr.f32.mxu1 %v6857_v28  ;;  %v6845_v13 = vmul.f32 %v6746_v3, %v6746_v3 }
 0xe58   : > { %v6589_v34 = vsub.f32 %v9559_v53, %v9591_v23  ;;  %v6536_v45 = vpop.f32.mrb[101].mxu1  ;;  %v6749_v49 = vpop.f32.mrb[71].mxu0  ;;  %v6848_v30 = vmul.f32 %v9656_v16, %v9656_v16 }
 0xe59   : > { %v6587_v8 = vsub.f32 %v6439_v56, %v6536_v45  ;;  %v9592_v44 = vpop.f32.mrb[102].mxu1  ;;  %9698 = vmatmul.mubr.f32.vlgmr.msra.gmra.mrb[112].mxu1 %v6858_v54  ;;  %v6846_v15 = vmul.f32 %v6749_v49, %v6749_v49 }
 0xe5a   : > { %v6831_v32 = vmul.f32 %v6589_v34, %v6589_v34  ;;  %v6590_v52 = vsub.f32 %v9560_v4, %v9592_v44  ;;  %v6539_v27 = vpop.f32.mrb[103].mxu1  ;;  %9700 = vmatprep.mubr.f32.mxu1 %v6859_v63 }
 0xe5b   : > { %v6829_v7 = vmul.f32 %v6587_v8, %v6587_v8  ;;  %v6588_v0 = vsub.f32 %v6442_v22, %v6539_v27 }
 0xe5c   : > { %v6863_v11 = vadd.f32 %v6847_v2, %v6831_v32  ;;  %v6832_v17 = vmul.f32 %v6590_v52, %v6590_v52  ;;  %v6793_v32 = vld [vmem:[#allocation19] sm:$0xff] }
 0xe5d   : > { %v6861_v29 = vadd.f32 %v6845_v13, %v6829_v7  ;;  %v6830_v47 = vmul.f32 %v6588_v0, %v6588_v0  ;;  %v9659_v38 = vpop.f32.mrb[72].mxu0  ;;  %9701 = vmatmul.mubr.f32.gmra.mrb[114].mxu1 %v6860_v36 }
 0xe5e   : > { %v6864_v6 = vadd.f32 %v6848_v30, %v6832_v17  ;;  %v6762_v61 = vpop.f32.mrb[73].mxu0  ;;  %v6851_v25 = vmul.f32 %v9659_v38, %v9659_v38  ;;  %v6796_v30 = vld [vmem:[#allocation19 + $0x18] sm:$0xff] }
 0xe5f   : > { %v6862_v41 = vadd.f32 %v6846_v15, %v6830_v47  ;;  %v9595_v19 = vpop.f32.mrb[104].mxu1  ;;  %v9660_v62 = vpop.f32.mrb[74].mxu0  ;;  %9703 = vmatprep.mubr.f32.mxu1 %v6861_v29  ;;  %v6849_v50 = vmul.f32 %v6762_v61, %v6762_v61  ;;  %v6797_v15 = vld [vmem:[#allocation19 + $0x20] sm:$0xff]  ;;  %v6798_v61 = vld [vmem:[#allocation19 + $0x28] sm:$0xff] }
 0xe60   : > { %v6593_v53 = vsub.f32 %v13745_v40, %v9595_v19  ;;  %v6552_v56 = vpop.f32.mrb[105].mxu1  ;;  %v6765_v4 = vpop.f32.mrb[75].mxu0  ;;  %v6852_v55 = vmul.f32 %v9660_v62, %v9660_v62 }
 0xe61   : > { %v6591_v22 = vsub.f32 %v13747_v5, %v6552_v56  ;;  %v9596_v14 = vpop.f32.mrb[106].mxu1  ;;  %9704 = vmatmul.mubr.f32.gmra.mrb[116].mxu1 %v6862_v41  ;;  %v6850_v24 = vmul.f32 %v6765_v4, %v6765_v4 }
 0xe62   : > { %v6835_v9 = vmul.f32 %v6593_v53, %v6593_v53  ;;  %v6594_v18 = vsub.f32 %v13749_v20, %v9596_v14  ;;  %v6555_v12 = vpop.f32.mrb[107].mxu1  ;;  %9706 = vmatprep.mubr.f32.mxu1 %v6863_v11  ;;  %v6799_v53 = vld [vmem:[#allocation19 + $0x30] sm:$0xff]  ;;  %v6800_v14 = vld [vmem:[#allocation19 + $0x38] sm:$0xff] }
 0xe63   : > { %v6833_v48 = vmul.f32 %v6591_v22, %v6591_v22  ;;  %v6592_v31 = vsub.f32 %v13751_v51, %v6555_v12  ;;  %v6801_v12 = vld [vmem:[#allocation19 + $0x40] sm:$0xff] }
 0xe64   : > { %v6867_v58 = vadd.f32 %v6851_v25, %v6835_v9  ;;  %v6836_v46 = vmul.f32 %v6594_v18, %v6594_v18 }
 0xe65   : > { %v6865_v40 = vadd.f32 %v6849_v50, %v6833_v48  ;;  %v6834_v1 = vmul.f32 %v6592_v31, %v6592_v31  ;;  %v9663_v39 = vpop.f32.mrb[76].mxu0  ;;  %9707 = vmatmul.mubr.f32.gmra.mrb[118].mxu1 %v6864_v6 }
 0xe66   : > { %v6868_v5 = vadd.f32 %v6852_v55, %v6836_v46  ;;  %v6778_v57 = vpop.f32.mrb[77].mxu0  ;;  %v6855_v26 = vmul.f32 %v9663_v39, %v9663_v39 }
 0xe67   : > { %v6866_v37 = vadd.f32 %v6850_v24, %v6834_v1  ;;  %v9599_v63 = vpop.f32.mrb[108].mxu1  ;;  %v9664_v35 = vpop.f32.mrb[78].mxu0  ;;  %9709 = vmatprep.mubr.f32.mxu1 %v6865_v40  ;;  %v6853_v54 = vmul.f32 %v6778_v57, %v6778_v57  ;;  %v6803_v24 = vld [vmem:[#allocation19 + $0x50] sm:$0xff]  ;;  %v6804_v57 = vld [vmem:[#allocation19 + $0x58] sm:$0xff] }
 0xe68   : > { %v6597_v20 = vsub.f32 %v13753_v33, %v9599_v63  ;;  %v6568_v60 = vpop.f32.mrb[109].mxu1  ;;  %v6781_v28 = vpop.f32.mrb[79].mxu0  ;;  %v6856_v45 = vmul.f32 %v9664_v35, %v9664_v35 }
 0xe69   : > { %v6595_v51 = vsub.f32 %v13755_v59, %v6568_v60  ;;  %v9600_v21 = vpop.f32.mrb[110].mxu1  ;;  %9710 = vmatmul.mubr.f32.gmra.mrb[120].mxu1 %v6866_v37  ;;  %v6854_v8 = vmul.f32 %v6781_v28, %v6781_v28 }
 0xe6a   : > { %v6839_v10 = vmul.f32 %v6597_v20, %v6597_v20  ;;  %v6598_v36 = vsub.f32 %v13757_v42, %v9600_v21  ;;  %v6571_v3 = vpop.f32.mrb[111].mxu1  ;;  %9712 = vmatprep.mubr.f32.mxu1 %v6867_v58  ;;  %v6794_v42 = vld [vmem:[#allocation19 + $0x8] sm:$0xff]  ;;  %v6805_v20 = vld [vmem:[#allocation19 + $0x60] sm:$0xff] }
 0xe6b   : > { %v6837_v23 = vmul.f32 %v6595_v51, %v6595_v51  ;;  %v6596_v16 = vsub.f32 %v13759_v43, %v6571_v3  ;;  %v6795_v43 = vld [vmem:[#allocation19 + $0x10] sm:$0xff]  ;;  %v6802_v58 = vld [vmem:[#allocation19 + $0x48] sm:$0xff] }
 0xe6c   : > { %v6871_v34 = vadd.f32 %v6855_v26, %v6839_v10  ;;  %v6840_v49 = vmul.f32 %v6598_v36, %v6598_v36  ;;  %v6806_v21 = vld [vmem:[#allocation19 + $0x68] sm:$0xff]  ;;  %v6807_v3 = vld [vmem:[#allocation19 + $0x70] sm:$0xff] }
 0xe6d   : > { %v6869_v33 = vadd.f32 %v6853_v54, %v6837_v23  ;;  %v6838_v44 = vmul.f32 %v6596_v16, %v6596_v16  ;;  %9713 = vmatmul.mubr.f32.gmra.mrb[122].mxu1 %v6868_v5 }
 0xe6e   : > { %v6872_v59 = vadd.f32 %v6856_v45, %v6840_v49 }
 0xe6f   : > { %v6870_v2 = vadd.f32 %v6854_v8, %v6838_v44  ;;  %9715 = vmatprep.mubr.f32.mxu1 %v6869_v33 }
 0xe71   : > { %9716 = vmatmul.mubr.f32.gmra.mrb[124].mxu1 %v6870_v2 }
 0xe72   : > { %9718 = vmatprep.mubr.f32.mxu1 %v6871_v34  ;;  %v6808_v34 = vld [vmem:[#allocation19 + $0x78] sm:$0xff] }
 0xe75   : > { %9719 = vmatmul.mubr.f32.gmra.mrb[126].mxu1 %v6872_v59 }
 0xf2c   : > { %v9699_v52 = vpop.f32.mrb[112].mxu1 }
 0xf2d   : > { %v7019_v27 = vmul.f32 %v9699_v52, %v6794_v42  ;;  %v6939_v13 = vpop.f32.mrb[113].mxu1 }
 0xf2e   : > { %v7018_v7 = vmul.f32 %v6939_v13, %v6793_v32 }
 0xf30   : > { %v7034_v0 = vadd.f32 %v7019_v27, %v7018_v7  ;;  %v9702_v11 = vpop.f32.mrb[114].mxu1 }
 0xf31   : > { %v6949_v17 = vpop.f32.mrb[115].mxu1  ;;  %v7021_v47 = vmul.f32 %v9702_v11, %v6796_v30 }
 0xf32   : > { %v7020_v29 = vmul.f32 %v6949_v17, %v6795_v43 }
 0xf34   : > { %v7035_v38 = vadd.f32 %v7034_v0, %v7020_v29  ;;  %v9705_v6 = vpop.f32.mrb[116].mxu1 }
 0xf35   : > { %v6959_v41 = vpop.f32.mrb[117].mxu1  ;;  %v7023_v56 = vmul.f32 %v9705_v6, %v6798_v61 }
 0xf36   : > { %v7022_v19 = vmul.f32 %v6959_v41, %v6797_v15  ;;  %v7036_v62 = vadd.f32 %v7035_v38, %v7021_v47 }
 0xf38   : > { %v7037_v4 = vadd.f32 %v7036_v62, %v7022_v19  ;;  %v9708_v22 = vpop.f32.mrb[118].mxu1 }
 0xf39   : > { %v6969_v25 = vpop.f32.mrb[119].mxu1  ;;  %v7025_v50 = vmul.f32 %v9708_v22, %v6800_v14 }
 0xf3a   : > { %v7024_v9 = vmul.f32 %v6969_v25, %v6799_v53  ;;  %v7038_v18 = vadd.f32 %v7037_v4, %v7023_v56 }
 0xf3c   : > { %v7039_v48 = vadd.f32 %v7038_v18, %v7024_v9  ;;  %v9711_v31 = vpop.f32.mrb[120].mxu1 }
 0xf3d   : > { %v6979_v55 = vpop.f32.mrb[121].mxu1  ;;  %v7027_v1 = vmul.f32 %v9711_v31, %v6802_v58 }
 0xf3e   : > { %v7026_v46 = vmul.f32 %v6979_v55, %v6801_v12  ;;  %v7040_v40 = vadd.f32 %v7039_v48, %v7025_v50 }
 0xf40   : > { %v7041_v39 = vadd.f32 %v7040_v40, %v7026_v46  ;;  %v9714_v5 = vpop.f32.mrb[122].mxu1 }
 0xf41   : > { %v6989_v37 = vpop.f32.mrb[123].mxu1  ;;  %v7029_v60 = vmul.f32 %v9714_v5, %v6804_v57 }
 0xf42   : > { %v7028_v63 = vmul.f32 %v6989_v37, %v6803_v24  ;;  %v7042_v35 = vadd.f32 %v7041_v39, %v7027_v1 }
 0xf44   : > { %v7043_v28 = vadd.f32 %v7042_v35, %v7028_v63  ;;  %v9717_v51 = vpop.f32.mrb[124].mxu1 }
 0xf45   : > { %v6999_v26 = vpop.f32.mrb[125].mxu1  ;;  %v7031_v54 = vmul.f32 %v9717_v51, %v6806_v21 }
 0xf46   : > { %v7030_v10 = vmul.f32 %v6999_v26, %v6805_v20  ;;  %v7044_v36 = vadd.f32 %v7043_v28, %v7029_v60 }
 0xf48   : > { %v7045_v23 = vadd.f32 %v7044_v36, %v7030_v10  ;;  %v9720_v16 = vpop.f32.mrb[126].mxu1 }
 0xf49   : > { %v7009_v45 = vpop.f32.mrb[127].mxu1  ;;  %v7033_v8 = vmul.f32 %v9720_v16, %v6808_v34 }
 0xf4a   : > { %v7032_v49 = vmul.f32 %v7009_v45, %v6807_v3  ;;  %v7046_v33 = vadd.f32 %v7045_v23, %v7031_v54 }
 0xf4c   : > { %v7047_v44 = vadd.f32 %v7046_v33, %v7032_v49 }
 0xf4e   : > { %v7048_v59 = vadd.f32 %v7047_v44, %v7033_v8 }
 0xf50   : > { %v7049_v2 = vrot.slane %v7048_v59, 4 }
 0xf52   : > { %v7050_v42 = vadd.f32 %v7049_v2, %v7048_v59 }
 0xf54   : > { %v7051_v32 = vrot.slane %v7050_v42, 2 }
 0xf56   : > { %v7052_v52 = vadd.f32 %v7051_v32, %v7050_v42 }
 0xf58   : > { %v7053_v27 = vrot.slane %v7052_v52, 1 }
 0xf5a   : > { %v7054_v13 = vadd.f32 %v7053_v27, %v7052_v52 }
 0xf5c   : > { %7055 = vst [vmem:[%s11667_s26] sm:$0xff] %v7054_v13 }
 0xf5d PF: > { %p30_p11 = scmp.ge.s32.totalorder %s11565_s23, 6   ;;  %s14165_s29 = smov %s10985_s30 }
 0xf5e   : > { %s14166_s30 = smov %s10989_s15  ;;  %s14167_s15 = smov %s11577_s18 }
 0xf5f   : > { %s14168_s16 = smov %s11565_s23  ;;  %32 = sbr.rel (!%p30_p11) target bundleno = 13 (0xd), region = 184 }
 0xf66   :  { %7075 = vsyncpa [#allocation3], 1 }
 0xf67   :  { %7077 = vsyncpa [#allocation3 + $0x1], 1 }
 0xf68   :  { %7078 = vsyncpa [#allocation5], 1 }
 0xf69   :  { %7079 = vsyncpa [#allocation8], 1 }
 0xf6a   :  { %7080 = vsyncpa [#allocation11], 1 }
 0xf6b   :  { %7081 = vsyncpa [#allocation14], 1 }
 0xf6c   :  { %7082 = vsyncpa [#allocation17], 1 }
 0xf6d   :  { %7083 = vsyncpa [#allocation20], 1 }

</bundles_post_ra>
